<compile_context>
chip_gen: v5e
topology: v5e:2x2
jax: 0.10.0
libtpu: 0.0.40
codegen_flags: <defaults>
</compile_context>

<pallas_src>
import functools

import jax
import jax.numpy as jnp
from jax.experimental import pallas as pl
from jax.experimental.pallas import tpu as pltpu


def _gatv2_layer(x, mask, wcat, bcat, att, c, *, apply_relu):
    """One GATv2 layer + fused Linear skip on VMEM-resident values.

    x:    [N, Din]  f32
    mask: [N, N]    bool, mask[i, j] = True iff edge j -> i (i = target, j = source)
    wcat: [Din, 3C] f32  == concat([Wl, Wr, Wskip], axis=1)
    bcat: [1, 3C]   f32  == concat([bl, br, bskip + b_gat], axis=1)
    att:  [1, C]    f32
    """
    n = x.shape[0]

    # Fused projection: one wide MXU matmul covers lin_l, lin_r and the skip Linear.
    proj = jnp.dot(x, wcat, preferred_element_type=jnp.float32) + bcat     # [N, 3C]
    xl = proj[:, 0 * c:1 * c]        # source-side features (messages)
    xr = proj[:, 1 * c:2 * c]        # target-side features
    skip = proj[:, 2 * c:3 * c]      # Linear skip (b_gat already folded into its bias)

    # Pre-attention logits, accumulated over 128-wide channel chunks so the [N, N, cc]
    # elementwise temporary stays small and every reduce runs on full lanes.
    e = jnp.zeros((n, n), jnp.float32)
    cc = min(c, 128)
    for c0 in range(0, c, cc):
        xl_c = xl[:, c0:c0 + cc]
        xr_c = xr[:, c0:c0 + cc]
        att_c = att[:, c0:c0 + cc].reshape(1, 1, cc)
        pair = xl_c[None, :, :] + xr_c[:, None, :]            # [N, N, cc]
        pair = jnp.where(pair >= 0, pair, 0.2 * pair)         # leaky_relu(0.2)
        e = e + jnp.sum(pair * att_c, axis=-1)                 # [N, N]

    # Masked softmax over incoming edges (axis j); rows with no edges -> alpha = 0.
    e = jnp.where(mask, e, -1e30)
    m = jnp.max(e, axis=1, keepdims=True)
    p = jnp.where(mask, jnp.exp(e - m), 0.0)
    denom = jnp.sum(p, axis=1, keepdims=True)
    alpha = p * pl.reciprocal(jnp.maximum(denom, 1e-30), approx=True)

    # Aggregate messages on the MXU and add the skip connection.
    out = jnp.dot(alpha, xl, preferred_element_type=jnp.float32) + skip
    if apply_relu:
        out = jnp.maximum(out, 0.0)
    return out


def _gatnet_kernel(x_ref, adj_ref,
                   w1_ref, b1_ref, a1_ref,
                   w2_ref, b2_ref, a2_ref,
                   w3_ref, b3_ref, a3_ref,
                   o_ref, *, dims):
    c1, c2, c3 = dims
    mask = adj_ref[...] != 0                         # [N, N] bool
    x = x_ref[...].astype(jnp.float32)

    h = _gatv2_layer(x, mask, w1_ref[...], b1_ref[...], a1_ref[...], c1, apply_relu=True)
    h = _gatv2_layer(h, mask, w2_ref[...], b2_ref[...], a2_ref[...], c2, apply_relu=True)
    h = _gatv2_layer(h, mask, w3_ref[...], b3_ref[...], a3_ref[...], c3, apply_relu=False)

    o_ref[...] = h.astype(o_ref.dtype)


def init_layer_params(key, din, c):
    ks = jax.random.split(key, 4)

    def glorot(k, shape):
        fan_in, fan_out = shape
        lim = (6.0 / (fan_in + fan_out)) ** 0.5
        return jax.random.uniform(k, shape, jnp.float32, -lim, lim)

    return dict(
        wl=glorot(ks[0], (din, c)), bl=jnp.zeros((1, c), jnp.float32),
        wr=glorot(ks[1], (din, c)), br=jnp.zeros((1, c), jnp.float32),
        att=glorot(ks[2], (1, c)),
        bgat=jnp.zeros((1, c), jnp.float32),
        ws=glorot(ks[3], (din, c)), bs=jnp.zeros((1, c), jnp.float32),
    )


def init_gatnet_params(key, in_dim, h1_dim=512, h2_dim=256, out_dim=128):
    k1, k2, k3 = jax.random.split(key, 3)
    return dict(
        layer1=init_layer_params(k1, in_dim, h1_dim),
        layer2=init_layer_params(k2, h1_dim, h2_dim),
        layer3=init_layer_params(k3, h2_dim, out_dim),
    )


def _fuse_layer_params(p):
    # One wide weight [Din, 3C] and bias [1, 3C]; b_gat folded into the skip bias.
    wcat = jnp.concatenate([p["wl"], p["wr"], p["ws"]], axis=1)
    bcat = jnp.concatenate([p["bl"], p["br"], p["bs"] + p["bgat"]], axis=1)
    return wcat, bcat, p["att"]


def gatnet_forward(x, edge_index, params):
    n = x.shape[0]
    src, dst = edge_index[0], edge_index[1]
    # Dense adjacency mask (plain-JAX glue): adj[dst, src] = 1 for edge src -> dst.
    adj = jnp.zeros((n, n), jnp.int32).at[dst, src].set(1)

    w1, b1, a1 = _fuse_layer_params(params["layer1"])
    w2, b2, a2 = _fuse_layer_params(params["layer2"])
    w3, b3, a3 = _fuse_layer_params(params["layer3"])
    c1, c2, c3 = a1.shape[1], a2.shape[1], a3.shape[1]

    # TODO(synk): for large graphs (N >> 128) split back into per-layer kernels with a grid
    # over target-node blocks and flash-style online softmax over streamed source blocks;
    # at this model's scale the fully fused, VMEM-resident single call is faster.
    vmem = pl.BlockSpec(memory_space=pltpu.MemorySpace.VMEM)
    inputs = (x, adj, w1, b1, a1, w2, b2, a2, w3, b3, a3)
    return pl.pallas_call(
        functools.partial(_gatnet_kernel, dims=(c1, c2, c3)),
        out_shape=jax.ShapeDtypeStruct((n, c3), jnp.float32),
        in_specs=[vmem] * len(inputs),
        out_specs=vmem,
        compiler_params=pltpu.CompilerParams(vmem_limit_bytes=64 << 20),
    )(*inputs)


if __name__ == "__main__":
    N, DIN = 8, 16
    H1, H2, OUT = 512, 256, 128

    key = jax.random.PRNGKey(0)
    kx, kp = jax.random.split(key)

    x = jax.random.normal(kx, (N, DIN), jnp.float32)

    # Small directed graph: each node i sends edges to (i+1)%N and (i+3)%N.
    i = jnp.arange(N)
    src = jnp.concatenate([i, i])
    dst = jnp.concatenate([(i + 1) % N, (i + 3) % N])
    edge_index = jnp.stack([src, dst]).astype(jnp.int32)   # [2, 16]

    params = init_gatnet_params(kp, DIN, H1, H2, OUT)

    out = gatnet_forward(x, edge_index, params)
    out = jax.block_until_ready(out)
    assert out.shape == (N, OUT)
    assert bool(jnp.all(jnp.isfinite(out)))
    print("KERNEL_OK")
</pallas_src>

<mosaic_0001>
module attributes {stable_mosaic.version = 11 : i64} {
  func.func @_gatnet_kernel(%arg0: memref<8x16xf32, #tpu.memory_space<vmem>>, %arg1: memref<8x8xi32, #tpu.memory_space<vmem>>, %arg2: memref<16x1536xf32, #tpu.memory_space<vmem>>, %arg3: memref<1x1536xf32, #tpu.memory_space<vmem>>, %arg4: memref<1x512xf32, #tpu.memory_space<vmem>>, %arg5: memref<512x768xf32, #tpu.memory_space<vmem>>, %arg6: memref<1x768xf32, #tpu.memory_space<vmem>>, %arg7: memref<1x256xf32, #tpu.memory_space<vmem>>, %arg8: memref<256x384xf32, #tpu.memory_space<vmem>>, %arg9: memref<1x384xf32, #tpu.memory_space<vmem>>, %arg10: memref<1x128xf32, #tpu.memory_space<vmem>>, %arg11: memref<8x128xf32, #tpu.memory_space<vmem>>) attributes {dimension_semantics = [], scalar_prefetch = 0 : i64, scratch_operands = 0 : i64, tpu.core_type = #tpu.core_type<tc>} {
    %c0 = arith.constant 0 : index
    %c0_0 = arith.constant 0 : index
    %0 = vector.load %arg1[%c0, %c0_0] : memref<8x8xi32, #tpu.memory_space<vmem>>, vector<8x8xi32>
    %c0_i32 = arith.constant 0 : i32
    %1 = vector.broadcast %c0_i32 : i32 to vector<8x8xi32>
    %2 = arith.cmpi ne, %0, %1 : vector<8x8xi32>
    %c0_1 = arith.constant 0 : index
    %c0_2 = arith.constant 0 : index
    %3 = vector.load %arg0[%c0_1, %c0_2] : memref<8x16xf32, #tpu.memory_space<vmem>>, vector<8x16xf32>
    %c0_3 = arith.constant 0 : index
    %c0_4 = arith.constant 0 : index
    %4 = vector.load %arg2[%c0_3, %c0_4] : memref<16x1536xf32, #tpu.memory_space<vmem>>, vector<16x1536xf32>
    %c0_5 = arith.constant 0 : index
    %c0_6 = arith.constant 0 : index
    %5 = vector.load %arg3[%c0_5, %c0_6] : memref<1x1536xf32, #tpu.memory_space<vmem>>, vector<1x1536xf32>
    %c0_7 = arith.constant 0 : index
    %c0_8 = arith.constant 0 : index
    %6 = vector.load %arg4[%c0_7, %c0_8] : memref<1x512xf32, #tpu.memory_space<vmem>>, vector<1x512xf32>
    %cst = arith.constant dense<0.000000e+00> : vector<8x1536xf32>
    %7 = tpu.matmul %3, %4, %cst {dimension_numbers = #tpu.dot_dimension_numbers<[1], [0], [0], [1], [0, 0, 1, 1], [], []>} : vector<8x16xf32>, vector<16x1536xf32>, vector<8x1536xf32> -> vector<8x1536xf32>
    %8 = vector.broadcast %5 : vector<1x1536xf32> to vector<8x1536xf32>
    %9 = arith.addf %7, %8 : vector<8x1536xf32>
    %10 = vector.extract_strided_slice %9 {offsets = [0, 0], sizes = [8, 512], strides = [1, 1]} : vector<8x1536xf32> to vector<8x512xf32>
    %11 = vector.extract_strided_slice %9 {offsets = [0, 512], sizes = [8, 512], strides = [1, 1]} : vector<8x1536xf32> to vector<8x512xf32>
    %12 = vector.extract_strided_slice %9 {offsets = [0, 1024], sizes = [8, 512], strides = [1, 1]} : vector<8x1536xf32> to vector<8x512xf32>
    %cst_9 = arith.constant 0.000000e+00 : f32
    %13 = vector.broadcast %cst_9 : f32 to vector<8x8xf32>
    %14 = vector.extract_strided_slice %10 {offsets = [0, 0], sizes = [8, 128], strides = [1, 1]} : vector<8x512xf32> to vector<8x128xf32>
    %15 = vector.extract_strided_slice %11 {offsets = [0, 0], sizes = [8, 128], strides = [1, 1]} : vector<8x512xf32> to vector<8x128xf32>
    %16 = vector.extract_strided_slice %6 {offsets = [0, 0], sizes = [1, 128], strides = [1, 1]} : vector<1x512xf32> to vector<1x128xf32>
    %17 = vector.shape_cast %16 : vector<1x128xf32> to vector<1x1x128xf32>
    %18 = vector.shape_cast %14 : vector<8x128xf32> to vector<1x8x128xf32>
    %19 = vector.shape_cast %15 : vector<8x128xf32> to vector<8x1x128xf32>
    %20 = vector.broadcast %18 : vector<1x8x128xf32> to vector<8x8x128xf32>
    %21 = vector.broadcast %19 : vector<8x1x128xf32> to vector<8x8x128xf32>
    %22 = arith.addf %20, %21 : vector<8x8x128xf32>
    %cst_10 = arith.constant 0.000000e+00 : f32
    %23 = vector.broadcast %cst_10 : f32 to vector<8x8x128xf32>
    %24 = arith.cmpf oge, %22, %23 : vector<8x8x128xf32>
    %cst_11 = arith.constant 2.000000e-01 : f32
    %25 = vector.broadcast %cst_11 : f32 to vector<8x8x128xf32>
    %26 = arith.mulf %25, %22 : vector<8x8x128xf32>
    %27 = arith.select %24, %22, %26 : vector<8x8x128xi1>, vector<8x8x128xf32>
    %28 = vector.broadcast %17 : vector<1x1x128xf32> to vector<8x8x128xf32>
    %29 = arith.mulf %27, %28 : vector<8x8x128xf32>
    %cst_12 = arith.constant dense<0.000000e+00> : vector<8x8xf32>
    %30 = vector.multi_reduction <add>, %29, %cst_12 [2] : vector<8x8x128xf32> to vector<8x8xf32>
    %31 = arith.addf %13, %30 : vector<8x8xf32>
    %32 = vector.extract_strided_slice %10 {offsets = [0, 128], sizes = [8, 128], strides = [1, 1]} : vector<8x512xf32> to vector<8x128xf32>
    %33 = vector.extract_strided_slice %11 {offsets = [0, 128], sizes = [8, 128], strides = [1, 1]} : vector<8x512xf32> to vector<8x128xf32>
    %34 = vector.extract_strided_slice %6 {offsets = [0, 128], sizes = [1, 128], strides = [1, 1]} : vector<1x512xf32> to vector<1x128xf32>
    %35 = vector.shape_cast %34 : vector<1x128xf32> to vector<1x1x128xf32>
    %36 = vector.shape_cast %32 : vector<8x128xf32> to vector<1x8x128xf32>
    %37 = vector.shape_cast %33 : vector<8x128xf32> to vector<8x1x128xf32>
    %38 = vector.broadcast %36 : vector<1x8x128xf32> to vector<8x8x128xf32>
    %39 = vector.broadcast %37 : vector<8x1x128xf32> to vector<8x8x128xf32>
    %40 = arith.addf %38, %39 : vector<8x8x128xf32>
    %cst_13 = arith.constant 0.000000e+00 : f32
    %41 = vector.broadcast %cst_13 : f32 to vector<8x8x128xf32>
    %42 = arith.cmpf oge, %40, %41 : vector<8x8x128xf32>
    %cst_14 = arith.constant 2.000000e-01 : f32
    %43 = vector.broadcast %cst_14 : f32 to vector<8x8x128xf32>
    %44 = arith.mulf %43, %40 : vector<8x8x128xf32>
    %45 = arith.select %42, %40, %44 : vector<8x8x128xi1>, vector<8x8x128xf32>
    %46 = vector.broadcast %35 : vector<1x1x128xf32> to vector<8x8x128xf32>
    %47 = arith.mulf %45, %46 : vector<8x8x128xf32>
    %cst_15 = arith.constant dense<0.000000e+00> : vector<8x8xf32>
    %48 = vector.multi_reduction <add>, %47, %cst_15 [2] : vector<8x8x128xf32> to vector<8x8xf32>
    %49 = arith.addf %31, %48 : vector<8x8xf32>
    %50 = vector.extract_strided_slice %10 {offsets = [0, 256], sizes = [8, 128], strides = [1, 1]} : vector<8x512xf32> to vector<8x128xf32>
    %51 = vector.extract_strided_slice %11 {offsets = [0, 256], sizes = [8, 128], strides = [1, 1]} : vector<8x512xf32> to vector<8x128xf32>
    %52 = vector.extract_strided_slice %6 {offsets = [0, 256], sizes = [1, 128], strides = [1, 1]} : vector<1x512xf32> to vector<1x128xf32>
    %53 = vector.shape_cast %52 : vector<1x128xf32> to vector<1x1x128xf32>
    %54 = vector.shape_cast %50 : vector<8x128xf32> to vector<1x8x128xf32>
    %55 = vector.shape_cast %51 : vector<8x128xf32> to vector<8x1x128xf32>
    %56 = vector.broadcast %54 : vector<1x8x128xf32> to vector<8x8x128xf32>
    %57 = vector.broadcast %55 : vector<8x1x128xf32> to vector<8x8x128xf32>
    %58 = arith.addf %56, %57 : vector<8x8x128xf32>
    %cst_16 = arith.constant 0.000000e+00 : f32
    %59 = vector.broadcast %cst_16 : f32 to vector<8x8x128xf32>
    %60 = arith.cmpf oge, %58, %59 : vector<8x8x128xf32>
    %cst_17 = arith.constant 2.000000e-01 : f32
    %61 = vector.broadcast %cst_17 : f32 to vector<8x8x128xf32>
    %62 = arith.mulf %61, %58 : vector<8x8x128xf32>
    %63 = arith.select %60, %58, %62 : vector<8x8x128xi1>, vector<8x8x128xf32>
    %64 = vector.broadcast %53 : vector<1x1x128xf32> to vector<8x8x128xf32>
    %65 = arith.mulf %63, %64 : vector<8x8x128xf32>
    %cst_18 = arith.constant dense<0.000000e+00> : vector<8x8xf32>
    %66 = vector.multi_reduction <add>, %65, %cst_18 [2] : vector<8x8x128xf32> to vector<8x8xf32>
    %67 = arith.addf %49, %66 : vector<8x8xf32>
    %68 = vector.extract_strided_slice %10 {offsets = [0, 384], sizes = [8, 128], strides = [1, 1]} : vector<8x512xf32> to vector<8x128xf32>
    %69 = vector.extract_strided_slice %11 {offsets = [0, 384], sizes = [8, 128], strides = [1, 1]} : vector<8x512xf32> to vector<8x128xf32>
    %70 = vector.extract_strided_slice %6 {offsets = [0, 384], sizes = [1, 128], strides = [1, 1]} : vector<1x512xf32> to vector<1x128xf32>
    %71 = vector.shape_cast %70 : vector<1x128xf32> to vector<1x1x128xf32>
    %72 = vector.shape_cast %68 : vector<8x128xf32> to vector<1x8x128xf32>
    %73 = vector.shape_cast %69 : vector<8x128xf32> to vector<8x1x128xf32>
    %74 = vector.broadcast %72 : vector<1x8x128xf32> to vector<8x8x128xf32>
    %75 = vector.broadcast %73 : vector<8x1x128xf32> to vector<8x8x128xf32>
    %76 = arith.addf %74, %75 : vector<8x8x128xf32>
    %cst_19 = arith.constant 0.000000e+00 : f32
    %77 = vector.broadcast %cst_19 : f32 to vector<8x8x128xf32>
    %78 = arith.cmpf oge, %76, %77 : vector<8x8x128xf32>
    %cst_20 = arith.constant 2.000000e-01 : f32
    %79 = vector.broadcast %cst_20 : f32 to vector<8x8x128xf32>
    %80 = arith.mulf %79, %76 : vector<8x8x128xf32>
    %81 = arith.select %78, %76, %80 : vector<8x8x128xi1>, vector<8x8x128xf32>
    %82 = vector.broadcast %71 : vector<1x1x128xf32> to vector<8x8x128xf32>
    %83 = arith.mulf %81, %82 : vector<8x8x128xf32>
    %cst_21 = arith.constant dense<0.000000e+00> : vector<8x8xf32>
    %84 = vector.multi_reduction <add>, %83, %cst_21 [2] : vector<8x8x128xf32> to vector<8x8xf32>
    %85 = arith.addf %67, %84 : vector<8x8xf32>
    %cst_22 = arith.constant -1.000000e+30 : f32
    %86 = vector.broadcast %cst_22 : f32 to vector<8x8xf32>
    %87 = arith.select %2, %85, %86 : vector<8x8xi1>, vector<8x8xf32>
    %cst_23 = arith.constant dense<0xFF800000> : vector<8xf32>
    %88 = vector.multi_reduction <maximumf>, %87, %cst_23 [1] : vector<8x8xf32> to vector<8xf32>
    %89 = vector.shape_cast %88 : vector<8xf32> to vector<8x1xf32>
    %90 = vector.broadcast %89 : vector<8x1xf32> to vector<8x8xf32>
    %91 = arith.subf %87, %90 : vector<8x8xf32>
    %92 = math.exp %91 : vector<8x8xf32>
    %cst_24 = arith.constant 0.000000e+00 : f32
    %93 = vector.broadcast %cst_24 : f32 to vector<8x8xf32>
    %94 = arith.select %2, %92, %93 : vector<8x8xi1>, vector<8x8xf32>
    %cst_25 = arith.constant dense<0.000000e+00> : vector<8xf32>
    %95 = vector.multi_reduction <add>, %94, %cst_25 [1] : vector<8x8xf32> to vector<8xf32>
    %96 = vector.shape_cast %95 : vector<8xf32> to vector<8x1xf32>
    %cst_26 = arith.constant 1.000000e-30 : f32
    %97 = vector.broadcast %cst_26 : f32 to vector<8x1xf32>
    %98 = arith.maximumf %96, %97 : vector<8x1xf32>
    %99 = tpu.reciprocal %98 {approx = true} : vector<8x1xf32> -> vector<8x1xf32>
    %100 = vector.broadcast %99 : vector<8x1xf32> to vector<8x8xf32>
    %101 = arith.mulf %94, %100 : vector<8x8xf32>
    %cst_27 = arith.constant dense<0.000000e+00> : vector<8x512xf32>
    %102 = tpu.matmul %101, %10, %cst_27 {dimension_numbers = #tpu.dot_dimension_numbers<[1], [0], [0], [1], [0, 0, 1, 1], [], []>} : vector<8x8xf32>, vector<8x512xf32>, vector<8x512xf32> -> vector<8x512xf32>
    %103 = arith.addf %102, %12 : vector<8x512xf32>
    %cst_28 = arith.constant 0.000000e+00 : f32
    %104 = vector.broadcast %cst_28 : f32 to vector<8x512xf32>
    %105 = arith.maximumf %103, %104 : vector<8x512xf32>
    %c0_29 = arith.constant 0 : index
    %c0_30 = arith.constant 0 : index
    %106 = vector.load %arg5[%c0_29, %c0_30] : memref<512x768xf32, #tpu.memory_space<vmem>>, vector<512x768xf32>
    %c0_31 = arith.constant 0 : index
    %c0_32 = arith.constant 0 : index
    %107 = vector.load %arg6[%c0_31, %c0_32] : memref<1x768xf32, #tpu.memory_space<vmem>>, vector<1x768xf32>
    %c0_33 = arith.constant 0 : index
    %c0_34 = arith.constant 0 : index
    %108 = vector.load %arg7[%c0_33, %c0_34] : memref<1x256xf32, #tpu.memory_space<vmem>>, vector<1x256xf32>
    %cst_35 = arith.constant dense<0.000000e+00> : vector<8x768xf32>
    %109 = tpu.matmul %105, %106, %cst_35 {dimension_numbers = #tpu.dot_dimension_numbers<[1], [0], [0], [1], [0, 0, 1, 1], [], []>} : vector<8x512xf32>, vector<512x768xf32>, vector<8x768xf32> -> vector<8x768xf32>
    %110 = vector.broadcast %107 : vector<1x768xf32> to vector<8x768xf32>
    %111 = arith.addf %109, %110 : vector<8x768xf32>
    %112 = vector.extract_strided_slice %111 {offsets = [0, 0], sizes = [8, 256], strides = [1, 1]} : vector<8x768xf32> to vector<8x256xf32>
    %113 = vector.extract_strided_slice %111 {offsets = [0, 256], sizes = [8, 256], strides = [1, 1]} : vector<8x768xf32> to vector<8x256xf32>
    %114 = vector.extract_strided_slice %111 {offsets = [0, 512], sizes = [8, 256], strides = [1, 1]} : vector<8x768xf32> to vector<8x256xf32>
    %cst_36 = arith.constant 0.000000e+00 : f32
    %115 = vector.broadcast %cst_36 : f32 to vector<8x8xf32>
    %116 = vector.extract_strided_slice %112 {offsets = [0, 0], sizes = [8, 128], strides = [1, 1]} : vector<8x256xf32> to vector<8x128xf32>
    %117 = vector.extract_strided_slice %113 {offsets = [0, 0], sizes = [8, 128], strides = [1, 1]} : vector<8x256xf32> to vector<8x128xf32>
    %118 = vector.extract_strided_slice %108 {offsets = [0, 0], sizes = [1, 128], strides = [1, 1]} : vector<1x256xf32> to vector<1x128xf32>
    %119 = vector.shape_cast %118 : vector<1x128xf32> to vector<1x1x128xf32>
    %120 = vector.shape_cast %116 : vector<8x128xf32> to vector<1x8x128xf32>
    %121 = vector.shape_cast %117 : vector<8x128xf32> to vector<8x1x128xf32>
    %122 = vector.broadcast %120 : vector<1x8x128xf32> to vector<8x8x128xf32>
    %123 = vector.broadcast %121 : vector<8x1x128xf32> to vector<8x8x128xf32>
    %124 = arith.addf %122, %123 : vector<8x8x128xf32>
    %cst_37 = arith.constant 0.000000e+00 : f32
    %125 = vector.broadcast %cst_37 : f32 to vector<8x8x128xf32>
    %126 = arith.cmpf oge, %124, %125 : vector<8x8x128xf32>
    %cst_38 = arith.constant 2.000000e-01 : f32
    %127 = vector.broadcast %cst_38 : f32 to vector<8x8x128xf32>
    %128 = arith.mulf %127, %124 : vector<8x8x128xf32>
    %129 = arith.select %126, %124, %128 : vector<8x8x128xi1>, vector<8x8x128xf32>
    %130 = vector.broadcast %119 : vector<1x1x128xf32> to vector<8x8x128xf32>
    %131 = arith.mulf %129, %130 : vector<8x8x128xf32>
    %cst_39 = arith.constant dense<0.000000e+00> : vector<8x8xf32>
    %132 = vector.multi_reduction <add>, %131, %cst_39 [2] : vector<8x8x128xf32> to vector<8x8xf32>
    %133 = arith.addf %115, %132 : vector<8x8xf32>
    %134 = vector.extract_strided_slice %112 {offsets = [0, 128], sizes = [8, 128], strides = [1, 1]} : vector<8x256xf32> to vector<8x128xf32>
    %135 = vector.extract_strided_slice %113 {offsets = [0, 128], sizes = [8, 128], strides = [1, 1]} : vector<8x256xf32> to vector<8x128xf32>
    %136 = vector.extract_strided_slice %108 {offsets = [0, 128], sizes = [1, 128], strides = [1, 1]} : vector<1x256xf32> to vector<1x128xf32>
    %137 = vector.shape_cast %136 : vector<1x128xf32> to vector<1x1x128xf32>
    %138 = vector.shape_cast %134 : vector<8x128xf32> to vector<1x8x128xf32>
    %139 = vector.shape_cast %135 : vector<8x128xf32> to vector<8x1x128xf32>
    %140 = vector.broadcast %138 : vector<1x8x128xf32> to vector<8x8x128xf32>
    %141 = vector.broadcast %139 : vector<8x1x128xf32> to vector<8x8x128xf32>
    %142 = arith.addf %140, %141 : vector<8x8x128xf32>
    %cst_40 = arith.constant 0.000000e+00 : f32
    %143 = vector.broadcast %cst_40 : f32 to vector<8x8x128xf32>
    %144 = arith.cmpf oge, %142, %143 : vector<8x8x128xf32>
    %cst_41 = arith.constant 2.000000e-01 : f32
    %145 = vector.broadcast %cst_41 : f32 to vector<8x8x128xf32>
    %146 = arith.mulf %145, %142 : vector<8x8x128xf32>
    %147 = arith.select %144, %142, %146 : vector<8x8x128xi1>, vector<8x8x128xf32>
    %148 = vector.broadcast %137 : vector<1x1x128xf32> to vector<8x8x128xf32>
    %149 = arith.mulf %147, %148 : vector<8x8x128xf32>
    %cst_42 = arith.constant dense<0.000000e+00> : vector<8x8xf32>
    %150 = vector.multi_reduction <add>, %149, %cst_42 [2] : vector<8x8x128xf32> to vector<8x8xf32>
    %151 = arith.addf %133, %150 : vector<8x8xf32>
    %cst_43 = arith.constant -1.000000e+30 : f32
    %152 = vector.broadcast %cst_43 : f32 to vector<8x8xf32>
    %153 = arith.select %2, %151, %152 : vector<8x8xi1>, vector<8x8xf32>
    %cst_44 = arith.constant dense<0xFF800000> : vector<8xf32>
    %154 = vector.multi_reduction <maximumf>, %153, %cst_44 [1] : vector<8x8xf32> to vector<8xf32>
    %155 = vector.shape_cast %154 : vector<8xf32> to vector<8x1xf32>
    %156 = vector.broadcast %155 : vector<8x1xf32> to vector<8x8xf32>
    %157 = arith.subf %153, %156 : vector<8x8xf32>
    %158 = math.exp %157 : vector<8x8xf32>
    %cst_45 = arith.constant 0.000000e+00 : f32
    %159 = vector.broadcast %cst_45 : f32 to vector<8x8xf32>
    %160 = arith.select %2, %158, %159 : vector<8x8xi1>, vector<8x8xf32>
    %cst_46 = arith.constant dense<0.000000e+00> : vector<8xf32>
    %161 = vector.multi_reduction <add>, %160, %cst_46 [1] : vector<8x8xf32> to vector<8xf32>
    %162 = vector.shape_cast %161 : vector<8xf32> to vector<8x1xf32>
    %cst_47 = arith.constant 1.000000e-30 : f32
    %163 = vector.broadcast %cst_47 : f32 to vector<8x1xf32>
    %164 = arith.maximumf %162, %163 : vector<8x1xf32>
    %165 = tpu.reciprocal %164 {approx = true} : vector<8x1xf32> -> vector<8x1xf32>
    %166 = vector.broadcast %165 : vector<8x1xf32> to vector<8x8xf32>
    %167 = arith.mulf %160, %166 : vector<8x8xf32>
    %cst_48 = arith.constant dense<0.000000e+00> : vector<8x256xf32>
    %168 = tpu.matmul %167, %112, %cst_48 {dimension_numbers = #tpu.dot_dimension_numbers<[1], [0], [0], [1], [0, 0, 1, 1], [], []>} : vector<8x8xf32>, vector<8x256xf32>, vector<8x256xf32> -> vector<8x256xf32>
    %169 = arith.addf %168, %114 : vector<8x256xf32>
    %cst_49 = arith.constant 0.000000e+00 : f32
    %170 = vector.broadcast %cst_49 : f32 to vector<8x256xf32>
    %171 = arith.maximumf %169, %170 : vector<8x256xf32>
    %c0_50 = arith.constant 0 : index
    %c0_51 = arith.constant 0 : index
    %172 = vector.load %arg8[%c0_50, %c0_51] : memref<256x384xf32, #tpu.memory_space<vmem>>, vector<256x384xf32>
    %c0_52 = arith.constant 0 : index
    %c0_53 = arith.constant 0 : index
    %173 = vector.load %arg9[%c0_52, %c0_53] : memref<1x384xf32, #tpu.memory_space<vmem>>, vector<1x384xf32>
    %c0_54 = arith.constant 0 : index
    %c0_55 = arith.constant 0 : index
    %174 = vector.load %arg10[%c0_54, %c0_55] : memref<1x128xf32, #tpu.memory_space<vmem>>, vector<1x128xf32>
    %cst_56 = arith.constant dense<0.000000e+00> : vector<8x384xf32>
    %175 = tpu.matmul %171, %172, %cst_56 {dimension_numbers = #tpu.dot_dimension_numbers<[1], [0], [0], [1], [0, 0, 1, 1], [], []>} : vector<8x256xf32>, vector<256x384xf32>, vector<8x384xf32> -> vector<8x384xf32>
    %176 = vector.broadcast %173 : vector<1x384xf32> to vector<8x384xf32>
    %177 = arith.addf %175, %176 : vector<8x384xf32>
    %178 = vector.extract_strided_slice %177 {offsets = [0, 0], sizes = [8, 128], strides = [1, 1]} : vector<8x384xf32> to vector<8x128xf32>
    %179 = vector.extract_strided_slice %177 {offsets = [0, 128], sizes = [8, 128], strides = [1, 1]} : vector<8x384xf32> to vector<8x128xf32>
    %180 = vector.extract_strided_slice %177 {offsets = [0, 256], sizes = [8, 128], strides = [1, 1]} : vector<8x384xf32> to vector<8x128xf32>
    %cst_57 = arith.constant 0.000000e+00 : f32
    %181 = vector.broadcast %cst_57 : f32 to vector<8x8xf32>
    %182 = vector.shape_cast %174 : vector<1x128xf32> to vector<1x1x128xf32>
    %183 = vector.shape_cast %178 : vector<8x128xf32> to vector<1x8x128xf32>
    %184 = vector.shape_cast %179 : vector<8x128xf32> to vector<8x1x128xf32>
    %185 = vector.broadcast %183 : vector<1x8x128xf32> to vector<8x8x128xf32>
    %186 = vector.broadcast %184 : vector<8x1x128xf32> to vector<8x8x128xf32>
    %187 = arith.addf %185, %186 : vector<8x8x128xf32>
    %cst_58 = arith.constant 0.000000e+00 : f32
    %188 = vector.broadcast %cst_58 : f32 to vector<8x8x128xf32>
    %189 = arith.cmpf oge, %187, %188 : vector<8x8x128xf32>
    %cst_59 = arith.constant 2.000000e-01 : f32
    %190 = vector.broadcast %cst_59 : f32 to vector<8x8x128xf32>
    %191 = arith.mulf %190, %187 : vector<8x8x128xf32>
    %192 = arith.select %189, %187, %191 : vector<8x8x128xi1>, vector<8x8x128xf32>
    %193 = vector.broadcast %182 : vector<1x1x128xf32> to vector<8x8x128xf32>
    %194 = arith.mulf %192, %193 : vector<8x8x128xf32>
    %cst_60 = arith.constant dense<0.000000e+00> : vector<8x8xf32>
    %195 = vector.multi_reduction <add>, %194, %cst_60 [2] : vector<8x8x128xf32> to vector<8x8xf32>
    %196 = arith.addf %181, %195 : vector<8x8xf32>
    %cst_61 = arith.constant -1.000000e+30 : f32
    %197 = vector.broadcast %cst_61 : f32 to vector<8x8xf32>
    %198 = arith.select %2, %196, %197 : vector<8x8xi1>, vector<8x8xf32>
    %cst_62 = arith.constant dense<0xFF800000> : vector<8xf32>
    %199 = vector.multi_reduction <maximumf>, %198, %cst_62 [1] : vector<8x8xf32> to vector<8xf32>
    %200 = vector.shape_cast %199 : vector<8xf32> to vector<8x1xf32>
    %201 = vector.broadcast %200 : vector<8x1xf32> to vector<8x8xf32>
    %202 = arith.subf %198, %201 : vector<8x8xf32>
    %203 = math.exp %202 : vector<8x8xf32>
    %cst_63 = arith.constant 0.000000e+00 : f32
    %204 = vector.broadcast %cst_63 : f32 to vector<8x8xf32>
    %205 = arith.select %2, %203, %204 : vector<8x8xi1>, vector<8x8xf32>
    %cst_64 = arith.constant dense<0.000000e+00> : vector<8xf32>
    %206 = vector.multi_reduction <add>, %205, %cst_64 [1] : vector<8x8xf32> to vector<8xf32>
    %207 = vector.shape_cast %206 : vector<8xf32> to vector<8x1xf32>
    %cst_65 = arith.constant 1.000000e-30 : f32
    %208 = vector.broadcast %cst_65 : f32 to vector<8x1xf32>
    %209 = arith.maximumf %207, %208 : vector<8x1xf32>
    %210 = tpu.reciprocal %209 {approx = true} : vector<8x1xf32> -> vector<8x1xf32>
    %211 = vector.broadcast %210 : vector<8x1xf32> to vector<8x8xf32>
    %212 = arith.mulf %205, %211 : vector<8x8xf32>
    %cst_66 = arith.constant dense<0.000000e+00> : vector<8x128xf32>
    %213 = tpu.matmul %212, %178, %cst_66 {dimension_numbers = #tpu.dot_dimension_numbers<[1], [0], [0], [1], [0, 0, 1, 1], [], []>} : vector<8x8xf32>, vector<8x128xf32>, vector<8x128xf32> -> vector<8x128xf32>
    %214 = arith.addf %213, %180 : vector<8x128xf32>
    %c0_67 = arith.constant 0 : index
    %c0_68 = arith.constant 0 : index
    %215 = vector.load %arg11[%c0_67, %c0_68] : memref<8x128xf32, #tpu.memory_space<vmem>>, vector<8x128xf32>
    tpu.vector_store %arg11[%c0_67, %c0_68], %214 {strides = array<i32>} : memref<8x128xf32, #tpu.memory_space<vmem>>, vector<8x128xf32>,
    return
  }
}

</mosaic_0001>

<bundles_post_ra>
// kernel: tpu_custom_call.1
= control target key start
LH: loop header
LB: loop body
LE: loop exit
PB: predicated region body
PF: predicated region fallthrough
CT: control target
= control target key end

     0   :  { %16 = vsyncpa [#allocation3], 0  ;;  %s3332_s0 = inlined_call_operand.hbm [shape: f32[8,16], index: 0, kind: input, shape index: {}]   ;;  %s3333_s1 = inlined_call_operand.hbm [shape: s32[8,8], index: 1, kind: input, shape index: {}]   ;;  %s3334_s2 = inlined_call_operand.hbm [shape: f32[16,1536], index: 2, kind: input, shape index: {}]   ;;  %s3335_s3 = inlined_call_operand.hbm [shape: f32[1,1536], index: 3, kind: input, shape index: {}]   ;;  %s3336_s4 = inlined_call_operand.hbm [shape: f32[1,512], index: 4, kind: input, shape index: {}]   ;;  %s3337_s5 = inlined_call_operand.hbm [shape: f32[512,768], index: 5, kind: input, shape index: {}]   ;;  %s3338_s6 = inlined_call_operand.hbm [shape: f32[1,768], index: 6, kind: input, shape index: {}]   ;;  %s3339_s7 = inlined_call_operand.hbm [shape: f32[1,256], index: 7, kind: input, shape index: {}]   ;;  %s3340_s8 = inlined_call_operand.hbm [shape: f32[256,384], index: 8, kind: input, shape index: {}]   ;;  %s3341_s9 = inlined_call_operand.hbm [shape: f32[1,384], index: 9, kind: input, shape index: {}]   ;;  %s3342_s10 = inlined_call_operand.hbm [shape: f32[1,128], index: 10, kind: input, shape index: {}]   ;;  %s3343_s11 = inlined_call_operand.hbm [shape: f32[8,128], index: 11, kind: output, shape index: {}]  }
   0x1   :  { %17 = vsyncpa [#allocation6], 0 }
   0x2   :  { %18 = vsyncpa [#allocation9], 0 }
   0x3   :  { %19 = vsyncpa [#allocation12], 0 }
   0x4   :  { %20 = vsyncpa [#allocation15], 0 }
   0x5   :  { %21 = vsyncpa [#allocation18], 0  ;;  %s39_s19 = sshll.u32 %s3333_s1, 4  ;;  %s40_s19 = int_to_ptr.hbm [resolvable:$true] %s39_s19 }
   0x6   :  { %22 = vsyncpa [#allocation4], 0  ;;  %s2889_s20 = smov [#allocation5]   ;;  %s63_s24 = sshll.u32 %s3335_s3, 4  ;;  %s64_s24 = int_to_ptr.hbm [resolvable:$true] %s63_s24 }
   0x7   :  { %s41_s21 = sshll.u32 %s2889_s20, 4  ;;  %s2890_s25 = smov [#allocation8]   ;;  %s42_s21 = int_to_ptr.vmem [resolvable:$true] %s41_s21 }
   0x8   :  { %44 = dma.hbm_to_vmem [thread:$0]  %s40_s19, 128, %s42_s21, [#allocation6]  }
   0x9   :  { %s65_s26 = sshll.u32 %s2890_s25, 4  ;;  %s84_s29 = sshll.u32 %s3337_s5, 4  ;;  %s66_s26 = int_to_ptr.vmem [resolvable:$true] %s65_s26  ;;  %s85_s29 = int_to_ptr.hbm [resolvable:$true] %s84_s29 }
   0xa   :  { %68 = dma.hbm_to_vmem [thread:$0]  %s64_s24, 192, %s66_s26, [#allocation9]  }
   0xb   :  { %s2891_s1 = smov [#allocation11]   ;;  %s109_s14 = sshll.u32 %s3339_s7, 4  ;;  %s110_s14 = int_to_ptr.hbm [resolvable:$true] %s109_s14 }
   0xc   :  { %s86_s30 = sshll.u32 %s2891_s1, 4  ;;  %s2892_s15 = smov 768   ;;  %s87_s30 = int_to_ptr.vmem [resolvable:$true] %s86_s30 }
   0xd   :  { %s2893_s3 = smov 48   ;;  %s2894_s16 = smov [#allocation14]  }
   0xe   :  { %92 = dma.hbm_to_vmem [thread:$0]  %s85_s29, 49152, %s87_s30, [#allocation12], %s2892_s15, %s2892_s15, %s2893_s3  }
   0xf   :  { %s111_s17 = sshll.u32 %s2894_s16, 4  ;;  %s133_s5 = sshll.u32 %s3341_s9, 4  ;;  %s112_s17 = int_to_ptr.vmem [resolvable:$true] %s111_s17  ;;  %s134_s5 = int_to_ptr.hbm [resolvable:$true] %s133_s5 }
  0x10   :  { %114 = dma.hbm_to_vmem [thread:$0]  %s110_s14, 32, %s112_s17, [#allocation15]  }
  0x11   :  { %s28_s22 = sshll.u32 %s3332_s0, 4  ;;  %s2895_s23 = smov [#allocation17]   ;;  %s29_s22 = int_to_ptr.hbm [resolvable:$true] %s28_s22 }
  0x12   :  { %s135_s24 = sshll.u32 %s2895_s23, 4  ;;  %s2896_s7 = smov [#allocation2]   ;;  %s136_s24 = int_to_ptr.vmem [resolvable:$true] %s135_s24 }
  0x13   :  { %138 = dma.hbm_to_vmem [thread:$0]  %s134_s5, 48, %s136_s24, [#allocation18]  }
  0x14   :  { %s30_s25 = sshll.u32 %s2896_s7, 4  ;;  %s49_s28 = sshll.u32 %s3334_s2, 4  ;;  %s31_s25 = int_to_ptr.vmem [resolvable:$true] %s30_s25  ;;  %s50_s28 = int_to_ptr.hbm [resolvable:$true] %s49_s28 }
  0x15   :  { %33 = dma.hbm_to_vmem [thread:$0]  %s29_s22, 128, %s31_s25, [#allocation3]  }
  0x16   :  { %s2897_s9 = smov [#allocation7]   ;;  %s74_s0 = sshll.u32 %s3336_s4, 4  ;;  %s75_s0 = int_to_ptr.hbm [resolvable:$true] %s74_s0 }
  0x17   :  { %s51_s29 = sshll.u32 %s2897_s9, 4  ;;  %s2898_s12 = smov 1536   ;;  %s52_s29 = int_to_ptr.vmem [resolvable:$true] %s51_s29 }
  0x18   :  { %s2899_s13 = smov 96   ;;  %s2900_s14 = smov [#allocation10]  }
  0x19   :  { %57 = dma.hbm_to_vmem [thread:$0]  %s50_s28, 3072, %s52_s29, [#allocation6], %s2898_s12, %s2898_s12, %s2899_s13  }
  0x1a   :  { %s76_s15 = sshll.u32 %s2900_s14, 4  ;;  %s98_s2 = sshll.u32 %s3338_s6, 4  ;;  %s77_s15 = int_to_ptr.vmem [resolvable:$true] %s76_s15  ;;  %s99_s2 = int_to_ptr.hbm [resolvable:$true] %s98_s2 }
  0x1b   :  { %79 = dma.hbm_to_vmem [thread:$0]  %s75_s0, 64, %s77_s15, [#allocation9]  }
  0x1c   :  { %s119_s19 = sshll.u32 %s3340_s8, 4  ;;  %s2901_s5 = smov [#allocation13]   ;;  %s120_s19 = int_to_ptr.hbm [resolvable:$true] %s119_s19 }
  0x1d   :  { %s100_s20 = sshll.u32 %s2901_s5, 4  ;;  %s2902_s4 = smov [#allocation16]   ;;  %s101_s20 = int_to_ptr.vmem [resolvable:$true] %s100_s20 }
  0x1e   :  { %103 = dma.hbm_to_vmem [thread:$0]  %s99_s2, 96, %s101_s20, [#allocation12]  }
  0x1f   :  { %s121_s21 = sshll.u32 %s2902_s4, 4  ;;  %s2903_s22 = smov 384   ;;  %s122_s21 = int_to_ptr.vmem [resolvable:$true] %s121_s21 }
  0x20   :  { %s2904_s23 = smov 24   ;;  %s144_s7 = sshll.u32 %s3342_s10, 4  ;;  %s145_s7 = int_to_ptr.hbm [resolvable:$true] %s144_s7 }
  0x21   :  { %127 = dma.hbm_to_vmem [thread:$0]  %s120_s19, 12288, %s122_s21, [#allocation15], %s2903_s22, %s2903_s22, %s2904_s23  }
  0x22   :  { %s2905_s25 = smov [#allocation19]  }
  0x23   :  { %s146_s26 = sshll.u32 %s2905_s25, 4  ;;  %s147_s26 = int_to_ptr.vmem [resolvable:$true] %s146_s26 }
  0x24   :  { %149 = dma.hbm_to_vmem [thread:$0]  %s145_s7, 16, %s147_s26, [#allocation18]  }
  0x25   :  { %2875 = dma.done.wait [#allocation3], 128  }
  0x26   :  { %2876 = vsyncadd [#allocation3], 4294967168 }
  0x27   :  { %2877 = dma.done.wait [#allocation6], 3200  }
  0x28   :  { %2878 = vsyncadd [#allocation6], 4294964096 }
  0x29   :  { %2879 = dma.done.wait [#allocation9], 256  }
  0x2a   :  { %2880 = vsyncadd [#allocation9], 4294967040 }
  0x2b   :  { %2881 = dma.done.wait [#allocation12], 49248  }
  0x2c   :  { %2882 = vsyncadd [#allocation12], 4294918048 }
  0x2d   :  { %2883 = dma.done.wait [#allocation15], 12320  }
  0x2e   :  { %2884 = vsyncadd [#allocation15], 4294954976 }
  0x2f   :  { %2885 = dma.done.wait [#allocation18], 64  }
  0x30   :  { %2886 = vsyncadd [#allocation18], 4294967232  ;;  %v209_v0 = vld [vmem:[#allocation7 + $0x60] sm:$0xff]  ;;  %v210_v1 = vld [vmem:[#allocation7 + $0x68] sm:$0xff]  ;;  %vm250_vm0 = vcmask 130048   ;;  %s2906_s8 = smov [#allocation20]  }
  0x31   :  { %v215_v2 = vld [vmem:[#allocation7 + $0x90] sm:$0xff]  ;;  %268 = vmatpush.msra.mxu0 %v209_v0  ;;  %288 = vmatpush.msra.mxu1 %v210_v1  ;;  %v216_v3 = vld [vmem:[#allocation7 + $0x98] sm:$0xff]  ;;  %v197_v4 = vld [vmem:[#allocation7] sm:$0xff]  ;;  %s2520_s10 = sshll.u32 %s2906_s8, 4  ;;  %s2522_s9 = sshll.u32 %s3343_s11, 4  ;;  %s2521_s10 = int_to_ptr.vmem [resolvable:$true] %s2520_s10  ;;  %s2523_s9 = int_to_ptr.hbm [resolvable:$true] %s2522_s9 }
  0x32   :  { %v198_v5 = vld [vmem:[#allocation7 + $0x8] sm:$0xff]  ;;  %388 = vmatpush.msra.mxu2 %v215_v2  ;;  %408 = vmatpush.msra.mxu3 %v216_v3  ;;  %v203_v6 = vld [vmem:[#allocation7 + $0x30] sm:$0xff]  ;;  %v204_v7 = vld [vmem:[#allocation7 + $0x38] sm:$0xff] }
  0x33   :  { %v196_v8 = vld [vmem:[#allocation2] sm:$0xff]  ;;  %269 = vmatpush.msra.mxu0 %v197_v4  ;;  %289 = vmatpush.msra.mxu1 %v198_v5  ;;  %v212_v10 = vld [vmem:[#allocation7 + $0x78] sm:$0xff]  ;;  %v213_v13 = vld [vmem:[#allocation7 + $0x80] sm:$0xff] }
  0x34   :  { %389 = vmatpush.msra.mxu2 %v203_v6  ;;  %409 = vmatpush.msra.mxu3 %v204_v7  ;;  %v211_v9 = vld [vmem:[#allocation7 + $0x70] sm:$0xff]  ;;  %v200_v12 = vld [vmem:[#allocation7 + $0x18] sm:$0xff]  ;;  %v214_v14 = vld [vmem:[#allocation7 + $0x88] sm:$0xff] }
  0x35   :  { %2537 = vmatmul.msk.f32.vlgmr.msra.gmra.mxu0 %vm250_vm0, %v196_v8  ;;  %2538 = vmatmul.msk.f32.vlgmr.msra.gmra.mxu1 %vm250_vm0, %v196_v8  ;;  %v199_v11 = vld [vmem:[#allocation7 + $0x10] sm:$0xff]  ;;  %v201_v15 = vld [vmem:[#allocation7 + $0x20] sm:$0xff]  ;;  %v202_v16 = vld [vmem:[#allocation7 + $0x28] sm:$0xff] }
  0x36   :  { %2543 = vmatmul.msk.f32.vlgmr.msra.gmra.mxu2 %vm250_vm0, %v196_v8  ;;  %2544 = vmatmul.msk.f32.vlgmr.msra.gmra.mxu3 %vm250_vm0, %v196_v8  ;;  %v218_v17 = vld [vmem:[#allocation7 + $0xa8] sm:$0xff]  ;;  %v217_v18 = vld [vmem:[#allocation7 + $0xa0] sm:$0xff]  ;;  %v219_v21 = vld [vmem:[#allocation7 + $0xb0] sm:$0xff] }
  0x37   :  { %308 = vmatpush.msrb.mxu1 %v211_v9  ;;  %328 = vmatpush.msrb.mxu0 %v212_v10  ;;  %v206_v19 = vld [vmem:[#allocation7 + $0x48] sm:$0xff]  ;;  %v205_v20 = vld [vmem:[#allocation7 + $0x40] sm:$0xff]  ;;  %v220_v22 = vld [vmem:[#allocation7 + $0xb8] sm:$0xff] }
  0x38   :  { %v207_v23 = vld [vmem:[#allocation7 + $0x50] sm:$0xff]  ;;  %468 = vmatpush.msrb.mxu2 %v219_v21  ;;  %488 = vmatpush.msrb.mxu3 %v220_v22  ;;  %v208_v24 = vld [vmem:[#allocation7 + $0x58] sm:$0xff]  ;;  %v3012_v25 = vld [vmem:[#allocation8] sm:$0xff] }
  0x39   :  { %309 = vmatpush.msrb.mxu1 %v199_v11  ;;  %329 = vmatpush.msrb.mxu0 %v200_v12  ;;  %v226_v26 = vperm.slane %v3012_v25, 0  ;;  %v227_v27 = vperm.slane %v3012_v25, 1  ;;  %v232_v32 = vperm.slane %v3012_v25, 6  ;;  %v233_v33 = vperm.slane %v3012_v25, 7  ;;  %v3024_v34 = vld [vmem:[#allocation10] sm:$0xf] }
  0x3a   :  { %469 = vmatpush.msrb.mxu2 %v207_v23  ;;  %489 = vmatpush.msrb.mxu3 %v208_v24  ;;  %v228_v35 = vperm.slane %v3012_v25, 2  ;;  %v229_v36 = vperm.slane %v3012_v25, 3  ;;  %v732_v39 = vrot.slane %v3024_v34, 2  ;;  %v823_v46 = vrot.slane %v3024_v34, 3 }
  0x3b   :  { %348 = vmatpush.msra.mxu0 %v213_v13  ;;  %368 = vmatpush.msra.mxu1 %v214_v14  ;;  %v231_v4 = vperm.slane %v3012_v25, 5 }
  0x3c   :  { %v3044_v51 = vperm.slane %v732_v39, 0  ;;  %v3051_v59 = vperm.slane %v823_v46, 0 }
  0x3d   :  { %349 = vmatpush.msra.mxu0 %v201_v15  ;;  %369 = vmatpush.msra.mxu1 %v202_v16  ;;  %v230_v16 = vperm.slane %v3012_v25, 4 }
  0x3e   :  { %2539 = vmatmul.msk.f32.vlgmr.msrb.gmra.mxu1 %vm250_vm0, %v196_v8  ;;  %2540 = vmatmul.msk.f32.vlgmr.msrb.gmra.mxu0 %vm250_vm0, %v196_v8 }
  0x3f   :  { %448 = vmatpush.msrb.mxu1 %v218_v17  ;;  %428 = vmatpush.msrb.mxu0 %v217_v18 }
  0x40   :  { %2547 = vmatmul.msk.f32.vlgmr.msrb.gmra.mxu2 %vm250_vm0, %v196_v8  ;;  %2548 = vmatmul.msk.f32.vlgmr.msrb.gmra.mxu3 %vm250_vm0, %v196_v8 }
  0x41   :  { %449 = vmatpush.msrb.mxu1 %v206_v19  ;;  %429 = vmatpush.msrb.mxu0 %v205_v20 }
  0x46   :  { %2541 = vmatmul.msk.f32.vlgmr.msra.gmra.mxu0 %vm250_vm0, %v196_v8  ;;  %2542 = vmatmul.msk.f32.vlgmr.msra.gmra.mxu1 %vm250_vm0, %v196_v8 }
  0x4e   :  { %2545 = vmatmul.msk.f32.vlgmr.msrb.gmra.mxu0 %vm250_vm0, %v196_v8  ;;  %2546 = vmatmul.msk.f32.vlgmr.msrb.gmra.mxu1 %vm250_vm0, %v196_v8 }
  0xb2   :  { %v271_v28 = vpop.f32.mrf.mxu0  ;;  %v291_v29 = vpop.f32.mrf.mxu1 }
  0xb3   :  { %v3016_v30 = vadd.f32 %v271_v28, %v226_v26  ;;  %v3018_v31 = vadd.f32 %v291_v29, %v227_v27 }
  0xb5   :  { %944 = vmatpush.msra.mxu1 %v3018_v31  ;;  %924 = vmatpush.msra.mxu0 %v3016_v30 }
  0xb9   :  { %v391_v37 = vpop.f32.mrf.mxu2  ;;  %v411_v38 = vpop.f32.mrf.mxu3 }
  0xba   :  { %v3029_v40 = vadd.f32 %v391_v37, %v232_v32  ;;  %v3031_v41 = vadd.f32 %v411_v38, %v233_v33 }
  0xbb   :  { %v311_v42 = vpop.f32.mrf.mxu1  ;;  %v331_v43 = vpop.f32.mrf.mxu0 }
  0xbc   :  { %v3033_v44 = vadd.f32 %v311_v42, %v228_v35  ;;  %v3035_v45 = vadd.f32 %v331_v43, %v229_v36  ;;  %v684_v47 = vperm.slane %v3029_v40, 0  ;;  %v775_v48 = vperm.slane %v3031_v41, 0 }
  0xbd   :  { %v677_v49 = vrot.slane %v3029_v40, 1  ;;  %v768_v50 = vrot.slane %v3031_v41, 1  ;;  %v770_v52 = vrot.slane %v3031_v41, 3  ;;  %v678_v53 = vrot.slane %v3029_v40, 2 }
  0xbe   :  { %964 = vmatpush.msra.mxu2 %v3033_v44  ;;  %984 = vmatpush.msra.mxu3 %v3035_v45  ;;  %v680_v54 = vrot.slane %v3029_v40, 4  ;;  %v700_v55 = vadd.f32 %v684_v47, %v3033_v44  ;;  %v791_v56 = vadd.f32 %v775_v48, %v3035_v45  ;;  %v683_v62 = vrot.slane %v3029_v40, 7 }
  0xbf   :  { %v685_v57 = vperm.slane %v677_v49, 0  ;;  %v776_v58 = vperm.slane %v768_v50, 0  ;;  %v778_v60 = vperm.slane %v770_v52, 0  ;;  %v686_v61 = vperm.slane %v678_v53, 0 }
  0xc0   :  { %vm708_vm1 = vcmp.ge.f32.partialorder %v700_v55, 0.0  ;;  %v716_v63 = vmul.f32 0.2, %v700_v55  ;;  %vm799_vm2 = vcmp.ge.f32.partialorder %v791_v56, 0.0  ;;  %v807_v0 = vmul.f32 0.2, %v791_v56 }
  0xc1   :  { %v701_v1 = vadd.f32 %v685_v57, %v3033_v44  ;;  %v792_v2 = vadd.f32 %v776_v58, %v3035_v45  ;;  %v794_v3 = vadd.f32 %v778_v60, %v3035_v45  ;;  %v688_v7 = vperm.slane %v680_v54, 0 }
  0xc2   :  { %v724_v5 = vsel %vm708_vm1, %v700_v55, %v716_v63  ;;  %v815_v6 = vsel %vm799_vm2, %v791_v56, %v807_v0  ;;  %v702_v10 = vadd.f32 %v686_v61, %v3033_v44  ;;  %v691_v11 = vperm.slane %v683_v62, 0 }
  0xc3   :  { %v735_v8 = vmul.f32 %v3044_v51, %v724_v5  ;;  %v826_v9 = vmul.f32 %v3051_v59, %v815_v6  ;;  %vm709_vm3 = vcmp.ge.f32.partialorder %v701_v1, 0.0  ;;  %v717_v12 = vmul.f32 0.2, %v701_v1  ;;  %v371_v14 = vpop.f32.mrf.mxu1  ;;  %v351_v19 = vpop.f32.mrf.mxu0 }
  0xc4   :  { %vm800_vm4 = vcmp.ge.f32.partialorder %v792_v2, 0.0  ;;  %v808_v13 = vmul.f32 0.2, %v792_v2  ;;  %vm802_vm5 = vcmp.ge.f32.partialorder %v794_v3, 0.0  ;;  %v810_v15 = vmul.f32 0.2, %v794_v3 }
  0xc5   :  { %743 = vadd.xlane.f32.xlu2 %v735_v8  ;;  %834 = vadd.xlane.f32.xlu1 %v826_v9  ;;  %v725_v17 = vsel %vm709_vm3, %v701_v1, %v717_v12  ;;  %v704_v18 = vadd.f32 %v688_v7, %v3033_v44  ;;  %v718_v22 = vmul.f32 0.2, %v702_v10  ;;  %v707_v23 = vadd.f32 %v691_v11, %v3033_v44 }
  0xc6   :  { %v736_v20 = vmul.f32 %v3044_v51, %v725_v17  ;;  %v816_v21 = vsel %vm800_vm4, %v792_v2, %v808_v13  ;;  %v3065_v24 = vadd.f32 %v371_v14, %v231_v4  ;;  %v818_v26 = vsel %vm802_vm5, %v794_v3, %v810_v15 }
  0xc7   :  { %vm710_vm6 = vcmp.ge.f32.partialorder %v702_v10, 0.0  ;;  %v679_v27 = vrot.slane %v3029_v40, 3  ;;  %v682_v28 = vrot.slane %v3029_v40, 6  ;;  %v3069_v25 = vadd.f32 %v351_v19, %v230_v16 }
  0xc8   :  { %745 = vadd.xlane.f32.xlu0 %v736_v20  ;;  %v827_v29 = vmul.f32 %v3051_v59, %v816_v21  ;;  %vm712_vm7 = vcmp.ge.f32.partialorder %v704_v18, 0.0  ;;  %v720_v32 = vmul.f32 0.2, %v704_v18  ;;  %v829_v33 = vmul.f32 %v3051_v59, %v818_v26 }
  0xc9   :  { %v726_v35 = vsel %vm710_vm6, %v702_v10, %v718_v22  ;;  %v723_v36 = vmul.f32 0.2, %v707_v23  ;;  %v687_v37 = vperm.slane %v679_v27, 0  ;;  %vm715_vm8 = vcmp.ge.f32.partialorder %v707_v23, 0.0 }
  0xca   :  { %v690_v38 = vperm.slane %v682_v28, 0  ;;  %v593_v39 = vperm.slane %v3065_v24, 0  ;;  %v769_v42 = vrot.slane %v3031_v41, 2  ;;  %v737_v46 = vmul.f32 %v3044_v51, %v726_v35 }
  0xcb   :  { %v703_v43 = vadd.f32 %v687_v37, %v3033_v44  ;;  %v728_v47 = vsel %vm712_vm7, %v704_v18, %v720_v32  ;;  %v731_v48 = vsel %vm715_vm8, %v707_v23, %v723_v36  ;;  %v586_v49 = vrot.slane %v3065_v24, 1 }
  0xcc   :  { %v496_v50 = vrot.slane %v3069_v25, 2  ;;  %v706_v53 = vadd.f32 %v690_v38, %v3033_v44  ;;  %v609_v54 = vadd.f32 %v593_v39, %v3018_v31  ;;  %v777_v55 = vperm.slane %v769_v42, 0 }
  0xcd   :  { %836 = vadd.xlane.f32.xlu2 %v827_v29  ;;  %840 = vadd.xlane.f32.xlu1 %v829_v33  ;;  %v719_v52 = vmul.f32 0.2, %v703_v43  ;;  %vm711_vm9 = vcmp.ge.f32.partialorder %v703_v43, 0.0  ;;  %v739_v56 = vmul.f32 %v3044_v51, %v728_v47  ;;  %v641_v57 = vrot.slane %v3024_v34, 1 }
  0xce   :  { %v742_v58 = vmul.f32 %v3044_v51, %v731_v48  ;;  %v594_v60 = vperm.slane %v586_v49, 0  ;;  %v504_v61 = vperm.slane %v496_v50, 0  ;;  %v681_v62 = vrot.slane %v3029_v40, 5 }
  0xcf   :  { %v727_v63 = vsel %vm711_vm9, %v703_v43, %v719_v52  ;;  %v722_v0 = vmul.f32 0.2, %v706_v53  ;;  %v625_v1 = vmul.f32 0.2, %v609_v54  ;;  %v793_v2 = vadd.f32 %v777_v55, %v3035_v45 }
  0xd0   :  { %747 = vadd.xlane.f32.xlu0 %v737_v46  ;;  %vm714_vm10 = vcmp.ge.f32.partialorder %v706_v53, 0.0  ;;  %vm617_vm11 = vcmp.ge.f32.partialorder %v609_v54, 0.0  ;;  %v3086_v3 = vperm.slane %v641_v57, 0  ;;  %v588_v4 = vrot.slane %v3065_v24, 3 }
  0xd1   :  { %v738_v5 = vmul.f32 %v3044_v51, %v727_v63  ;;  %v610_v6 = vadd.f32 %v594_v60, %v3018_v31  ;;  %v689_v7 = vperm.slane %v681_v62, 0  ;;  %v587_v40 = vrot.slane %v3065_v24, 2 }
  0xd2   :  { %v730_v8 = vsel %vm714_vm10, %v706_v53, %v722_v0  ;;  %v633_v9 = vsel %vm617_vm11, %v609_v54, %v625_v1  ;;  %v809_v10 = vmul.f32 0.2, %v793_v2  ;;  %v520_v11 = vadd.f32 %v504_v61, %v3016_v30 }
  0xd3   :  { %vm801_vm12 = vcmp.ge.f32.partialorder %v793_v2, 0.0  ;;  %v771_v12 = vrot.slane %v3031_v41, 4  ;;  %v596_v13 = vperm.slane %v588_v4, 0  ;;  %v741_v14 = vmul.f32 %v3044_v51, %v730_v8 }
  0xd4   :  { %v644_v15 = vmul.f32 %v3086_v3, %v633_v9  ;;  %v595_v16 = vperm.slane %v587_v40, 0  ;;  %v817_v17 = vsel %vm801_vm12, %v793_v2, %v809_v10  ;;  %v626_v18 = vmul.f32 0.2, %v610_v6 }
  0xd5   :  { %751 = vadd.xlane.f32.xlu2 %v739_v56  ;;  %757 = vadd.xlane.f32.xlu1 %v742_v58  ;;  %v536_v19 = vmul.f32 0.2, %v520_v11  ;;  %v705_v20 = vadd.f32 %v689_v7, %v3033_v44  ;;  %vm618_vm13 = vcmp.ge.f32.partialorder %v610_v6, 0.0  ;;  %vm528_vm14 = vcmp.ge.f32.partialorder %v520_v11, 0.0 }
  0xd6   :  { %v779_v21 = vperm.slane %v771_v12, 0  ;;  %v498_v22 = vrot.slane %v3069_v25, 4  ;;  %v612_v23 = vadd.f32 %v596_v13, %v3018_v31  ;;  %v589_v26 = vrot.slane %v3065_v24, 4 }
  0xd7   :  { %v828_v27 = vmul.f32 %v3051_v59, %v817_v17  ;;  %v611_v28 = vadd.f32 %v595_v16, %v3018_v31  ;;  %v634_v29 = vsel %vm618_vm13, %v610_v6, %v626_v18  ;;  %v544_v32 = vsel %vm528_vm14, %v520_v11, %v536_v19 }
  0xd8   :  { %749 = vadd.xlane.f32.xlu0 %v738_v5  ;;  %v721_v33 = vmul.f32 0.2, %v705_v20  ;;  %v3103_v44 = vperm.slane %v3024_v34, 0  ;;  %vm713_vm15 = vcmp.ge.f32.partialorder %v705_v20, 0.0  ;;  %v795_v35 = vadd.f32 %v779_v21, %v3035_v45 }
  0xd9   :  { %v506_v36 = vperm.slane %v498_v22, 0  ;;  %v628_v37 = vmul.f32 0.2, %v612_v23  ;;  %v597_v38 = vperm.slane %v589_v26, 0  ;;  %v645_v39 = vmul.f32 %v3086_v3, %v634_v29 }
  0xda   :  { %v555_v42 = vmul.f32 %v3103_v44, %v544_v32  ;;  %vm620_vm0 = vcmp.ge.f32.partialorder %v612_v23, 0.0  ;;  %v627_v43 = vmul.f32 0.2, %v611_v28  ;;  %v729_v46 = vsel %vm713_vm15, %v705_v20, %v721_v33 }
  0xdb   :  { %vm619_vm1 = vcmp.ge.f32.partialorder %v611_v28, 0.0  ;;  %v811_v47 = vmul.f32 0.2, %v795_v35  ;;  %v522_v34 = vadd.f32 %v506_v36, %v3016_v30  ;;  %v502_v48 = vperm.slane %v3069_v25, 0 }
  0xdc   :  { %v636_v49 = vsel %vm620_vm0, %v612_v23, %v628_v37  ;;  %vm803_vm2 = vcmp.ge.f32.partialorder %v795_v35, 0.0  ;;  %v613_v50 = vadd.f32 %v597_v38, %v3018_v31  ;;  %v772_v52 = vrot.slane %v3031_v41, 5 }
  0xdd   :  { %755 = vadd.xlane.f32.xlu2 %v741_v14  ;;  %652 = vadd.xlane.f32.xlu1 %v644_v15  ;;  %v740_v53 = vmul.f32 %v3044_v51, %v729_v46  ;;  %v635_v54 = vsel %vm619_vm1, %v611_v28, %v627_v43  ;;  %v499_v55 = vrot.slane %v3069_v25, 5  ;;  %v590_v56 = vrot.slane %v3065_v24, 5 }
  0xde   :  { %v647_v57 = vmul.f32 %v3086_v3, %v636_v49  ;;  %v819_v58 = vsel %vm803_vm2, %v795_v35, %v811_v47  ;;  %v538_v60 = vmul.f32 0.2, %v522_v34  ;;  %v518_v61 = vadd.f32 %v502_v48, %v3016_v30 }
  0xdf   :  { %v646_v62 = vmul.f32 %v3086_v3, %v635_v54  ;;  %vm530_vm3 = vcmp.ge.f32.partialorder %v522_v34, 0.0  ;;  %v629_v63 = vmul.f32 0.2, %v613_v50  ;;  %v780_v0 = vperm.slane %v772_v52, 0 }
  0xe0   :  { %838 = vadd.xlane.f32.xlu0 %v828_v27  ;;  %vm621_vm4 = vcmp.ge.f32.partialorder %v613_v50, 0.0  ;;  %v495_v51 = vrot.slane %v3069_v25, 1  ;;  %v774_v1 = vrot.slane %v3031_v41, 7  ;;  %v773_v2 = vrot.slane %v3031_v41, 6 }
  0xe1   :  { %v830_v4 = vmul.f32 %v3051_v59, %v819_v58  ;;  %v507_v5 = vperm.slane %v499_v55, 0  ;;  %v598_v6 = vperm.slane %v590_v56, 0  ;;  %v546_v7 = vsel %vm530_vm3, %v522_v34, %v538_v60 }
  0xe2   :  { %v534_v40 = vmul.f32 0.2, %v518_v61  ;;  %v796_v8 = vadd.f32 %v780_v0, %v3035_v45  ;;  %v782_v9 = vperm.slane %v774_v1, 0  ;;  %v637_v10 = vsel %vm621_vm4, %v613_v50, %v629_v63 }
  0xe3   :  { %vm526_vm5 = vcmp.ge.f32.partialorder %v518_v61, 0.0  ;;  %v591_v11 = vrot.slane %v3065_v24, 6  ;;  %v781_v12 = vperm.slane %v773_v2, 0  ;;  %v503_v13 = vperm.slane %v495_v51, 0 }
  0xe4   :  { %v592_v14 = vrot.slane %v3065_v24, 7  ;;  %vm804_vm6 = vcmp.ge.f32.partialorder %v796_v8, 0.0  ;;  %v812_v41 = vmul.f32 0.2, %v796_v8  ;;  %v523_v15 = vadd.f32 %v507_v5, %v3016_v30 }
  0xe5   :  { %654 = vadd.xlane.f32.xlu1 %v645_v39  ;;  %565 = vadd.xlane.f32.xlu2 %v555_v42  ;;  %v614_v16 = vadd.f32 %v598_v6, %v3018_v31  ;;  %v798_v17 = vadd.f32 %v782_v9, %v3035_v45  ;;  %v797_v18 = vadd.f32 %v781_v12, %v3035_v45  ;;  %v599_v26 = vperm.slane %v591_v11, 0 }
  0xe6   :  { %v557_v19 = vmul.f32 %v3103_v44, %v546_v7  ;;  %v648_v20 = vmul.f32 %v3086_v3, %v637_v10  ;;  %v542_v21 = vsel %vm526_vm5, %v518_v61, %v534_v40  ;;  %v820_v22 = vsel %vm804_vm6, %v796_v8, %v812_v41 }
  0xe7   :  { %v3132_v23 = vmul.f32 %v3051_v59, %v820_v22  ;;  %vm806_vm7 = vcmp.ge.f32.partialorder %v798_v17, 0.0  ;;  %v814_v24 = vmul.f32 0.2, %v798_v17  ;;  %vm805_vm8 = vcmp.ge.f32.partialorder %v797_v18, 0.0 }
  0xe8   :  { %753 = vadd.xlane.f32.xlu0 %v740_v53  ;;  %v600_v27 = vperm.slane %v592_v14, 0  ;;  %v497_v28 = vrot.slane %v3069_v25, 3  ;;  %v813_v29 = vmul.f32 0.2, %v797_v18  ;;  %v539_v32 = vmul.f32 0.2, %v523_v15 }
  0xe9   :  { %v630_v45 = vmul.f32 0.2, %v614_v16  ;;  %v519_v33 = vadd.f32 %v503_v13, %v3016_v30  ;;  %v822_v35 = vsel %vm806_vm7, %v798_v17, %v814_v24  ;;  %vm531_vm9 = vcmp.ge.f32.partialorder %v523_v15, 0.0 }
  0xea   :  { %vm622_vm10 = vcmp.ge.f32.partialorder %v614_v16, 0.0  ;;  %v833_v36 = vmul.f32 %v3051_v59, %v822_v35  ;;  %v821_v37 = vsel %vm805_vm8, %v797_v18, %v813_v29  ;;  %v501_v38 = vrot.slane %v3069_v25, 7 }
  0xeb   :  { %v832_v39 = vmul.f32 %v3051_v59, %v821_v37  ;;  %v553_v42 = vmul.f32 %v3103_v44, %v542_v21  ;;  %v615_v43 = vadd.f32 %v599_v26, %v3018_v31  ;;  %v505_v46 = vperm.slane %v497_v28, 0 }
  0xec   :  { %v547_v47 = vsel %vm531_vm9, %v523_v15, %v539_v32  ;;  %v638_v34 = vsel %vm622_vm10, %v614_v16, %v630_v45  ;;  %v535_v48 = vmul.f32 0.2, %v519_v33  ;;  %v616_v49 = vadd.f32 %v600_v27, %v3018_v31 }
  0xed   :  { %658 = vadd.xlane.f32.xlu1 %v647_v57  ;;  %656 = vadd.xlane.f32.xlu2 %v646_v62  ;;  %vm527_vm11 = vcmp.ge.f32.partialorder %v519_v33, 0.0  ;;  %v509_v50 = vperm.slane %v501_v38, 0  ;;  %v558_v52 = vmul.f32 %v3103_v44, %v547_v47  ;;  %v649_v53 = vmul.f32 %v3086_v3, %v638_v34 }
  0xee   :  { %vm623_vm12 = vcmp.ge.f32.partialorder %v615_v43, 0.0  ;;  %v631_v54 = vmul.f32 0.2, %v615_v43  ;;  %v543_v59 = vsel %vm527_vm11, %v519_v33, %v535_v48  ;;  %v632_v55 = vmul.f32 0.2, %v616_v49 }
  0xef   :  { %v521_v56 = vadd.f32 %v505_v46, %v3016_v30  ;;  %v500_v57 = vrot.slane %v3069_v25, 6  ;;  %vm624_vm13 = vcmp.ge.f32.partialorder %v616_v49, 0.0  ;;  %v554_v31 = vmul.f32 %v3103_v44, %v543_v59 }
  0xf0   :  { %842 = vadd.xlane.f32.xlu0 %v830_v4  ;;  %v639_v58 = vsel %vm623_vm12, %v615_v43, %v631_v54  ;;  %v640_v60 = vsel %vm624_vm13, %v616_v49, %v632_v55  ;;  %v525_v62 = vadd.f32 %v509_v50, %v3016_v30  ;;  %v866_v35 = vlaneseq }
  0xf1   :  { %v537_v61 = vmul.f32 0.2, %v521_v56  ;;  %v508_v63 = vperm.slane %v500_v57, 0  ;;  %vm529_vm14 = vcmp.ge.f32.partialorder %v521_v56, 0.0  ;;  %v650_v0 = vmul.f32 %v3086_v3, %v639_v58 }
  0xf2   :  { %v651_v51 = vmul.f32 %v3086_v3, %v640_v60  ;;  %v541_v2 = vmul.f32 0.2, %v525_v62  ;;  %vm533_vm15 = vcmp.ge.f32.partialorder %v525_v62, 0.0  ;;  %vm876_vm1 = vcmask 1041409  }
  0xf3   :  { %v545_v1 = vsel %vm529_vm14, %v521_v56, %v537_v61  ;;  %v524_v25 = vadd.f32 %v508_v63, %v3016_v30  ;;  %vm878_vm2 = vcmask 1042434   ;;  %vm880_vm3 = vcmask 1043459  }
  0xf4   :  { %v556_v4 = vmul.f32 %v3103_v44, %v545_v1  ;;  %v549_v5 = vsel %vm533_vm15, %v525_v62, %v541_v2  ;;  %vm882_vm4 = vcmask 1044484   ;;  %vm884_vm5 = vcmask 1045509  }
  0xf5   :  { %569 = vadd.xlane.f32.xlu1 %v557_v19  ;;  %660 = vadd.xlane.f32.xlu2 %v648_v20  ;;  %v540_v6 = vmul.f32 0.2, %v524_v25  ;;  %vm532_vm0 = vcmp.ge.f32.partialorder %v524_v25, 0.0  ;;  %v560_v7 = vmul.f32 %v3103_v44, %v549_v5  ;;  %vm886_vm6 = vcmask 1046534  }
  0xf6   :  { %vm888_vm7 = vcmask 1047559   ;;  %vm892_vm9 = vcmask 64512  }
  0xf7   :  { %v548_v40 = vsel %vm532_vm0, %v524_v25, %v540_v6 }
  0xf8   :  { %561 = vadd.xlane.f32.xlu0 %v553_v42  ;;  %v559_v3 = vmul.f32 %v3103_v44, %v548_v40  ;;  %v3155_v42 = vand.u32 127, %v866_v35  ;;  %v1161_v35 = vld [vmem:[#allocation11 + $0x540] sm:$0xff] }
  0xfd   :  { %571 = vadd.xlane.f32.xlu1 %v558_v52  ;;  %662 = vadd.xlane.f32.xlu2 %v649_v53 }
 0x100   :  { %563 = vadd.xlane.f32.xlu0 %v554_v31 }
 0x105   :  { %664 = vadd.xlane.f32.xlu1 %v650_v0  ;;  %666 = vadd.xlane.f32.xlu2 %v651_v51 }
 0x108   :  { %567 = vadd.xlane.f32.xlu0 %v556_v4 }
 0x10d   :  { %575 = vadd.xlane.f32.xlu1 %v560_v7  ;;  %844 = vadd.xlane.f32.xlu2 %v3132_v23 }
 0x110   :  { %573 = vadd.xlane.f32.xlu0 %v559_v3 }
 0x115   :  { %848 = vadd.xlane.f32.xlu1 %v833_v36 }
 0x118   :  { %846 = vadd.xlane.f32.xlu0 %v832_v39 }
 0x138   :  { %v744_v30 = vpop.xlane.xlu2 %743  ;;  %v835_v8 = vpop.xlane.xlu1 %834 }
 0x13b   :  { %v746_v9 = vpop.xlane.xlu0 %745 }
 0x140   :  { %v837_v10 = vpop.xlane.xlu2 %836  ;;  %v841_v11 = vpop.xlane.xlu1 %840 }
 0x143   :  { %v748_v12 = vpop.xlane.xlu0 %747 }
 0x148   :  { %v752_v13 = vpop.xlane.xlu2 %751  ;;  %v758_v14 = vpop.xlane.xlu1 %757 }
 0x14b   :  { %v750_v41 = vpop.xlane.xlu0 %749 }
 0x150   :  { %v756_v15 = vpop.xlane.xlu2 %755  ;;  %v653_v16 = vpop.xlane.xlu1 %652 }
 0x153   :  { %v839_v17 = vpop.xlane.xlu0 %838 }
 0x158   :  { %v655_v18 = vpop.xlane.xlu1 %654  ;;  %v566_v19 = vpop.xlane.xlu2 %565 }
 0x15b   :  { %v754_v20 = vpop.xlane.xlu0 %753 }
 0x160   :  { %v659_v21 = vpop.xlane.xlu1 %658  ;;  %v657_v44 = vpop.xlane.xlu2 %656 }
 0x161   :  { %v670_v29 = vadd.f32 %v657_v44, %v566_v19 }
 0x163   :  { %v843_v22 = vpop.xlane.xlu0 %842  ;;  %v761_v36 = vadd.f32 %v748_v12, %v670_v29  ;;  %v1167_v29 = vld [vmem:[#allocation11 + $0x570] sm:$0xff] }
 0x165   :  { %v852_v43 = vadd.f32 %v839_v17, %v761_v36  ;;  %v1269_v36 = vld [vmem:[#allocation11 + $0x8a0] sm:$0xff] }
 0x167   :  { %v870_v50 = vperm.slane %v852_v43, %v3155_v42  ;;  %v1059_v43 = vld [vmem:[#allocation11 + $0x210] sm:$0xff] }
 0x168   :  { %v570_v23 = vpop.xlane.xlu1 %569  ;;  %v661_v24 = vpop.xlane.xlu2 %660 }
 0x169   :  { %v672_v55 = vadd.f32 %v661_v24, %v570_v23  ;;  %v1083_v23 = vld [vmem:[#allocation11 + $0x2d0] sm:$0xff] }
 0x16a   :  { %v1179_v24 = vld [vmem:[#allocation11 + $0x5d0] sm:$0xff]  ;;  %1392 = vmatpush.msrb.mxu0 %v1083_v23 }
 0x16b   :  { %v562_v26 = vpop.xlane.xlu0 %561  ;;  %v763_v60 = vadd.f32 %v752_v13, %v672_v55  ;;  %1412 = vmatpush.msrb.mxu1 %v1179_v24  ;;  %v1341_v55 = vld [vmem:[#allocation11 + $0xae0] sm:$0xff] }
 0x16c   :  { %v668_v27 = vadd.f32 %v653_v16, %v562_v26  ;;  %v1077_v26 = vld [vmem:[#allocation11 + $0x2a0] sm:$0xff] }
 0x16d   :  { %v854_v2 = vadd.f32 %v843_v22, %v763_v60  ;;  %1393 = vmatpush.msrb.mxu0 %v1077_v26  ;;  %v1035_v60 = vld [vmem:[#allocation11 + $0x150] sm:$0xff]  ;;  %v993_v24 = vld [vmem:[#allocation11] sm:$0xff] }
 0x16e   :  { %v759_v28 = vadd.f32 %v744_v30, %v668_v27  ;;  %v1173_v27 = vld [vmem:[#allocation11 + $0x5a0] sm:$0xff] }
 0x16f   :  { %v872_v7 = vperm.slane %v854_v2, %v3155_v42  ;;  %1413 = vmatpush.msrb.mxu1 %v1173_v27  ;;  %v1323_v2 = vld [vmem:[#allocation11 + $0xa50] sm:$0xff]  ;;  %v1089_v26 = vld [vmem:[#allocation11 + $0x300] sm:$0xff]  ;;  %v1084_v27 = vld [vmem:[#allocation11 + $0x2d8] sm:$0xff] }
 0x170   :  { %v572_v32 = vpop.xlane.xlu1 %571  ;;  %v850_v45 = vadd.f32 %v835_v8, %v759_v28  ;;  %v663_v33 = vpop.xlane.xlu2 %662  ;;  %v1071_v28 = vld [vmem:[#allocation11 + $0x270] sm:$0xff] }
 0x171   :  { %v673_v58 = vadd.f32 %v663_v33, %v572_v32  ;;  %v1275_v32 = vld [vmem:[#allocation11 + $0x8d0] sm:$0xff]  ;;  %1394 = vmatpush.msrb.mxu0 %v1071_v28  ;;  %1414 = vmatpush.msrb.mxu1 %v1167_v29  ;;  %v1180_v28 = vld [vmem:[#allocation11 + $0x5d8] sm:$0xff] }
 0x172   :  { %v868_v34 = vperm.slane %v850_v45, %v3155_v42  ;;  %v1065_v45 = vld [vmem:[#allocation11 + $0x240] sm:$0xff]  ;;  %v1371_v33 = vld [vmem:[#allocation11 + $0xbd0] sm:$0xff]  ;;  %1432 = vmatpush.msrb.mxu2 %v1275_v32 }
 0x173   :  { %v564_v37 = vpop.xlane.xlu0 %563  ;;  %v764_v1 = vadd.f32 %v754_v20, %v673_v58  ;;  %1452 = vmatpush.msrb.mxu3 %v1371_v33  ;;  %1395 = vmatpush.msrb.mxu0 %v1065_v45  ;;  %v1335_v58 = vld [vmem:[#allocation11 + $0xab0] sm:$0xff]  ;;  %v1174_v45 = vld [vmem:[#allocation11 + $0x5a8] sm:$0xff]  ;;  %v1185_v33 = vld [vmem:[#allocation11 + $0x600] sm:$0xff] }
 0x174   :  { %v669_v38 = vadd.f32 %v655_v18, %v564_v37  ;;  %v1365_v37 = vld [vmem:[#allocation11 + $0xba0] sm:$0xff]  ;;  %1433 = vmatpush.msrb.mxu2 %v1269_v36  ;;  %1415 = vmatpush.msrb.mxu1 %v1161_v35  ;;  %v1191_v29 = vld [vmem:[#allocation11 + $0x630] sm:$0xff]  ;;  %v1072_v36 = vld [vmem:[#allocation11 + $0x278] sm:$0xff] }
 0x175   :  { %1453 = vmatpush.msrb.mxu3 %v1365_v37  ;;  %1396 = vmatpush.msrb.mxu0 %v1059_v43  ;;  %v1287_v32 = vld [vmem:[#allocation11 + $0x930] sm:$0xff]  ;;  %v1281_v35 = vld [vmem:[#allocation11 + $0x900] sm:$0xff]  ;;  %v1168_v37 = vld [vmem:[#allocation11 + $0x578] sm:$0xff] }
 0x176   :  { %v760_v39 = vadd.f32 %v746_v9, %v669_v38  ;;  %v1263_v38 = vld [vmem:[#allocation11 + $0x870] sm:$0xff]  ;;  %v1066_v43 = vld [vmem:[#allocation11 + $0x248] sm:$0xff] }
 0x177   :  { %1434 = vmatpush.msrb.mxu2 %v1263_v38  ;;  %v1276_v38 = vld [vmem:[#allocation11 + $0x8d8] sm:$0xff] }
 0x178   :  { %v665_v46 = vpop.xlane.xlu1 %664  ;;  %v851_v47 = vadd.f32 %v837_v10, %v760_v39  ;;  %v667_v49 = vpop.xlane.xlu2 %666  ;;  %v3166_v10 = vld [vmem:[#allocation5] sm:$0xff]  ;;  %v1359_v39 = vld [vmem:[#allocation11 + $0xb70] sm:$0xff] }
 0x179   :  { %vm195_vm8 = vcmp.ne.s32.totalorder %v3166_v10, 0  ;;  %1454 = vmatpush.msrb.mxu3 %v1359_v39  ;;  %v1372_v39 = vld [vmem:[#allocation11 + $0xbd8] sm:$0xff] }
 0x17a   :  { %v869_v48 = vperm.slane %v851_v47, %v3155_v42  ;;  %v1257_v47 = vld [vmem:[#allocation11 + $0x840] sm:$0xff] }
 0x17b   :  { %v568_v52 = vpop.xlane.xlu0 %567  ;;  %1435 = vmatpush.msrb.mxu2 %v1257_v47  ;;  %v1270_v47 = vld [vmem:[#allocation11 + $0x8a8] sm:$0xff] }
 0x17c   :  { %v877_v53 = vsel %vm876_vm1, %v869_v48, %v868_v34  ;;  %v671_v54 = vadd.f32 %v659_v21, %v568_v52  ;;  %v1353_v34 = vld [vmem:[#allocation11 + $0xb40] sm:$0xff]  ;;  %v1347_v52 = vld [vmem:[#allocation11 + $0xb10] sm:$0xff] }
 0x17d   :  { %v879_v59 = vsel %vm878_vm2, %v870_v50, %v877_v53  ;;  %v1053_v48 = vld [vmem:[#allocation11 + $0x1e0] sm:$0xff]  ;;  %v1251_v50 = vld [vmem:[#allocation11 + $0x810] sm:$0xff]  ;;  %1455 = vmatpush.msrb.mxu3 %v1353_v34  ;;  %v1366_v34 = vld [vmem:[#allocation11 + $0xba8] sm:$0xff] }
 0x17e   :  { %v762_v56 = vadd.f32 %v750_v41, %v671_v54  ;;  %v1047_v53 = vld [vmem:[#allocation11 + $0x1b0] sm:$0xff]  ;;  %1397 = vmatpush.msrb.mxu0 %v1053_v48  ;;  %1436 = vmatpush.msrb.mxu2 %v1251_v50  ;;  %v1060_v48 = vld [vmem:[#allocation11 + $0x218] sm:$0xff] }
 0x17f   :  { %v1143_v54 = vld [vmem:[#allocation11 + $0x4b0] sm:$0xff]  ;;  %1456 = vmatpush.msrb.mxu3 %v1347_v52  ;;  %v1264_v50 = vld [vmem:[#allocation11 + $0x878] sm:$0xff] }
 0x180   :  { %v576_v57 = vpop.xlane.xlu1 %575  ;;  %v853_v31 = vadd.f32 %v841_v11, %v762_v56  ;;  %v845_v0 = vpop.xlane.xlu2 %844  ;;  %v1041_v56 = vld [vmem:[#allocation11 + $0x180] sm:$0xff]  ;;  %1398 = vmatpush.msrb.mxu0 %v1047_v53  ;;  %v1360_v52 = vld [vmem:[#allocation11 + $0xb78] sm:$0xff]  ;;  %v1054_v53 = vld [vmem:[#allocation11 + $0x1e8] sm:$0xff] }
 0x181   :  { %v675_v51 = vadd.f32 %v667_v49, %v576_v57  ;;  %v855_v4 = vadd.f32 %v845_v0, %v764_v1  ;;  %v1149_v49 = vld [vmem:[#allocation11 + $0x4e0] sm:$0xff]  ;;  %1457 = vmatpush.msrb.mxu3 %v1341_v55  ;;  %v1227_v1 = vld [vmem:[#allocation11 + $0x750] sm:$0xff]  ;;  %v1354_v55 = vld [vmem:[#allocation11 + $0xb48] sm:$0xff] }
 0x182   :  { %v871_v61 = vperm.slane %v853_v31, %v3155_v42  ;;  %v1137_v57 = vld [vmem:[#allocation11 + $0x480] sm:$0xff]  ;;  %v1239_v31 = vld [vmem:[#allocation11 + $0x7b0] sm:$0xff]  ;;  %1399 = vmatpush.msrb.mxu0 %v1041_v56  ;;  %v1048_v56 = vld [vmem:[#allocation11 + $0x1b8] sm:$0xff] }
 0x183   :  { %v574_v62 = vpop.xlane.xlu0 %573  ;;  %v766_v6 = vadd.f32 %v758_v14, %v675_v51  ;;  %v873_v3 = vperm.slane %v855_v4, %v3155_v42  ;;  %v1029_v0 = vld [vmem:[#allocation11 + $0x120] sm:$0xff]  ;;  %1458 = vmatpush.msrb.mxu3 %v1335_v58  ;;  %v1119_v4 = vld [vmem:[#allocation11 + $0x3f0] sm:$0xff]  ;;  %v1348_v58 = vld [vmem:[#allocation11 + $0xb18] sm:$0xff] }
 0x184   :  { %v881_v63 = vsel %vm880_vm3, %v871_v61, %v879_v59  ;;  %v674_v25 = vadd.f32 %v665_v46, %v574_v62  ;;  %v1155_v46 = vld [vmem:[#allocation11 + $0x510] sm:$0xff]  ;;  %v1245_v59 = vld [vmem:[#allocation11 + $0x7e0] sm:$0xff]  ;;  %1400 = vmatpush.msrb.mxu0 %v1035_v60  ;;  %v1042_v60 = vld [vmem:[#allocation11 + $0x188] sm:$0xff] }
 0x185   :  { %v883_v11 = vsel %vm882_vm4, %v872_v7, %v881_v63  ;;  %1416 = vmatpush.msrb.mxu1 %v1155_v46  ;;  %v1131_v61 = vld [vmem:[#allocation11 + $0x450] sm:$0xff]  ;;  %1437 = vmatpush.msrb.mxu2 %v1245_v59  ;;  %v1233_v62 = vld [vmem:[#allocation11 + $0x780] sm:$0xff]  ;;  %v1162_v46 = vld [vmem:[#allocation11 + $0x548] sm:$0xff] }
 0x186   :  { %v765_v40 = vadd.f32 %v756_v15, %v674_v25  ;;  %v885_v14 = vsel %vm884_vm5, %v873_v3, %v883_v11  ;;  %v1329_v63 = vld [vmem:[#allocation11 + $0xa80] sm:$0xff]  ;;  %v1023_v25 = vld [vmem:[#allocation11 + $0xf0] sm:$0xff]  ;;  %1401 = vmatpush.msrb.mxu0 %v1029_v0  ;;  %v1258_v59 = vld [vmem:[#allocation11 + $0x848] sm:$0xff] }
 0x187   :  { %1417 = vmatpush.msrb.mxu1 %v1149_v49  ;;  %v1125_v51 = vld [vmem:[#allocation11 + $0x420] sm:$0xff]  ;;  %1438 = vmatpush.msrb.mxu2 %v1239_v31  ;;  %v1011_v11 = vld [vmem:[#allocation11 + $0x90] sm:$0xff]  ;;  %v1156_v49 = vld [vmem:[#allocation11 + $0x518] sm:$0xff] }
 0x188   :  { %v849_v5 = vpop.xlane.xlu1 %848  ;;  %1459 = vmatpush.msrb.mxu3 %v1329_v63  ;;  %v1317_v7 = vld [vmem:[#allocation11 + $0xa20] sm:$0xff]  ;;  %1402 = vmatpush.msrb.mxu0 %v1023_v25  ;;  %v1252_v31 = vld [vmem:[#allocation11 + $0x818] sm:$0xff]  ;;  %v1342_v63 = vld [vmem:[#allocation11 + $0xae8] sm:$0xff] }
 0x189   :  { %v857_v30 = vadd.f32 %v849_v5, %v766_v6  ;;  %1418 = vmatpush.msrb.mxu1 %v1143_v54  ;;  %1439 = vmatpush.msrb.mxu2 %v1233_v62  ;;  %v1221_v6 = vld [vmem:[#allocation11 + $0x720] sm:$0xff]  ;;  %v1150_v54 = vld [vmem:[#allocation11 + $0x4e8] sm:$0xff]  ;;  %v1036_v0 = vld [vmem:[#allocation11 + $0x158] sm:$0xff] }
 0x18a   :  { %v1017_v3 = vld [vmem:[#allocation11 + $0xc0] sm:$0xff]  ;;  %1460 = vmatpush.msrb.mxu3 %v1323_v2  ;;  %v1246_v62 = vld [vmem:[#allocation11 + $0x7e8] sm:$0xff]  ;;  %v1336_v2 = vld [vmem:[#allocation11 + $0xab8] sm:$0xff] }
 0x18b   :  { %v847_v8 = vpop.xlane.xlu0 %846  ;;  %v875_v13 = vperm.slane %v857_v30, %v3155_v42  ;;  %1419 = vmatpush.msrb.mxu1 %v1137_v57  ;;  %v1113_v30 = vld [vmem:[#allocation11 + $0x3c0] sm:$0xff]  ;;  %1440 = vmatpush.msrb.mxu2 %v1227_v1  ;;  %v1144_v57 = vld [vmem:[#allocation11 + $0x4b8] sm:$0xff]  ;;  %v1030_v25 = vld [vmem:[#allocation11 + $0x128] sm:$0xff] }
 0x18c   :  { %v856_v9 = vadd.f32 %v847_v8, %v765_v40  ;;  %v1215_v8 = vld [vmem:[#allocation11 + $0x6f0] sm:$0xff]  ;;  %1461 = vmatpush.msrb.mxu3 %v1317_v7  ;;  %1403 = vmatpush.msrb.mxu0 %v1017_v3  ;;  %v1240_v1 = vld [vmem:[#allocation11 + $0x7b8] sm:$0xff] }
 0x18d   :  { %1420 = vmatpush.msrb.mxu1 %v1131_v61  ;;  %1441 = vmatpush.msrb.mxu2 %v1221_v6  ;;  %v1138_v61 = vld [vmem:[#allocation11 + $0x488] sm:$0xff]  ;;  %v1024_v7 = vld [vmem:[#allocation11 + $0xf8] sm:$0xff] }
 0x18e   :  { %v874_v12 = vperm.slane %v856_v9, %v3155_v42  ;;  %v1311_v9 = vld [vmem:[#allocation11 + $0x9f0] sm:$0xff]  ;;  %1404 = vmatpush.msrb.mxu0 %v1011_v11  ;;  %v1330_v6 = vld [vmem:[#allocation11 + $0xa88] sm:$0xff]  ;;  %v1228_v3 = vld [vmem:[#allocation11 + $0x758] sm:$0xff] }
 0x18f   :  { %1421 = vmatpush.msrb.mxu1 %v1125_v51  ;;  %1442 = vmatpush.msrb.mxu2 %v1215_v8  ;;  %v1132_v51 = vld [vmem:[#allocation11 + $0x458] sm:$0xff]  ;;  %v1018_v8 = vld [vmem:[#allocation11 + $0xc8] sm:$0xff] }
 0x190   :  { %v887_v41 = vsel %vm886_vm6, %v874_v12, %v885_v14  ;;  %v1107_v12 = vld [vmem:[#allocation11 + $0x390] sm:$0xff]  ;;  %v1305_v14 = vld [vmem:[#allocation11 + $0x9c0] sm:$0xff]  ;;  %1462 = vmatpush.msrb.mxu3 %v1311_v9  ;;  %v1114_v9 = vld [vmem:[#allocation11 + $0x3c8] sm:$0xff] }
 0x191   :  { %v889_v15 = vsel %vm888_vm7, %v875_v13, %v887_v41  ;;  %1422 = vmatpush.msrb.mxu1 %v1119_v4  ;;  %v1209_v13 = vld [vmem:[#allocation11 + $0x6c0] sm:$0xff]  ;;  %v1126_v4 = vld [vmem:[#allocation11 + $0x428] sm:$0xff] }
 0x192   :  { %v891_v16 = vsel %vm195_vm8, %v889_v15, -1e+30  ;;  %v1005_v41 = vld [vmem:[#allocation11 + $0x60] sm:$0xff]  ;;  %1443 = vmatpush.msrb.mxu2 %v1209_v13  ;;  %1463 = vmatpush.msrb.mxu3 %v1305_v14  ;;  %v1222_v11 = vld [vmem:[#allocation11 + $0x728] sm:$0xff]  ;;  %v1012_v13 = vld [vmem:[#allocation11 + $0x98] sm:$0xff] }
 0x193   :  { %v893_v17 = vsel %vm892_vm9, %v891_v16, -inf  ;;  %1423 = vmatpush.msrb.mxu1 %v1113_v30  ;;  %v1101_v15 = vld [vmem:[#allocation11 + $0x360] sm:$0xff]  ;;  %1405 = vmatpush.msrb.mxu0 %v1005_v41  ;;  %v1324_v30 = vld [vmem:[#allocation11 + $0xa58] sm:$0xff]  ;;  %v1006_v41 = vld [vmem:[#allocation11 + $0x68] sm:$0xff] }
 0x194   :  { %894 = vmax.xlane.f32.xlu2 %v893_v17  ;;  %v1299_v17 = vld [vmem:[#allocation11 + $0x990] sm:$0xff]  ;;  %v1108_v14 = vld [vmem:[#allocation11 + $0x398] sm:$0xff] }
 0x195   :  { %1424 = vmatpush.msrb.mxu1 %v1107_v12  ;;  %1464 = vmatpush.msrb.mxu3 %v1299_v17  ;;  %v1318_v12 = vld [vmem:[#allocation11 + $0xa28] sm:$0xff]  ;;  %v1312_v17 = vld [vmem:[#allocation11 + $0x9f8] sm:$0xff] }
 0x197   :  { %1425 = vmatpush.msrb.mxu1 %v1101_v15  ;;  %v1102_v15 = vld [vmem:[#allocation11 + $0x368] sm:$0xff] }
 0x207   :  { %v895_v18 = vpop.xlane.xlu2 %894 }
 0x208   :  { %v896_v19 = vsub.f32 %v891_v16, %v895_v18  ;;  %v1203_v16 = vld [vmem:[#allocation11 + $0x690] sm:$0xff] }
 0x209   :  { %v999_v18 = vld [vmem:[#allocation11 + $0x30] sm:$0xff]  ;;  %1444 = vmatpush.msrb.mxu2 %v1203_v16  ;;  %v1216_v16 = vld [vmem:[#allocation11 + $0x6f8] sm:$0xff] }
 0x20a   :  { %v897_v20 = vmul.f32 1.442695, %v896_v19  ;;  %v1095_v19 = vld [vmem:[#allocation11 + $0x330] sm:$0xff]  ;;  %1406 = vmatpush.msrb.mxu0 %v999_v18  ;;  %v1000_v18 = vld [vmem:[#allocation11 + $0x38] sm:$0xff] }
 0x20b   :  { %1426 = vmatpush.msrb.mxu1 %v1095_v19  ;;  %v1096_v19 = vld [vmem:[#allocation11 + $0x338] sm:$0xff] }
 0x20c   :  { %2575 = vpow2.f32 %v897_v20  ;;  %v1197_v20 = vld [vmem:[#allocation11 + $0x660] sm:$0xff]  ;;  %1407 = vmatpush.msrb.mxu0 %v993_v24  ;;  %v1204_v24 = vld [vmem:[#allocation11 + $0x698] sm:$0xff] }
 0x20d   :  { %1445 = vmatpush.msrb.mxu2 %v1197_v20  ;;  %1427 = vmatpush.msrb.mxu1 %v1089_v26  ;;  %v1210_v20 = vld [vmem:[#allocation11 + $0x6c8] sm:$0xff]  ;;  %v1300_v26 = vld [vmem:[#allocation11 + $0x998] sm:$0xff] }
 0x20f   :  { %1446 = vmatpush.msrb.mxu2 %v1191_v29  ;;  %v1192_v29 = vld [vmem:[#allocation11 + $0x638] sm:$0xff] }
 0x211   :  { %1447 = vmatpush.msrb.mxu2 %v1185_v33  ;;  %v222_v33 = vld [vmem:[#allocation8 + $0x8] sm:$0xf] }
 0x212   :  { %v2576_v21 = vpop.eup %2575 }
 0x213   :  { %v3180_v44 = vsel %vm195_vm8, %v2576_v21, 0.0  ;;  %v1293_v21 = vld [vmem:[#allocation11 + $0x960] sm:$0xff] }
 0x214   :  { %v900_v22 = vsel %vm892_vm9, %v3180_v44, 0.0  ;;  %1465 = vmatpush.msrb.mxu3 %v1293_v21  ;;  %v1306_v21 = vld [vmem:[#allocation11 + $0x9c8] sm:$0xff] }
 0x215   :  { %901 = vadd.xlane.f32.xlu0 %v900_v22 }
 0x216   :  { %1466 = vmatpush.msrb.mxu3 %v1287_v32  ;;  %v1288_v32 = vld [vmem:[#allocation11 + $0x938] sm:$0xff] }
 0x218   :  { %1467 = vmatpush.msrb.mxu3 %v1281_v35  ;;  %v431_v35 = vpop.f32.mrf.mxu0 }
 0x288   :  { %v902_v5 = vpop.xlane.xlu0 %901 }
 0x289   :  { %v903_v40 = vmax.f32 %v902_v5, 1e-30  ;;  %v1234_v5 = vld [vmem:[#allocation11 + $0x788] sm:$0xff] }
 0x28b   :  { %2577 = vrcp.f32 %v903_v40  ;;  %v1120_v40 = vld [vmem:[#allocation11 + $0x3f8] sm:$0xff] }
 0x291   :  { %v2578_v22 = vpop.eup %2577 }
 0x292   :  { %v905_v23 = vmul.f32 %v2578_v22, %v3180_v44  ;;  %v1078_v44 = vld [vmem:[#allocation11 + $0x2a8] sm:$0xff] }
 0x293   :  { %v994_v22 = vld [vmem:[#allocation11 + $0x8] sm:$0xff] }
 0x294   :  { %2549 = vmatmul.msk.f32.vlgmr.msra.gmra.mxu0 %vm892_vm9, %v905_v23  ;;  %2550 = vmatmul.msk.f32.vlgmr.msra.gmra.mxu1 %vm892_vm9, %v905_v23 }
 0x295   :  { %2551 = vmatmul.msk.f32.vlgmr.msra.gmra.mxu2 %vm892_vm9, %v905_v23  ;;  %2552 = vmatmul.msk.f32.vlgmr.msra.gmra.mxu3 %vm892_vm9, %v905_v23  ;;  %v1090_v23 = vld [vmem:[#allocation11 + $0x308] sm:$0xff] }
 0x296   :  { %1472 = vmatpush.msra.mxu0 %v1084_v27  ;;  %1492 = vmatpush.msra.mxu1 %v1180_v28  ;;  %v1198_v27 = vld [vmem:[#allocation11 + $0x668] sm:$0xff] }
 0x297   :  { %1512 = vmatpush.msra.mxu2 %v1276_v38  ;;  %1532 = vmatpush.msra.mxu3 %v1372_v39  ;;  %v1294_v28 = vld [vmem:[#allocation11 + $0x968] sm:$0xff]  ;;  %v235_v38 = vperm.slane %v222_v33, 1 }
 0x298   :  { %1473 = vmatpush.msra.mxu0 %v1078_v44  ;;  %1493 = vmatpush.msra.mxu1 %v1174_v45  ;;  %v1186_v44 = vld [vmem:[#allocation11 + $0x608] sm:$0xff] }
 0x299   :  { %1513 = vmatpush.msra.mxu2 %v1270_v47  ;;  %1533 = vmatpush.msra.mxu3 %v1366_v34  ;;  %v1282_v45 = vld [vmem:[#allocation11 + $0x908] sm:$0xff]  ;;  %v491_v47 = vpop.f32.mrf.mxu3 }
 0x29a   :  { %1474 = vmatpush.msra.mxu0 %v1072_v36  ;;  %1494 = vmatpush.msra.mxu1 %v1168_v37  ;;  %v451_v36 = vpop.f32.mrf.mxu1  ;;  %v234_v37 = vperm.slane %v222_v33, 0 }
 0x29b   :  { %1514 = vmatpush.msra.mxu2 %v1264_v50  ;;  %1534 = vmatpush.msra.mxu3 %v1360_v52  ;;  %v236_v52 = vperm.slane %v222_v33, 2 }
 0x29c   :  { %1475 = vmatpush.msra.mxu0 %v1066_v43  ;;  %1495 = vmatpush.msra.mxu1 %v1162_v46  ;;  %v432_v39 = vadd.f32 %v431_v35, %v234_v37  ;;  %v452_v43 = vadd.f32 %v451_v36, %v235_v38  ;;  %v471_v46 = vpop.f32.mrf.mxu2  ;;  %v1019_v35 = vld [vmem:[#allocation11 + $0xd0] sm:$0xff]  ;;  %v1229_v37 = vld [vmem:[#allocation11 + $0x760] sm:$0xff] }
 0x29d   :  { %1515 = vmatpush.msra.mxu2 %v1258_v59  ;;  %1535 = vmatpush.msra.mxu3 %v1354_v55  ;;  %v1085_v55 = vld [vmem:[#allocation11 + $0x2e0] sm:$0xff]  ;;  %v1115_v36 = vld [vmem:[#allocation11 + $0x3d0] sm:$0xff] }
 0x29e   :  { %1476 = vmatpush.msra.mxu0 %v1060_v48  ;;  %1496 = vmatpush.msra.mxu1 %v1156_v49  ;;  %v1325_v38 = vld [vmem:[#allocation11 + $0xa60] sm:$0xff] }
 0x29f   :  { %1516 = vmatpush.msra.mxu2 %v1252_v31  ;;  %1536 = vmatpush.msra.mxu3 %v1348_v58  ;;  %v1175_v31 = vld [vmem:[#allocation11 + $0x5b0] sm:$0xff]  ;;  %v472_v58 = vadd.f32 %v471_v46, %v236_v52  ;;  %v1001_v52 = vld [vmem:[#allocation11 + $0x40] sm:$0xff] }
 0x2a0   :  { %1477 = vmatpush.msra.mxu0 %v1054_v53  ;;  %1497 = vmatpush.msra.mxu1 %v1150_v54  ;;  %v237_v53 = vperm.slane %v222_v33, 3  ;;  %v1331_v33 = vld [vmem:[#allocation11 + $0xa90] sm:$0xff] }
 0x2a1   :  { %1517 = vmatpush.msra.mxu2 %v1246_v62  ;;  %1537 = vmatpush.msra.mxu3 %v1342_v63  ;;  %v1073_v63 = vld [vmem:[#allocation11 + $0x280] sm:$0xff]  ;;  %v1223_v46 = vld [vmem:[#allocation11 + $0x730] sm:$0xff] }
 0x2a2   :  { %1478 = vmatpush.msra.mxu0 %v1048_v56  ;;  %1498 = vmatpush.msra.mxu1 %v1144_v57  ;;  %v1181_v56 = vld [vmem:[#allocation11 + $0x5e0] sm:$0xff]  ;;  %v1079_v57 = vld [vmem:[#allocation11 + $0x2b0] sm:$0xff] }
 0x2a3   :  { %1518 = vmatpush.msra.mxu2 %v1240_v1  ;;  %1538 = vmatpush.msra.mxu3 %v1336_v2 }
 0x2a4   :  { %1479 = vmatpush.msra.mxu0 %v1042_v60  ;;  %1499 = vmatpush.msra.mxu1 %v1138_v61  ;;  %v492_v60 = vadd.f32 %v491_v47, %v237_v53  ;;  %v1319_v47 = vld [vmem:[#allocation11 + $0xa30] sm:$0xff]  ;;  %v1097_v53 = vld [vmem:[#allocation11 + $0x340] sm:$0xff] }
 0x2a5   :  { %1519 = vmatpush.msra.mxu2 %v1234_v5  ;;  %1539 = vmatpush.msra.mxu3 %v1330_v6  ;;  %v1163_v5 = vld [vmem:[#allocation11 + $0x550] sm:$0xff]  ;;  %v1277_v6 = vld [vmem:[#allocation11 + $0x8e0] sm:$0xff] }
 0x2a6   :  { %1480 = vmatpush.msra.mxu0 %v1036_v0  ;;  %1500 = vmatpush.msra.mxu1 %v1132_v51  ;;  %v1169_v0 = vld [vmem:[#allocation11 + $0x580] sm:$0xff] }
 0x2a7   :  { %1520 = vmatpush.msra.mxu2 %v1228_v3  ;;  %1540 = vmatpush.msra.mxu3 %v1324_v30  ;;  %v1157_v3 = vld [vmem:[#allocation11 + $0x520] sm:$0xff]  ;;  %v1271_v30 = vld [vmem:[#allocation11 + $0x8b0] sm:$0xff] }
 0x2a8   :  { %1481 = vmatpush.msra.mxu0 %v1030_v25  ;;  %1501 = vmatpush.msra.mxu1 %v1126_v4  ;;  %v1067_v4 = vld [vmem:[#allocation11 + $0x250] sm:$0xff] }
 0x2a9   :  { %1521 = vmatpush.msra.mxu2 %v1222_v11  ;;  %1541 = vmatpush.msra.mxu3 %v1318_v12  ;;  %v1151_v11 = vld [vmem:[#allocation11 + $0x4f0] sm:$0xff]  ;;  %v1265_v12 = vld [vmem:[#allocation11 + $0x880] sm:$0xff] }
 0x2aa   :  { %1482 = vmatpush.msra.mxu0 %v1024_v7  ;;  %1502 = vmatpush.msra.mxu1 %v1120_v40  ;;  %v1373_v7 = vld [vmem:[#allocation11 + $0xbe0] sm:$0xff] }
 0x2ab   :  { %1522 = vmatpush.msra.mxu2 %v1216_v16  ;;  %1542 = vmatpush.msra.mxu3 %v1312_v17  ;;  %v1061_v40 = vld [vmem:[#allocation11 + $0x220] sm:$0xff]  ;;  %v1355_v16 = vld [vmem:[#allocation11 + $0xb50] sm:$0xff] }
 0x2ac   :  { %1483 = vmatpush.msra.mxu0 %v1018_v8  ;;  %1503 = vmatpush.msra.mxu1 %v1114_v9  ;;  %v1367_v8 = vld [vmem:[#allocation11 + $0xbb0] sm:$0xff] }
 0x2ad   :  { %1523 = vmatpush.msra.mxu2 %v1210_v20  ;;  %1543 = vmatpush.msra.mxu3 %v1306_v21  ;;  %v1055_v9 = vld [vmem:[#allocation11 + $0x1f0] sm:$0xff]  ;;  %v1349_v20 = vld [vmem:[#allocation11 + $0xb20] sm:$0xff] }
 0x2ae   :  { %1484 = vmatpush.msra.mxu0 %v1012_v13  ;;  %1504 = vmatpush.msra.mxu1 %v1108_v14  ;;  %v1361_v13 = vld [vmem:[#allocation11 + $0xb80] sm:$0xff]  ;;  %v1043_v17 = vld [vmem:[#allocation11 + $0x190] sm:$0xff] }
 0x2af   :  { %1524 = vmatpush.msra.mxu2 %v1204_v24  ;;  %1544 = vmatpush.msra.mxu3 %v1300_v26  ;;  %v1049_v14 = vld [vmem:[#allocation11 + $0x1c0] sm:$0xff]  ;;  %v1343_v24 = vld [vmem:[#allocation11 + $0xaf0] sm:$0xff] }
 0x2b0   :  { %1485 = vmatpush.msra.mxu0 %v1006_v41  ;;  %1505 = vmatpush.msra.mxu1 %v1102_v15  ;;  %v1145_v41 = vld [vmem:[#allocation11 + $0x4c0] sm:$0xff]  ;;  %v1259_v15 = vld [vmem:[#allocation11 + $0x850] sm:$0xff] }
 0x2b1   :  { %1525 = vmatpush.msra.mxu2 %v1198_v27  ;;  %1545 = vmatpush.msra.mxu3 %v1294_v28  ;;  %v1037_v21 = vld [vmem:[#allocation11 + $0x160] sm:$0xff]  ;;  %v1031_v26 = vld [vmem:[#allocation11 + $0x130] sm:$0xff] }
 0x2b2   :  { %1486 = vmatpush.msra.mxu0 %v1000_v18  ;;  %1506 = vmatpush.msra.mxu1 %v1096_v19  ;;  %v1139_v18 = vld [vmem:[#allocation11 + $0x490] sm:$0xff]  ;;  %v1253_v19 = vld [vmem:[#allocation11 + $0x820] sm:$0xff] }
 0x2b3   :  { %1526 = vmatpush.msra.mxu2 %v1192_v29  ;;  %1546 = vmatpush.msra.mxu3 %v1288_v32  ;;  %v1127_v27 = vld [vmem:[#allocation11 + $0x430] sm:$0xff]  ;;  %v1241_v28 = vld [vmem:[#allocation11 + $0x7c0] sm:$0xff] }
 0x2b4   :  { %1487 = vmatpush.msra.mxu0 %v994_v22  ;;  %1507 = vmatpush.msra.mxu1 %v1090_v23  ;;  %v1133_v22 = vld [vmem:[#allocation11 + $0x460] sm:$0xff]  ;;  %v1247_v23 = vld [vmem:[#allocation11 + $0x7f0] sm:$0xff] }
 0x2b5   :  { %1527 = vmatpush.msra.mxu2 %v1186_v44  ;;  %1547 = vmatpush.msra.mxu3 %v1282_v45  ;;  %v1337_v29 = vld [vmem:[#allocation11 + $0xac0] sm:$0xff]  ;;  %v1235_v45 = vld [vmem:[#allocation11 + $0x790] sm:$0xff] }
 0x2b6   :  { %v1025_v32 = vld [vmem:[#allocation11 + $0x100] sm:$0xff] }
 0x2b7   :  { %v1121_v44 = vld [vmem:[#allocation11 + $0x400] sm:$0xff] }
 0x311   :  { %v926_v34 = vpop.f32.mrf.mxu0  ;;  %v946_v48 = vpop.f32.mrf.mxu1 }
 0x312   :  { %v927_v49 = vadd.f32 %v926_v34, %v432_v39  ;;  %v947_v50 = vadd.f32 %v946_v48, %v452_v43  ;;  %v1013_v39 = vld [vmem:[#allocation11 + $0xa0] sm:$0xff]  ;;  %v1007_v34 = vld [vmem:[#allocation11 + $0x70] sm:$0xff] }
 0x313   :  { %v1109_v43 = vld [vmem:[#allocation11 + $0x3a0] sm:$0xff]  ;;  %v1103_v48 = vld [vmem:[#allocation11 + $0x370] sm:$0xff] }
 0x314   :  { %v3189_v54 = vmax.f32 %v927_v49, 0.0  ;;  %v3191_v59 = vmax.f32 %v947_v50, 0.0  ;;  %v1217_v49 = vld [vmem:[#allocation11 + $0x700] sm:$0xff] }
 0x315   :  { %v1313_v50 = vld [vmem:[#allocation11 + $0xa00] sm:$0xff] }
 0x316   :  { %1408 = vmatmul.f32.vlgmr.msrb.gmra.mxu0 %v3189_v54  ;;  %1428 = vmatmul.f32.vlgmr.msrb.gmra.mxu1 %v3191_v59 }
 0x317   :  { %1552 = vmatpush.msrb.mxu0 %v1085_v55  ;;  %1572 = vmatpush.msrb.mxu1 %v1181_v56  ;;  %v1211_v55 = vld [vmem:[#allocation11 + $0x6d0] sm:$0xff] }
 0x318   :  { %v966_v61 = vpop.f32.mrf.mxu2  ;;  %v986_v62 = vpop.f32.mrf.mxu3  ;;  %v1307_v56 = vld [vmem:[#allocation11 + $0x9d0] sm:$0xff] }
 0x319   :  { %v967_v51 = vadd.f32 %v966_v61, %v472_v58  ;;  %v987_v1 = vadd.f32 %v986_v62, %v492_v60  ;;  %1553 = vmatpush.msrb.mxu0 %v1079_v57  ;;  %1573 = vmatpush.msrb.mxu1 %v1175_v31  ;;  %v995_v57 = vld [vmem:[#allocation11 + $0x10] sm:$0xff]  ;;  %v1205_v58 = vld [vmem:[#allocation11 + $0x6a0] sm:$0xff]  ;;  %v1086_v61 = vld [vmem:[#allocation11 + $0x2e8] sm:$0xff] }
 0x31a   :  { %v1091_v31 = vld [vmem:[#allocation11 + $0x310] sm:$0xff]  ;;  %v1301_v60 = vld [vmem:[#allocation11 + $0x9a0] sm:$0xff]  ;;  %v1182_v62 = vld [vmem:[#allocation11 + $0x5e8] sm:$0xff] }
 0x31b   :  { %v3195_v2 = vmax.f32 %v967_v51, 0.0  ;;  %v3197_v25 = vmax.f32 %v987_v1, 0.0  ;;  %1554 = vmatpush.msrb.mxu0 %v1073_v63  ;;  %1574 = vmatpush.msrb.mxu1 %v1169_v0  ;;  %v1199_v63 = vld [vmem:[#allocation11 + $0x670] sm:$0xff]  ;;  %v1080_v51 = vld [vmem:[#allocation11 + $0x2b8] sm:$0xff] }
 0x31c   :  { %v1295_v0 = vld [vmem:[#allocation11 + $0x970] sm:$0xff]  ;;  %v1176_v1 = vld [vmem:[#allocation11 + $0x5b8] sm:$0xff] }
 0x31d   :  { %1448 = vmatmul.f32.vlgmr.msrb.gmra.mxu2 %v3195_v2  ;;  %1468 = vmatmul.f32.vlgmr.msrb.gmra.mxu3 %v3197_v25 }
 0x31e   :  { %1555 = vmatpush.msrb.mxu0 %v1067_v4  ;;  %1575 = vmatpush.msrb.mxu1 %v1163_v5  ;;  %v1193_v4 = vld [vmem:[#allocation11 + $0x640] sm:$0xff] }
 0x31f   :  { %1592 = vmatpush.msrb.mxu2 %v1277_v6  ;;  %1612 = vmatpush.msrb.mxu3 %v1373_v7  ;;  %v1289_v5 = vld [vmem:[#allocation11 + $0x940] sm:$0xff]  ;;  %v1074_v6 = vld [vmem:[#allocation11 + $0x288] sm:$0xff] }
 0x320   :  { %1488 = vmatmul.f32.vlgmr.msra.gmra.mxu0 %v3189_v54  ;;  %1508 = vmatmul.f32.vlgmr.msra.gmra.mxu1 %v3191_v59  ;;  %v1170_v7 = vld [vmem:[#allocation11 + $0x588] sm:$0xff] }
 0x321   :  { %1556 = vmatpush.msrb.mxu0 %v1061_v40  ;;  %1576 = vmatpush.msrb.mxu1 %v1157_v3  ;;  %v1187_v40 = vld [vmem:[#allocation11 + $0x610] sm:$0xff] }
 0x322   :  { %1593 = vmatpush.msrb.mxu2 %v1271_v30  ;;  %1613 = vmatpush.msrb.mxu3 %v1367_v8  ;;  %v1283_v3 = vld [vmem:[#allocation11 + $0x910] sm:$0xff]  ;;  %v1068_v30 = vld [vmem:[#allocation11 + $0x258] sm:$0xff] }
 0x323   :  { %1557 = vmatpush.msrb.mxu0 %v1055_v9  ;;  %1577 = vmatpush.msrb.mxu1 %v1151_v11  ;;  %v1164_v8 = vld [vmem:[#allocation11 + $0x558] sm:$0xff]  ;;  %v1278_v9 = vld [vmem:[#allocation11 + $0x8e8] sm:$0xff] }
 0x324   :  { %1594 = vmatpush.msrb.mxu2 %v1265_v12  ;;  %1614 = vmatpush.msrb.mxu3 %v1361_v13  ;;  %v1374_v11 = vld [vmem:[#allocation11 + $0xbe8] sm:$0xff] }
 0x325   :  { %1558 = vmatpush.msrb.mxu0 %v1049_v14  ;;  %1578 = vmatpush.msrb.mxu1 %v1145_v41  ;;  %v1062_v12 = vld [vmem:[#allocation11 + $0x228] sm:$0xff]  ;;  %v1272_v14 = vld [vmem:[#allocation11 + $0x8b8] sm:$0xff] }
 0x326   :  { %1595 = vmatpush.msrb.mxu2 %v1259_v15  ;;  %1615 = vmatpush.msrb.mxu3 %v1355_v16  ;;  %v1158_v13 = vld [vmem:[#allocation11 + $0x528] sm:$0xff]  ;;  %v1368_v41 = vld [vmem:[#allocation11 + $0xbb8] sm:$0xff] }
 0x327   :  { %1528 = vmatmul.f32.vlgmr.msra.gmra.mxu2 %v3195_v2  ;;  %1548 = vmatmul.f32.vlgmr.msra.gmra.mxu3 %v3197_v25  ;;  %v1056_v15 = vld [vmem:[#allocation11 + $0x1f8] sm:$0xff] }
 0x328   :  { %1559 = vmatpush.msrb.mxu0 %v1043_v17  ;;  %1579 = vmatpush.msrb.mxu1 %v1139_v18  ;;  %v1152_v16 = vld [vmem:[#allocation11 + $0x4f8] sm:$0xff]  ;;  %v1266_v17 = vld [vmem:[#allocation11 + $0x888] sm:$0xff] }
 0x329   :  { %1596 = vmatpush.msrb.mxu2 %v1253_v19  ;;  %1616 = vmatpush.msrb.mxu3 %v1349_v20  ;;  %v1362_v18 = vld [vmem:[#allocation11 + $0xb88] sm:$0xff] }
 0x32a   :  { %1560 = vmatpush.msrb.mxu0 %v1037_v21  ;;  %1580 = vmatpush.msrb.mxu1 %v1133_v22  ;;  %v1050_v19 = vld [vmem:[#allocation11 + $0x1c8] sm:$0xff]  ;;  %v1260_v21 = vld [vmem:[#allocation11 + $0x858] sm:$0xff] }
 0x32b   :  { %1597 = vmatpush.msrb.mxu2 %v1247_v23  ;;  %1617 = vmatpush.msrb.mxu3 %v1343_v24  ;;  %v1146_v20 = vld [vmem:[#allocation11 + $0x4c8] sm:$0xff]  ;;  %v1356_v22 = vld [vmem:[#allocation11 + $0xb58] sm:$0xff] }
 0x32c   :  { %1561 = vmatpush.msrb.mxu0 %v1031_v26  ;;  %1581 = vmatpush.msrb.mxu1 %v1127_v27  ;;  %v1044_v23 = vld [vmem:[#allocation11 + $0x198] sm:$0xff]  ;;  %v1254_v26 = vld [vmem:[#allocation11 + $0x828] sm:$0xff] }
 0x32d   :  { %1598 = vmatpush.msrb.mxu2 %v1241_v28  ;;  %1618 = vmatpush.msrb.mxu3 %v1337_v29  ;;  %v1140_v24 = vld [vmem:[#allocation11 + $0x498] sm:$0xff]  ;;  %v1350_v27 = vld [vmem:[#allocation11 + $0xb28] sm:$0xff] }
 0x32e   :  { %1562 = vmatpush.msrb.mxu0 %v1025_v32  ;;  %1582 = vmatpush.msrb.mxu1 %v1121_v44  ;;  %v1038_v28 = vld [vmem:[#allocation11 + $0x168] sm:$0xff]  ;;  %v1248_v32 = vld [vmem:[#allocation11 + $0x7f8] sm:$0xff] }
 0x32f   :  { %1599 = vmatpush.msrb.mxu2 %v1235_v45  ;;  %1619 = vmatpush.msrb.mxu3 %v1331_v33  ;;  %v1134_v29 = vld [vmem:[#allocation11 + $0x468] sm:$0xff]  ;;  %v1344_v44 = vld [vmem:[#allocation11 + $0xaf8] sm:$0xff] }
 0x330   :  { %1563 = vmatpush.msrb.mxu0 %v1019_v35  ;;  %1583 = vmatpush.msrb.mxu1 %v1115_v36  ;;  %v1032_v45 = vld [vmem:[#allocation11 + $0x138] sm:$0xff]  ;;  %v1242_v35 = vld [vmem:[#allocation11 + $0x7c8] sm:$0xff] }
 0x331   :  { %1600 = vmatpush.msrb.mxu2 %v1229_v37  ;;  %1620 = vmatpush.msrb.mxu3 %v1325_v38  ;;  %v1128_v33 = vld [vmem:[#allocation11 + $0x438] sm:$0xff]  ;;  %v1338_v36 = vld [vmem:[#allocation11 + $0xac8] sm:$0xff] }
 0x332   :  { %1564 = vmatpush.msrb.mxu0 %v1013_v39  ;;  %1584 = vmatpush.msrb.mxu1 %v1109_v43  ;;  %v1026_v37 = vld [vmem:[#allocation11 + $0x108] sm:$0xff]  ;;  %v1236_v39 = vld [vmem:[#allocation11 + $0x798] sm:$0xff] }
 0x333   :  { %1601 = vmatpush.msrb.mxu2 %v1223_v46  ;;  %1621 = vmatpush.msrb.mxu3 %v1319_v47  ;;  %v1122_v38 = vld [vmem:[#allocation11 + $0x408] sm:$0xff]  ;;  %v1332_v43 = vld [vmem:[#allocation11 + $0xa98] sm:$0xff] }
 0x334   :  { %1565 = vmatpush.msrb.mxu0 %v1007_v34  ;;  %1585 = vmatpush.msrb.mxu1 %v1103_v48  ;;  %v1020_v46 = vld [vmem:[#allocation11 + $0xd8] sm:$0xff]  ;;  %v1230_v34 = vld [vmem:[#allocation11 + $0x768] sm:$0xff] }
 0x335   :  { %1602 = vmatpush.msrb.mxu2 %v1217_v49  ;;  %1622 = vmatpush.msrb.mxu3 %v1313_v50  ;;  %v1116_v47 = vld [vmem:[#allocation11 + $0x3d8] sm:$0xff]  ;;  %v1326_v48 = vld [vmem:[#allocation11 + $0xa68] sm:$0xff] }
 0x336   :  { %1566 = vmatpush.msrb.mxu0 %v1001_v52  ;;  %1586 = vmatpush.msrb.mxu1 %v1097_v53  ;;  %v1014_v49 = vld [vmem:[#allocation11 + $0xa8] sm:$0xff]  ;;  %v1224_v52 = vld [vmem:[#allocation11 + $0x738] sm:$0xff] }
 0x337   :  { %1603 = vmatpush.msrb.mxu2 %v1211_v55  ;;  %1623 = vmatpush.msrb.mxu3 %v1307_v56  ;;  %v1110_v50 = vld [vmem:[#allocation11 + $0x3a8] sm:$0xff]  ;;  %v1320_v53 = vld [vmem:[#allocation11 + $0xa38] sm:$0xff] }
 0x338   :  { %1567 = vmatpush.msrb.mxu0 %v995_v57  ;;  %1587 = vmatpush.msrb.mxu1 %v1091_v31  ;;  %v1008_v55 = vld [vmem:[#allocation11 + $0x78] sm:$0xff]  ;;  %v1218_v57 = vld [vmem:[#allocation11 + $0x708] sm:$0xff] }
 0x339   :  { %1604 = vmatpush.msrb.mxu2 %v1205_v58  ;;  %1624 = vmatpush.msrb.mxu3 %v1301_v60  ;;  %v1104_v56 = vld [vmem:[#allocation11 + $0x378] sm:$0xff]  ;;  %v1314_v31 = vld [vmem:[#allocation11 + $0xa08] sm:$0xff] }
 0x33a   :  { %1568 = vmatmul.f32.vlgmr.msrb.gmra.mxu0 %v3189_v54  ;;  %1588 = vmatmul.f32.vlgmr.msrb.gmra.mxu1 %v3191_v59  ;;  %v1002_v58 = vld [vmem:[#allocation11 + $0x48] sm:$0xff] }
 0x33b   :  { %1632 = vmatpush.msra.mxu0 %v1086_v61  ;;  %1652 = vmatpush.msra.mxu1 %v1182_v62  ;;  %v1098_v60 = vld [vmem:[#allocation11 + $0x348] sm:$0xff]  ;;  %v1212_v61 = vld [vmem:[#allocation11 + $0x6d8] sm:$0xff] }
 0x33c   :  { %1605 = vmatpush.msrb.mxu2 %v1199_v63  ;;  %1625 = vmatpush.msrb.mxu3 %v1295_v0  ;;  %v1308_v62 = vld [vmem:[#allocation11 + $0x9d8] sm:$0xff] }
 0x33d   :  { %1633 = vmatpush.msra.mxu0 %v1080_v51  ;;  %1653 = vmatpush.msra.mxu1 %v1176_v1  ;;  %v996_v63 = vld [vmem:[#allocation11 + $0x18] sm:$0xff]  ;;  %v1206_v51 = vld [vmem:[#allocation11 + $0x6a8] sm:$0xff] }
 0x33e   :  { %1606 = vmatpush.msrb.mxu2 %v1193_v4  ;;  %1626 = vmatpush.msrb.mxu3 %v1289_v5  ;;  %v1092_v0 = vld [vmem:[#allocation11 + $0x318] sm:$0xff]  ;;  %v1302_v1 = vld [vmem:[#allocation11 + $0x9a8] sm:$0xff]  ;;  %v1087_v4 = vld [vmem:[#allocation11 + $0x2f0] sm:$0xff] }
 0x33f   :  { %1634 = vmatpush.msra.mxu0 %v1074_v6  ;;  %1654 = vmatpush.msra.mxu1 %v1170_v7  ;;  %v1183_v5 = vld [vmem:[#allocation11 + $0x5f0] sm:$0xff]  ;;  %v1200_v6 = vld [vmem:[#allocation11 + $0x678] sm:$0xff] }
 0x340   :  { %1607 = vmatpush.msrb.mxu2 %v1187_v40  ;;  %1627 = vmatpush.msrb.mxu3 %v1283_v3  ;;  %v1296_v7 = vld [vmem:[#allocation11 + $0x978] sm:$0xff]  ;;  %v1081_v40 = vld [vmem:[#allocation11 + $0x2c0] sm:$0xff] }
 0x341   :  { %1608 = vmatmul.f32.vlgmr.msrb.gmra.mxu2 %v3195_v2  ;;  %1628 = vmatmul.f32.vlgmr.msrb.gmra.mxu3 %v3197_v25  ;;  %v1177_v3 = vld [vmem:[#allocation11 + $0x5c0] sm:$0xff] }
 0x342   :  { %1635 = vmatpush.msra.mxu0 %v1068_v30  ;;  %1655 = vmatpush.msra.mxu1 %v1164_v8  ;;  %v1194_v30 = vld [vmem:[#allocation11 + $0x648] sm:$0xff] }
 0x343   :  { %1672 = vmatpush.msra.mxu2 %v1278_v9  ;;  %1692 = vmatpush.msra.mxu3 %v1374_v11  ;;  %v1290_v8 = vld [vmem:[#allocation11 + $0x948] sm:$0xff]  ;;  %v1075_v9 = vld [vmem:[#allocation11 + $0x290] sm:$0xff] }
 0x344   :  { %1636 = vmatpush.msra.mxu0 %v1062_v12  ;;  %1656 = vmatpush.msra.mxu1 %v1158_v13  ;;  %v1171_v11 = vld [vmem:[#allocation11 + $0x590] sm:$0xff]  ;;  %v1188_v12 = vld [vmem:[#allocation11 + $0x618] sm:$0xff] }
 0x345   :  { %1673 = vmatpush.msra.mxu2 %v1272_v14  ;;  %1693 = vmatpush.msra.mxu3 %v1368_v41  ;;  %v1284_v13 = vld [vmem:[#allocation11 + $0x918] sm:$0xff]  ;;  %v1069_v14 = vld [vmem:[#allocation11 + $0x260] sm:$0xff] }
 0x346   :  { %1637 = vmatpush.msra.mxu0 %v1056_v15  ;;  %1657 = vmatpush.msra.mxu1 %v1152_v16  ;;  %v1165_v41 = vld [vmem:[#allocation11 + $0x560] sm:$0xff]  ;;  %v1279_v15 = vld [vmem:[#allocation11 + $0x8f0] sm:$0xff] }
 0x347   :  { %1674 = vmatpush.msra.mxu2 %v1266_v17  ;;  %1694 = vmatpush.msra.mxu3 %v1362_v18  ;;  %v1375_v16 = vld [vmem:[#allocation11 + $0xbf0] sm:$0xff] }
 0x348   :  { %1638 = vmatpush.msra.mxu0 %v1050_v19  ;;  %1658 = vmatpush.msra.mxu1 %v1146_v20  ;;  %v1063_v17 = vld [vmem:[#allocation11 + $0x230] sm:$0xff]  ;;  %v1273_v19 = vld [vmem:[#allocation11 + $0x8c0] sm:$0xff] }
 0x349   :  { %1675 = vmatpush.msra.mxu2 %v1260_v21  ;;  %1695 = vmatpush.msra.mxu3 %v1356_v22  ;;  %v1159_v18 = vld [vmem:[#allocation11 + $0x530] sm:$0xff]  ;;  %v1369_v20 = vld [vmem:[#allocation11 + $0xbc0] sm:$0xff] }
 0x34a   :  { %1639 = vmatpush.msra.mxu0 %v1044_v23  ;;  %1659 = vmatpush.msra.mxu1 %v1140_v24  ;;  %v1057_v21 = vld [vmem:[#allocation11 + $0x200] sm:$0xff]  ;;  %v1267_v23 = vld [vmem:[#allocation11 + $0x890] sm:$0xff] }
 0x34b   :  { %1676 = vmatpush.msra.mxu2 %v1254_v26  ;;  %1696 = vmatpush.msra.mxu3 %v1350_v27  ;;  %v1153_v22 = vld [vmem:[#allocation11 + $0x500] sm:$0xff]  ;;  %v1363_v24 = vld [vmem:[#allocation11 + $0xb90] sm:$0xff] }
 0x34c   :  { %1640 = vmatpush.msra.mxu0 %v1038_v28  ;;  %1660 = vmatpush.msra.mxu1 %v1134_v29  ;;  %v1051_v26 = vld [vmem:[#allocation11 + $0x1d0] sm:$0xff]  ;;  %v1261_v28 = vld [vmem:[#allocation11 + $0x860] sm:$0xff] }
 0x34d   :  { %1677 = vmatpush.msra.mxu2 %v1248_v32  ;;  %1697 = vmatpush.msra.mxu3 %v1344_v44  ;;  %v1147_v27 = vld [vmem:[#allocation11 + $0x4d0] sm:$0xff]  ;;  %v1357_v29 = vld [vmem:[#allocation11 + $0xb60] sm:$0xff] }
 0x34e   :  { %1641 = vmatpush.msra.mxu0 %v1032_v45  ;;  %1661 = vmatpush.msra.mxu1 %v1128_v33  ;;  %v1045_v32 = vld [vmem:[#allocation11 + $0x1a0] sm:$0xff]  ;;  %v1255_v45 = vld [vmem:[#allocation11 + $0x830] sm:$0xff] }
 0x34f   :  { %1678 = vmatpush.msra.mxu2 %v1242_v35  ;;  %1698 = vmatpush.msra.mxu3 %v1338_v36  ;;  %v1141_v44 = vld [vmem:[#allocation11 + $0x4a0] sm:$0xff]  ;;  %v1351_v33 = vld [vmem:[#allocation11 + $0xb30] sm:$0xff] }
 0x350   :  { %1642 = vmatpush.msra.mxu0 %v1026_v37  ;;  %1662 = vmatpush.msra.mxu1 %v1122_v38  ;;  %v1039_v35 = vld [vmem:[#allocation11 + $0x170] sm:$0xff]  ;;  %v1249_v37 = vld [vmem:[#allocation11 + $0x800] sm:$0xff] }
 0x351   :  { %1679 = vmatpush.msra.mxu2 %v1236_v39  ;;  %1699 = vmatpush.msra.mxu3 %v1332_v43  ;;  %v1135_v36 = vld [vmem:[#allocation11 + $0x470] sm:$0xff]  ;;  %v1345_v38 = vld [vmem:[#allocation11 + $0xb00] sm:$0xff] }
 0x352   :  { %1643 = vmatpush.msra.mxu0 %v1020_v46  ;;  %1663 = vmatpush.msra.mxu1 %v1116_v47  ;;  %v1033_v39 = vld [vmem:[#allocation11 + $0x140] sm:$0xff]  ;;  %v1243_v46 = vld [vmem:[#allocation11 + $0x7d0] sm:$0xff] }
 0x353   :  { %1680 = vmatpush.msra.mxu2 %v1230_v34  ;;  %1700 = vmatpush.msra.mxu3 %v1326_v48  ;;  %v1129_v43 = vld [vmem:[#allocation11 + $0x440] sm:$0xff]  ;;  %v1339_v47 = vld [vmem:[#allocation11 + $0xad0] sm:$0xff] }
 0x354   :  { %1644 = vmatpush.msra.mxu0 %v1014_v49  ;;  %1664 = vmatpush.msra.mxu1 %v1110_v50  ;;  %v1027_v34 = vld [vmem:[#allocation11 + $0x110] sm:$0xff]  ;;  %v1237_v49 = vld [vmem:[#allocation11 + $0x7a0] sm:$0xff] }
 0x355   :  { %1681 = vmatpush.msra.mxu2 %v1224_v52  ;;  %1701 = vmatpush.msra.mxu3 %v1320_v53  ;;  %v1123_v48 = vld [vmem:[#allocation11 + $0x410] sm:$0xff]  ;;  %v1333_v50 = vld [vmem:[#allocation11 + $0xaa0] sm:$0xff] }
 0x356   :  { %1645 = vmatpush.msra.mxu0 %v1008_v55  ;;  %1665 = vmatpush.msra.mxu1 %v1104_v56  ;;  %v1021_v52 = vld [vmem:[#allocation11 + $0xe0] sm:$0xff]  ;;  %v1231_v55 = vld [vmem:[#allocation11 + $0x770] sm:$0xff] }
 0x357   :  { %1682 = vmatpush.msra.mxu2 %v1218_v57  ;;  %1702 = vmatpush.msra.mxu3 %v1314_v31  ;;  %v1117_v53 = vld [vmem:[#allocation11 + $0x3e0] sm:$0xff]  ;;  %v1327_v56 = vld [vmem:[#allocation11 + $0xa70] sm:$0xff] }
 0x358   :  { %1646 = vmatpush.msra.mxu0 %v1002_v58  ;;  %1666 = vmatpush.msra.mxu1 %v1098_v60  ;;  %v1015_v57 = vld [vmem:[#allocation11 + $0xb0] sm:$0xff]  ;;  %v1225_v58 = vld [vmem:[#allocation11 + $0x740] sm:$0xff] }
 0x359   :  { %1683 = vmatpush.msra.mxu2 %v1212_v61  ;;  %1703 = vmatpush.msra.mxu3 %v1308_v62  ;;  %v1111_v31 = vld [vmem:[#allocation11 + $0x3b0] sm:$0xff]  ;;  %v1321_v60 = vld [vmem:[#allocation11 + $0xa40] sm:$0xff] }
 0x35a   :  { %1647 = vmatpush.msra.mxu0 %v996_v63  ;;  %1667 = vmatpush.msra.mxu1 %v1092_v0  ;;  %v1009_v61 = vld [vmem:[#allocation11 + $0x80] sm:$0xff]  ;;  %v1219_v63 = vld [vmem:[#allocation11 + $0x710] sm:$0xff] }
 0x35b   :  { %1684 = vmatpush.msra.mxu2 %v1206_v51  ;;  %1704 = vmatpush.msra.mxu3 %v1302_v1  ;;  %v1105_v62 = vld [vmem:[#allocation11 + $0x380] sm:$0xff]  ;;  %v1315_v0 = vld [vmem:[#allocation11 + $0xa10] sm:$0xff] }
 0x35c   :  { %1648 = vmatmul.f32.vlgmr.msra.gmra.mxu0 %v3189_v54  ;;  %1668 = vmatmul.f32.vlgmr.msra.gmra.mxu1 %v3191_v59  ;;  %v1003_v51 = vld [vmem:[#allocation11 + $0x50] sm:$0xff] }
 0x35d   :  { %1712 = vmatpush.msrb.mxu0 %v1087_v4  ;;  %1732 = vmatpush.msrb.mxu1 %v1183_v5  ;;  %v1099_v1 = vld [vmem:[#allocation11 + $0x350] sm:$0xff]  ;;  %v1213_v4 = vld [vmem:[#allocation11 + $0x6e0] sm:$0xff] }
 0x35e   :  { %1685 = vmatpush.msra.mxu2 %v1200_v6  ;;  %1705 = vmatpush.msra.mxu3 %v1296_v7  ;;  %v1309_v5 = vld [vmem:[#allocation11 + $0x9e0] sm:$0xff] }
 0x35f   :  { %1713 = vmatpush.msrb.mxu0 %v1081_v40  ;;  %1733 = vmatpush.msrb.mxu1 %v1177_v3  ;;  %v997_v6 = vld [vmem:[#allocation11 + $0x20] sm:$0xff]  ;;  %v1207_v40 = vld [vmem:[#allocation11 + $0x6b0] sm:$0xff] }
 0x360   :  { %1686 = vmatpush.msra.mxu2 %v1194_v30  ;;  %1706 = vmatpush.msra.mxu3 %v1290_v8  ;;  %v1093_v7 = vld [vmem:[#allocation11 + $0x320] sm:$0xff]  ;;  %v1303_v3 = vld [vmem:[#allocation11 + $0x9b0] sm:$0xff]  ;;  %v1088_v30 = vld [vmem:[#allocation11 + $0x2f8] sm:$0xff] }
 0x361   :  { %1714 = vmatpush.msrb.mxu0 %v1075_v9  ;;  %1734 = vmatpush.msrb.mxu1 %v1171_v11  ;;  %v1184_v8 = vld [vmem:[#allocation11 + $0x5f8] sm:$0xff]  ;;  %v1201_v9 = vld [vmem:[#allocation11 + $0x680] sm:$0xff] }
 0x362   :  { %1687 = vmatpush.msra.mxu2 %v1188_v12  ;;  %1707 = vmatpush.msra.mxu3 %v1284_v13  ;;  %v1297_v11 = vld [vmem:[#allocation11 + $0x980] sm:$0xff]  ;;  %v1082_v12 = vld [vmem:[#allocation11 + $0x2c8] sm:$0xff] }
 0x363   :  { %1688 = vmatmul.f32.vlgmr.msra.gmra.mxu2 %v3195_v2  ;;  %1708 = vmatmul.f32.vlgmr.msra.gmra.mxu3 %v3197_v25  ;;  %v1178_v13 = vld [vmem:[#allocation11 + $0x5c8] sm:$0xff] }
 0x364   :  { %1715 = vmatpush.msrb.mxu0 %v1069_v14  ;;  %1735 = vmatpush.msrb.mxu1 %v1165_v41  ;;  %v1195_v14 = vld [vmem:[#allocation11 + $0x650] sm:$0xff] }
 0x365   :  { %1752 = vmatpush.msrb.mxu2 %v1279_v15  ;;  %1772 = vmatpush.msrb.mxu3 %v1375_v16  ;;  %v1291_v41 = vld [vmem:[#allocation11 + $0x950] sm:$0xff]  ;;  %v1076_v15 = vld [vmem:[#allocation11 + $0x298] sm:$0xff] }
 0x366   :  { %1716 = vmatpush.msrb.mxu0 %v1063_v17  ;;  %1736 = vmatpush.msrb.mxu1 %v1159_v18  ;;  %v1172_v16 = vld [vmem:[#allocation11 + $0x598] sm:$0xff]  ;;  %v1189_v17 = vld [vmem:[#allocation11 + $0x620] sm:$0xff] }
 0x367   :  { %1753 = vmatpush.msrb.mxu2 %v1273_v19  ;;  %1773 = vmatpush.msrb.mxu3 %v1369_v20  ;;  %v1285_v18 = vld [vmem:[#allocation11 + $0x920] sm:$0xff]  ;;  %v1070_v19 = vld [vmem:[#allocation11 + $0x268] sm:$0xff] }
 0x368   :  { %1717 = vmatpush.msrb.mxu0 %v1057_v21  ;;  %1737 = vmatpush.msrb.mxu1 %v1153_v22  ;;  %v1166_v20 = vld [vmem:[#allocation11 + $0x568] sm:$0xff]  ;;  %v1280_v21 = vld [vmem:[#allocation11 + $0x8f8] sm:$0xff] }
 0x369   :  { %1754 = vmatpush.msrb.mxu2 %v1267_v23  ;;  %1774 = vmatpush.msrb.mxu3 %v1363_v24  ;;  %v1376_v22 = vld [vmem:[#allocation11 + $0xbf8] sm:$0xff] }
 0x36a   :  { %1718 = vmatpush.msrb.mxu0 %v1051_v26  ;;  %1738 = vmatpush.msrb.mxu1 %v1147_v27  ;;  %v1064_v23 = vld [vmem:[#allocation11 + $0x238] sm:$0xff]  ;;  %v1274_v26 = vld [vmem:[#allocation11 + $0x8c8] sm:$0xff] }
 0x36b   :  { %1755 = vmatpush.msrb.mxu2 %v1261_v28  ;;  %1775 = vmatpush.msrb.mxu3 %v1357_v29  ;;  %v1160_v24 = vld [vmem:[#allocation11 + $0x538] sm:$0xff]  ;;  %v1370_v27 = vld [vmem:[#allocation11 + $0xbc8] sm:$0xff] }
 0x36c   :  { %1719 = vmatpush.msrb.mxu0 %v1045_v32  ;;  %1739 = vmatpush.msrb.mxu1 %v1141_v44  ;;  %v1058_v28 = vld [vmem:[#allocation11 + $0x208] sm:$0xff]  ;;  %v1268_v32 = vld [vmem:[#allocation11 + $0x898] sm:$0xff] }
 0x36d   :  { %1756 = vmatpush.msrb.mxu2 %v1255_v45  ;;  %1776 = vmatpush.msrb.mxu3 %v1351_v33  ;;  %v1154_v29 = vld [vmem:[#allocation11 + $0x508] sm:$0xff]  ;;  %v1364_v44 = vld [vmem:[#allocation11 + $0xb98] sm:$0xff] }
 0x36e   :  { %1720 = vmatpush.msrb.mxu0 %v1039_v35  ;;  %1740 = vmatpush.msrb.mxu1 %v1135_v36  ;;  %v1052_v45 = vld [vmem:[#allocation11 + $0x1d8] sm:$0xff]  ;;  %v1262_v35 = vld [vmem:[#allocation11 + $0x868] sm:$0xff] }
 0x36f   :  { %1757 = vmatpush.msrb.mxu2 %v1249_v37  ;;  %1777 = vmatpush.msrb.mxu3 %v1345_v38  ;;  %v1148_v33 = vld [vmem:[#allocation11 + $0x4d8] sm:$0xff]  ;;  %v1358_v36 = vld [vmem:[#allocation11 + $0xb68] sm:$0xff] }
 0x370   :  { %1721 = vmatpush.msrb.mxu0 %v1033_v39  ;;  %1741 = vmatpush.msrb.mxu1 %v1129_v43  ;;  %v1046_v37 = vld [vmem:[#allocation11 + $0x1a8] sm:$0xff]  ;;  %v1256_v39 = vld [vmem:[#allocation11 + $0x838] sm:$0xff] }
 0x371   :  { %1758 = vmatpush.msrb.mxu2 %v1243_v46  ;;  %1778 = vmatpush.msrb.mxu3 %v1339_v47  ;;  %v1142_v38 = vld [vmem:[#allocation11 + $0x4a8] sm:$0xff]  ;;  %v1352_v43 = vld [vmem:[#allocation11 + $0xb38] sm:$0xff] }
 0x372   :  { %1722 = vmatpush.msrb.mxu0 %v1027_v34  ;;  %1742 = vmatpush.msrb.mxu1 %v1123_v48  ;;  %v1040_v46 = vld [vmem:[#allocation11 + $0x178] sm:$0xff]  ;;  %v1250_v34 = vld [vmem:[#allocation11 + $0x808] sm:$0xff] }
 0x373   :  { %1759 = vmatpush.msrb.mxu2 %v1237_v49  ;;  %1779 = vmatpush.msrb.mxu3 %v1333_v50  ;;  %v1136_v47 = vld [vmem:[#allocation11 + $0x478] sm:$0xff]  ;;  %v1346_v48 = vld [vmem:[#allocation11 + $0xb08] sm:$0xff] }
 0x374   :  { %1723 = vmatpush.msrb.mxu0 %v1021_v52  ;;  %1743 = vmatpush.msrb.mxu1 %v1117_v53  ;;  %v1034_v49 = vld [vmem:[#allocation11 + $0x148] sm:$0xff]  ;;  %v1244_v52 = vld [vmem:[#allocation11 + $0x7d8] sm:$0xff] }
 0x375   :  { %1760 = vmatpush.msrb.mxu2 %v1231_v55  ;;  %1780 = vmatpush.msrb.mxu3 %v1327_v56  ;;  %v1130_v50 = vld [vmem:[#allocation11 + $0x448] sm:$0xff]  ;;  %v1340_v53 = vld [vmem:[#allocation11 + $0xad8] sm:$0xff] }
 0x376   :  { %1724 = vmatpush.msrb.mxu0 %v1015_v57  ;;  %1744 = vmatpush.msrb.mxu1 %v1111_v31  ;;  %v1028_v55 = vld [vmem:[#allocation11 + $0x118] sm:$0xff]  ;;  %v1238_v57 = vld [vmem:[#allocation11 + $0x7a8] sm:$0xff] }
 0x377   :  { %1761 = vmatpush.msrb.mxu2 %v1225_v58  ;;  %1781 = vmatpush.msrb.mxu3 %v1321_v60  ;;  %v1124_v56 = vld [vmem:[#allocation11 + $0x418] sm:$0xff]  ;;  %v1334_v31 = vld [vmem:[#allocation11 + $0xaa8] sm:$0xff] }
 0x378   :  { %1725 = vmatpush.msrb.mxu0 %v1009_v61  ;;  %1745 = vmatpush.msrb.mxu1 %v1105_v62  ;;  %v1022_v58 = vld [vmem:[#allocation11 + $0xe8] sm:$0xff]  ;;  %v1232_v61 = vld [vmem:[#allocation11 + $0x778] sm:$0xff] }
 0x379   :  { %1762 = vmatpush.msrb.mxu2 %v1219_v63  ;;  %1782 = vmatpush.msrb.mxu3 %v1315_v0  ;;  %v1118_v60 = vld [vmem:[#allocation11 + $0x3e8] sm:$0xff]  ;;  %v1328_v62 = vld [vmem:[#allocation11 + $0xa78] sm:$0xff]  ;;  %v3217_v63 = vld [vmem:[#allocation13] sm:$0x3f] }
 0x37a   :  { %1726 = vmatpush.msrb.mxu0 %v1003_v51  ;;  %1746 = vmatpush.msrb.mxu1 %v1099_v1  ;;  %v1016_v0 = vld [vmem:[#allocation11 + $0xb8] sm:$0xff]  ;;  %v1226_v1 = vld [vmem:[#allocation11 + $0x748] sm:$0xff] }
 0x37b   :  { %1763 = vmatpush.msrb.mxu2 %v1213_v4  ;;  %1783 = vmatpush.msrb.mxu3 %v1309_v5  ;;  %v1112_v51 = vld [vmem:[#allocation11 + $0x3b8] sm:$0xff]  ;;  %v1322_v4 = vld [vmem:[#allocation11 + $0xa48] sm:$0xff] }
 0x37c   :  { %1727 = vmatpush.msrb.mxu0 %v997_v6  ;;  %1747 = vmatpush.msrb.mxu1 %v1093_v7  ;;  %v1010_v5 = vld [vmem:[#allocation11 + $0x88] sm:$0xff]  ;;  %v1380_v7 = vperm.slane %v3217_v63, 0 }
 0x37d   :  { %1764 = vmatpush.msrb.mxu2 %v1207_v40  ;;  %1784 = vmatpush.msrb.mxu3 %v1303_v3  ;;  %v1106_v6 = vld [vmem:[#allocation11 + $0x388] sm:$0xff]  ;;  %v1220_v40 = vld [vmem:[#allocation11 + $0x718] sm:$0xff] }
 0x37e   :  { %1728 = vmatmul.f32.vlgmr.msrb.gmra.mxu0 %v3189_v54  ;;  %1748 = vmatmul.f32.vlgmr.msrb.gmra.mxu1 %v3191_v59  ;;  %v1316_v3 = vld [vmem:[#allocation11 + $0xa18] sm:$0xff] }
 0x37f   :  { %1792 = vmatpush.msra.mxu0 %v1088_v30  ;;  %1812 = vmatpush.msra.mxu1 %v1184_v8  ;;  %v1004_v8 = vld [vmem:[#allocation11 + $0x58] sm:$0xff] }
 0x380   :  { %1765 = vmatpush.msrb.mxu2 %v1201_v9  ;;  %1785 = vmatpush.msrb.mxu3 %v1297_v11  ;;  %v1100_v9 = vld [vmem:[#allocation11 + $0x358] sm:$0xff]  ;;  %v1214_v11 = vld [vmem:[#allocation11 + $0x6e8] sm:$0xff] }
 0x381   :  { %1793 = vmatpush.msra.mxu0 %v1082_v12  ;;  %1813 = vmatpush.msra.mxu1 %v1178_v13  ;;  %v1310_v12 = vld [vmem:[#allocation11 + $0x9e8] sm:$0xff] }
 0x382   :  { %1766 = vmatpush.msrb.mxu2 %v1195_v14  ;;  %1786 = vmatpush.msrb.mxu3 %v1291_v41  ;;  %v998_v13 = vld [vmem:[#allocation11 + $0x28] sm:$0xff] }
 0x383   :  { %1794 = vmatpush.msra.mxu0 %v1076_v15  ;;  %1814 = vmatpush.msra.mxu1 %v1172_v16  ;;  %v1094_v14 = vld [vmem:[#allocation11 + $0x328] sm:$0xff]  ;;  %v1208_v15 = vld [vmem:[#allocation11 + $0x6b8] sm:$0xff] }
 0x384   :  { %1767 = vmatpush.msrb.mxu2 %v1189_v17  ;;  %1787 = vmatpush.msrb.mxu3 %v1285_v18  ;;  %v1304_v16 = vld [vmem:[#allocation11 + $0x9b8] sm:$0xff]  ;;  %v1202_v18 = vld [vmem:[#allocation11 + $0x688] sm:$0xff] }
 0x385   :  { %1768 = vmatmul.f32.vlgmr.msrb.gmra.mxu2 %v3195_v2  ;;  %1788 = vmatmul.f32.vlgmr.msrb.gmra.mxu3 %v3197_v25 }
 0x386   :  { %1795 = vmatpush.msra.mxu0 %v1070_v19  ;;  %1815 = vmatpush.msra.mxu1 %v1166_v20  ;;  %v1298_v19 = vld [vmem:[#allocation11 + $0x988] sm:$0xff] }
 0x387   :  { %1832 = vmatpush.msra.mxu2 %v1280_v21  ;;  %1852 = vmatpush.msra.mxu3 %v1376_v22  ;;  %v1196_v21 = vld [vmem:[#allocation11 + $0x658] sm:$0xff] }
 0x388   :  { %1796 = vmatpush.msra.mxu0 %v1064_v23  ;;  %1816 = vmatpush.msra.mxu1 %v1160_v24  ;;  %v1292_v22 = vld [vmem:[#allocation11 + $0x958] sm:$0xff]  ;;  %v1381_v24 = vperm.slane %v3217_v63, 1 }
 0x389   :  { %1833 = vmatpush.msra.mxu2 %v1274_v26  ;;  %1853 = vmatpush.msra.mxu3 %v1370_v27  ;;  %v1190_v27 = vld [vmem:[#allocation11 + $0x628] sm:$0xff] }
 0x38a   :  { %1797 = vmatpush.msra.mxu0 %v1058_v28  ;;  %1817 = vmatpush.msra.mxu1 %v1154_v29  ;;  %v1286_v28 = vld [vmem:[#allocation11 + $0x928] sm:$0xff] }
 0x38b   :  { %1834 = vmatpush.msra.mxu2 %v1268_v32  ;;  %1854 = vmatpush.msra.mxu3 %v1364_v44 }
 0x38c   :  { %1798 = vmatpush.msra.mxu0 %v1052_v45  ;;  %1818 = vmatpush.msra.mxu1 %v1148_v33 }
 0x38d   :  { %1835 = vmatpush.msra.mxu2 %v1262_v35  ;;  %1855 = vmatpush.msra.mxu3 %v1358_v36 }
 0x38e   :  { %1799 = vmatpush.msra.mxu0 %v1046_v37  ;;  %1819 = vmatpush.msra.mxu1 %v1142_v38  ;;  %v1382_v38 = vperm.slane %v3217_v63, 2 }
 0x38f   :  { %1836 = vmatpush.msra.mxu2 %v1256_v39  ;;  %1856 = vmatpush.msra.mxu3 %v1352_v43 }
 0x390   :  { %1800 = vmatpush.msra.mxu0 %v1040_v46  ;;  %1820 = vmatpush.msra.mxu1 %v1136_v47 }
 0x391   :  { %1837 = vmatpush.msra.mxu2 %v1250_v34  ;;  %1857 = vmatpush.msra.mxu3 %v1346_v48 }
 0x392   :  { %1801 = vmatpush.msra.mxu0 %v1034_v49  ;;  %1821 = vmatpush.msra.mxu1 %v1130_v50  ;;  %v3234_v49 = vld [vmem:[#allocation14] sm:$0x3] }
 0x393   :  { %1838 = vmatpush.msra.mxu2 %v1244_v52  ;;  %1858 = vmatpush.msra.mxu3 %v1340_v53  ;;  %v1409_v30 = vpop.f32.mrf.mxu0  ;;  %v1429_v17 = vpop.f32.mrf.mxu1 }
 0x394   :  { %1802 = vmatpush.msra.mxu0 %v1028_v55  ;;  %1822 = vmatpush.msra.mxu1 %v1124_v56  ;;  %v1410_v41 = vadd.f32 %v1409_v30, %v1380_v7 }
 0x395   :  { %1839 = vmatpush.msra.mxu2 %v1238_v57  ;;  %1859 = vmatpush.msra.mxu3 %v1334_v31 }
 0x396   :  { %1803 = vmatpush.msra.mxu0 %v1022_v58  ;;  %1823 = vmatpush.msra.mxu1 %v1118_v60  ;;  %v1430_v20 = vadd.f32 %v1429_v17, %v1410_v41 }
 0x397   :  { %1840 = vmatpush.msra.mxu2 %v1232_v61  ;;  %1860 = vmatpush.msra.mxu3 %v1328_v62  ;;  %v3243_v61 = vperm.slane %v3234_v49, 0 }
 0x398   :  { %1804 = vmatpush.msra.mxu0 %v1016_v0  ;;  %1824 = vmatpush.msra.mxu1 %v1112_v51 }
 0x399   :  { %1841 = vmatpush.msra.mxu2 %v1226_v1  ;;  %1861 = vmatpush.msra.mxu3 %v1322_v4 }
 0x39a   :  { %1805 = vmatpush.msra.mxu0 %v1010_v5  ;;  %1825 = vmatpush.msra.mxu1 %v1106_v6 }
 0x39b   :  { %1842 = vmatpush.msra.mxu2 %v1220_v40  ;;  %1862 = vmatpush.msra.mxu3 %v1316_v3 }
 0x39c   :  { %1806 = vmatpush.msra.mxu0 %v1004_v8  ;;  %1826 = vmatpush.msra.mxu1 %v1100_v9 }
 0x39d   :  { %1843 = vmatpush.msra.mxu2 %v1214_v11  ;;  %1863 = vmatpush.msra.mxu3 %v1310_v12  ;;  %v1489_v29 = vpop.f32.mrf.mxu0 }
 0x39e   :  { %1807 = vmatpush.msra.mxu0 %v998_v13  ;;  %1827 = vmatpush.msra.mxu1 %v1094_v14 }
 0x39f   :  { %1844 = vmatpush.msra.mxu2 %v1208_v15  ;;  %1864 = vmatpush.msra.mxu3 %v1304_v16 }
 0x3a0   :  { %1808 = vmatmul.f32.vlgmr.msra.gmra.mxu0 %v3189_v54  ;;  %1828 = vmatmul.f32.vlgmr.msra.gmra.mxu1 %v3191_v59  ;;  %v1449_v23 = vpop.f32.mrf.mxu2  ;;  %v1469_v32 = vpop.f32.mrf.mxu3  ;;  %v1490_v54 = vadd.f32 %v1489_v29, %v1381_v24 }
 0x3a1   :  { %1845 = vmatpush.msra.mxu2 %v1202_v18  ;;  %1865 = vmatpush.msra.mxu3 %v1298_v19  ;;  %v1450_v26 = vadd.f32 %v1449_v23, %v1430_v20  ;;  %v1509_v59 = vpop.f32.mrf.mxu1 }
 0x3a2   :  { %v1510_v45 = vadd.f32 %v1509_v59, %v1490_v54 }
 0x3a3   :  { %1846 = vmatpush.msra.mxu2 %v1196_v21  ;;  %1866 = vmatpush.msra.mxu3 %v1292_v22  ;;  %v3223_v44 = vadd.f32 %v1469_v32, %v1450_v26  ;;  %v1383_v26 = vperm.slane %v3217_v63, 3 }
 0x3a5   :  { %1847 = vmatpush.msra.mxu2 %v1190_v27  ;;  %1867 = vmatpush.msra.mxu3 %v1286_v28 }
 0x3a6   :  { %1848 = vmatmul.f32.vlgmr.msra.gmra.mxu2 %v3195_v2  ;;  %1868 = vmatmul.f32.vlgmr.msra.gmra.mxu3 %v3197_v25 }
 0x3a7   :  { %2110 = vmatpush.msrb.mxu0 %v3223_v44 }
 0x3aa   :  { %v1529_v33 = vpop.f32.mrf.mxu2  ;;  %v1549_v36 = vpop.f32.mrf.mxu3 }
 0x3ab   :  { %v1530_v35 = vadd.f32 %v1529_v33, %v1510_v45 }
 0x3ad   :  { %v3228_v37 = vadd.f32 %v1549_v36, %v1530_v35 }
 0x3af   :  { %2130 = vmatpush.msrb.mxu1 %v3228_v37 }
 0x3b7   :  { %v1569_v39 = vpop.f32.mrf.mxu0  ;;  %v1589_v46 = vpop.f32.mrf.mxu1 }
 0x3b8   :  { %v1570_v43 = vadd.f32 %v1569_v39, %v1382_v38 }
 0x3ba   :  { %v1590_v47 = vadd.f32 %v1589_v46, %v1570_v43  ;;  %v2019_v43 = vrot.slane %v3234_v49, 1 }
 0x3c4   :  { %v1609_v2 = vpop.f32.mrf.mxu2  ;;  %v1629_v25 = vpop.f32.mrf.mxu3 }
 0x3c5   :  { %v1610_v34 = vadd.f32 %v1609_v2, %v1590_v47 }
 0x3c7   :  { %v3232_v48 = vadd.f32 %v1629_v25, %v1610_v34 }
 0x3c9   :  { %v1880_v50 = vperm.slane %v3232_v48, 0  ;;  %v1876_v52 = vrot.slane %v3232_v48, 4  ;;  %v1873_v53 = vrot.slane %v3232_v48, 1  ;;  %v1875_v55 = vrot.slane %v3232_v48, 3 }
 0x3ca   :  { %v1874_v56 = vrot.slane %v3232_v48, 2  ;;  %v1878_v0 = vrot.slane %v3232_v48, 6  ;;  %v1877_v8 = vrot.slane %v3232_v48, 5 }
 0x3cb   :  { %v1896_v57 = vadd.f32 %v1880_v50, %v3223_v44  ;;  %v1884_v31 = vperm.slane %v1876_v52, 0  ;;  %v1881_v58 = vperm.slane %v1873_v53, 0  ;;  %v1883_v60 = vperm.slane %v1875_v55, 0 }
 0x3cc   :  { %v1882_v62 = vperm.slane %v1874_v56, 0  ;;  %v1886_v12 = vperm.slane %v1878_v0, 0  ;;  %v1885_v16 = vperm.slane %v1877_v8, 0 }
 0x3cd   :  { %vm1904_vm10 = vcmp.ge.f32.partialorder %v1896_v57, 0.0  ;;  %v1912_v51 = vmul.f32 0.2, %v1896_v57  ;;  %v1900_v1 = vadd.f32 %v1884_v31, %v3223_v44  ;;  %v1897_v4 = vadd.f32 %v1881_v58, %v3223_v44 }
 0x3ce   :  { %v1899_v5 = vadd.f32 %v1883_v60, %v3223_v44  ;;  %v1898_v30 = vadd.f32 %v1882_v62, %v3223_v44  ;;  %v1902_v18 = vadd.f32 %v1886_v12, %v3223_v44  ;;  %v1901_v21 = vadd.f32 %v1885_v16, %v3223_v44 }
 0x3cf   :  { %v1920_v6 = vsel %vm1904_vm10, %v1896_v57, %v1912_v51  ;;  %vm1908_vm11 = vcmp.ge.f32.partialorder %v1900_v1, 0.0  ;;  %v1916_v7 = vmul.f32 0.2, %v1900_v1  ;;  %vm1905_vm12 = vcmp.ge.f32.partialorder %v1897_v4, 0.0 }
 0x3d0   :  { %v1931_v40 = vmul.f32 %v3243_v61, %v1920_v6  ;;  %v1913_v3 = vmul.f32 0.2, %v1897_v4  ;;  %v1915_v11 = vmul.f32 0.2, %v1899_v5  ;;  %vm1907_vm13 = vcmp.ge.f32.partialorder %v1899_v5, 0.0 }
 0x3d1   :  { %v1924_v9 = vsel %vm1908_vm11, %v1900_v1, %v1916_v7  ;;  %v1914_v15 = vmul.f32 0.2, %v1898_v30  ;;  %vm1906_vm14 = vcmp.ge.f32.partialorder %v1898_v30, 0.0  ;;  %v1918_v22 = vmul.f32 0.2, %v1902_v18 }
 0x3d2   :  { %1939 = vadd.xlane.f32.xlu1 %v1931_v40  ;;  %v1935_v13 = vmul.f32 %v3243_v61, %v1924_v9  ;;  %v1921_v14 = vsel %vm1905_vm12, %v1897_v4, %v1913_v3  ;;  %v1923_v17 = vsel %vm1907_vm13, %v1899_v5, %v1915_v11  ;;  %vm1910_vm15 = vcmp.ge.f32.partialorder %v1902_v18, 0.0 }
 0x3d3   :  { %v1932_v41 = vmul.f32 %v3243_v61, %v1921_v14  ;;  %v1934_v19 = vmul.f32 %v3243_v61, %v1923_v17  ;;  %v1922_v20 = vsel %vm1906_vm14, %v1898_v30, %v1914_v15  ;;  %v1917_v24 = vmul.f32 0.2, %v1901_v21 }
 0x3d4   :  { %1947 = vadd.xlane.f32.xlu0 %v1935_v13  ;;  %v1933_v23 = vmul.f32 %v3243_v61, %v1922_v20  ;;  %v1926_v27 = vsel %vm1910_vm15, %v1902_v18, %v1918_v22  ;;  %vm1909_vm0 = vcmp.ge.f32.partialorder %v1901_v21, 0.0  ;;  %v2020_v57 = vperm.slane %v2019_v43, 0 }
 0x3d5   :  { %1941 = vadd.xlane.f32.xlu2 %v1932_v41  ;;  %v1937_v29 = vmul.f32 %v3243_v61, %v1926_v27  ;;  %v1925_v32 = vsel %vm1909_vm0, %v1901_v21, %v1917_v24  ;;  %v1879_v18 = vrot.slane %v3232_v48, 7 }
 0x3d6   :  { %v1936_v59 = vmul.f32 %v3243_v61, %v1925_v32 }
 0x3d7   :  { %v1887_v24 = vperm.slane %v1879_v18, 0 }
 0x3d9   :  { %v1649_v28 = vpop.f32.mrf.mxu0  ;;  %v1669_v45 = vpop.f32.mrf.mxu1  ;;  %v1903_v32 = vadd.f32 %v1887_v24, %v3223_v44  ;;  %v2179_v24 = vld [vmem:[#allocation16 + $0x150] sm:$0xff] }
 0x3da   :  { %1945 = vadd.xlane.f32.xlu1 %v1934_v19  ;;  %v1650_v54 = vadd.f32 %v1649_v28, %v1383_v26 }
 0x3dc   :  { %v1670_v33 = vadd.f32 %v1669_v45, %v1650_v54 }
 0x3dd   :  { %1943 = vadd.xlane.f32.xlu2 %v1933_v23 }
 0x3e2   :  { %1951 = vadd.xlane.f32.xlu1 %v1937_v29 }
 0x3e5   :  { %1949 = vadd.xlane.f32.xlu2 %v1936_v59  ;;  %v1919_v59 = vmul.f32 0.2, %v1903_v32 }
 0x3e6   :  { %v1689_v35 = vpop.f32.mrf.mxu2  ;;  %v1709_v38 = vpop.f32.mrf.mxu3 }
 0x3e7   :  { %v1690_v36 = vadd.f32 %v1689_v35, %v1670_v33 }
 0x3e9   :  { %v1710_v39 = vadd.f32 %v1709_v38, %v1690_v36 }
 0x3eb   :  { %v1971_v46 = vperm.slane %v1710_v39, 0  ;;  %v1966_v47 = vrot.slane %v1710_v39, 3  ;;  %v1964_v2 = vrot.slane %v1710_v39, 1  ;;  %v1965_v34 = vrot.slane %v1710_v39, 2 }
 0x3ec   :  { %v1969_v25 = vrot.slane %v1710_v39, 6  ;;  %v1967_v50 = vrot.slane %v1710_v39, 4  ;;  %v1968_v60 = vrot.slane %v1710_v39, 5  ;;  %v1970_v3 = vrot.slane %v1710_v39, 7 }
 0x3ed   :  { %v1987_v52 = vadd.f32 %v1971_v46, %v3228_v37  ;;  %v1974_v53 = vperm.slane %v1966_v47, 0  ;;  %v1972_v55 = vperm.slane %v1964_v2, 0  ;;  %v1973_v56 = vperm.slane %v1965_v34, 0 }
 0x3ee   :  { %v1977_v31 = vperm.slane %v1969_v25, 0  ;;  %v1975_v58 = vperm.slane %v1967_v50, 0  ;;  %v1976_v9 = vperm.slane %v1968_v60, 0  ;;  %v1978_v15 = vperm.slane %v1970_v3, 0 }
 0x3ef   :  { %vm1995_vm10 = vcmp.ge.f32.partialorder %v1987_v52, 0.0  ;;  %v2003_v62 = vmul.f32 0.2, %v1987_v52  ;;  %v1990_v0 = vadd.f32 %v1974_v53, %v3228_v37  ;;  %v1988_v49 = vadd.f32 %v1972_v55, %v3228_v37 }
 0x3f0   :  { %v1989_v51 = vadd.f32 %v1973_v56, %v3228_v37  ;;  %v1993_v1 = vadd.f32 %v1977_v31, %v3228_v37  ;;  %v1991_v40 = vadd.f32 %v1975_v58, %v3228_v37  ;;  %v1992_v17 = vadd.f32 %v1976_v9, %v3228_v37 }
 0x3f1   :  { %v2011_v4 = vsel %vm1995_vm10, %v1987_v52, %v2003_v62  ;;  %vm1998_vm11 = vcmp.ge.f32.partialorder %v1990_v0, 0.0  ;;  %v2006_v5 = vmul.f32 0.2, %v1990_v0  ;;  %vm1996_vm12 = vcmp.ge.f32.partialorder %v1988_v49, 0.0 }
 0x3f2   :  { %v2022_v6 = vmul.f32 %v2020_v57, %v2011_v4  ;;  %v2004_v7 = vmul.f32 0.2, %v1988_v49  ;;  %v2005_v8 = vmul.f32 0.2, %v1989_v51  ;;  %vm1997_vm13 = vcmp.ge.f32.partialorder %v1989_v51, 0.0 }
 0x3f3   :  { %v2014_v30 = vsel %vm1998_vm11, %v1990_v0, %v2006_v5  ;;  %v2009_v14 = vmul.f32 0.2, %v1993_v1  ;;  %vm2001_vm14 = vcmp.ge.f32.partialorder %v1993_v1, 0.0  ;;  %v2007_v41 = vmul.f32 0.2, %v1991_v40 }
 0x3f4   :  { %2030 = vadd.xlane.f32.xlu0 %v2022_v6  ;;  %v2025_v11 = vmul.f32 %v2020_v57, %v2014_v30  ;;  %v2012_v12 = vsel %vm1996_vm12, %v1988_v49, %v2004_v7  ;;  %v2013_v16 = vsel %vm1997_vm13, %v1989_v51, %v2005_v8  ;;  %vm1999_vm15 = vcmp.ge.f32.partialorder %v1991_v40, 0.0 }
 0x3f5   :  { %v2023_v13 = vmul.f32 %v2020_v57, %v2012_v12  ;;  %v2017_v19 = vsel %vm2001_vm14, %v1993_v1, %v2009_v14  ;;  %v2024_v20 = vmul.f32 %v2020_v57, %v2013_v16  ;;  %v2015_v21 = vsel %vm1999_vm15, %v1991_v40, %v2007_v41 }
 0x3f6   :  { %2036 = vadd.xlane.f32.xlu2 %v2025_v11  ;;  %v1994_v22 = vadd.f32 %v1978_v15, %v3228_v37  ;;  %v2008_v23 = vmul.f32 0.2, %v1992_v17  ;;  %v2028_v26 = vmul.f32 %v2020_v57, %v2017_v19  ;;  %vm2000_vm0 = vcmp.ge.f32.partialorder %v1992_v17, 0.0 }
 0x3f7   :  { %2032 = vadd.xlane.f32.xlu1 %v2023_v13  ;;  %v2026_v27 = vmul.f32 %v2020_v57, %v2015_v21  ;;  %vm1911_vm11 = vcmp.ge.f32.partialorder %v1903_v32, 0.0 }
 0x3f8   :  { %v2010_v28 = vmul.f32 0.2, %v1994_v22  ;;  %v2016_v29 = vsel %vm2000_vm0, %v1992_v17, %v2008_v23  ;;  %vm2002_vm10 = vcmp.ge.f32.partialorder %v1994_v22, 0.0  ;;  %v1927_v37 = vsel %vm1911_vm11, %v1903_v32, %v1919_v59  ;;  %v2230_v23 = vld [vmem:[#allocation16 + $0x2e8] sm:$0xff]  ;;  %v2221_v32 = vld [vmem:[#allocation16 + $0x2a0] sm:$0xff]  ;;  %v2167_v59 = vld [vmem:[#allocation16 + $0xf0] sm:$0xff] }
 0x3f9   :  { %v2027_v54 = vmul.f32 %v2020_v57, %v2016_v29  ;;  %v1938_v33 = vmul.f32 %v3243_v61, %v1927_v37  ;;  %2262 = vmatpush.msrb.mxu3 %v2230_v23  ;;  %v2173_v29 = vld [vmem:[#allocation16 + $0x120] sm:$0xff]  ;;  %v2183_v37 = vld [vmem:[#allocation16 + $0x170] sm:$0xff]  ;;  %v2198_v23 = vld [vmem:[#allocation16 + $0x1e8] sm:$0xff] }
 0x3fa   :  { %v2018_v48 = vsel %vm2002_vm10, %v1994_v22, %v2010_v28  ;;  %v2182_v22 = vld [vmem:[#allocation16 + $0x168] sm:$0xff]  ;;  %v2224_v28 = vld [vmem:[#allocation16 + $0x2b8] sm:$0xff]  ;;  %2282 = vmatpush.msra.mxu0 %v2183_v37  ;;  %v2217_v37 = vld [vmem:[#allocation16 + $0x280] sm:$0xff] }
 0x3fb   :  { %v2029_v45 = vmul.f32 %v2020_v57, %v2018_v48  ;;  %2242 = vmatpush.msrb.mxu2 %v2182_v22  ;;  %v2218_v48 = vld [vmem:[#allocation16 + $0x288] sm:$0xff] }
 0x3fc   :  { %2034 = vadd.xlane.f32.xlu0 %v2024_v20  ;;  %v2150_v22 = vld [vmem:[#allocation16 + $0x68] sm:$0xff] }
 0x3fd   :  { %2243 = vmatpush.msrb.mxu2 %v2179_v24  ;;  %v2181_v24 = vld [vmem:[#allocation16 + $0x160] sm:$0xff] }
 0x3fe   :  { %2042 = vadd.xlane.f32.xlu2 %v2028_v26  ;;  %v2227_v26 = vld [vmem:[#allocation16 + $0x2d0] sm:$0xff] }
 0x3ff   :  { %2038 = vadd.xlane.f32.xlu1 %v2026_v27  ;;  %v2176_v27 = vld [vmem:[#allocation16 + $0x138] sm:$0xff]  ;;  %2263 = vmatpush.msrb.mxu3 %v2227_v26  ;;  %v2229_v26 = vld [vmem:[#allocation16 + $0x2e0] sm:$0xff] }
 0x400   :  { %2244 = vmatpush.msrb.mxu2 %v2176_v27  ;;  %v2147_v27 = vld [vmem:[#allocation16 + $0x50] sm:$0xff] }
 0x401   :  { %2264 = vmatpush.msrb.mxu3 %v2224_v28  ;;  %v2195_v28 = vld [vmem:[#allocation16 + $0x1d0] sm:$0xff] }
 0x402   :  { %2245 = vmatpush.msrb.mxu2 %v2173_v29  ;;  %v2178_v29 = vld [vmem:[#allocation16 + $0x148] sm:$0xff] }
 0x403   :  { %2265 = vmatpush.msrb.mxu3 %v2221_v32  ;;  %v2175_v32 = vld [vmem:[#allocation16 + $0x130] sm:$0xff] }
 0x404   :  { %2040 = vadd.xlane.f32.xlu0 %v2027_v54  ;;  %v2170_v54 = vld [vmem:[#allocation16 + $0x108] sm:$0xff] }
 0x405   :  { %2246 = vmatpush.msrb.mxu2 %v2170_v54  ;;  %2266 = vmatpush.msrb.mxu3 %v2218_v48  ;;  %v2223_v54 = vld [vmem:[#allocation16 + $0x2b0] sm:$0xff]  ;;  %v2172_v48 = vld [vmem:[#allocation16 + $0x118] sm:$0xff] }
 0x407   :  { %2044 = vadd.xlane.f32.xlu1 %v2029_v45  ;;  %v2215_v45 = vld [vmem:[#allocation16 + $0x270] sm:$0xff]  ;;  %2247 = vmatpush.msrb.mxu2 %v2167_v59  ;;  %v2220_v59 = vld [vmem:[#allocation16 + $0x298] sm:$0xff] }
 0x408   :  { %2267 = vmatpush.msrb.mxu3 %v2215_v45  ;;  %v2169_v45 = vld [vmem:[#allocation16 + $0x100] sm:$0xff] }
 0x40c   :  { %1953 = vadd.xlane.f32.xlu0 %v1938_v33  ;;  %v2231_v33 = vld [vmem:[#allocation16 + $0x2f0] sm:$0xff] }
 0x40d   :  { %2302 = vmatpush.msra.mxu1 %v2231_v33  ;;  %v2166_v33 = vld [vmem:[#allocation16 + $0xe8] sm:$0xff] }
 0x445   :  { %v1940_v35 = vpop.xlane.xlu1 %1939 }
 0x447   :  { %v1948_v43 = vpop.xlane.xlu0 %1947 }
 0x448   :  { %v1942_v36 = vpop.xlane.xlu2 %1941 }
 0x44d   :  { %v1946_v38 = vpop.xlane.xlu1 %1945 }
 0x450   :  { %v1944_v39 = vpop.xlane.xlu2 %1943 }
 0x455   :  { %v1952_v46 = vpop.xlane.xlu1 %1951 }
 0x458   :  { %v1950_v2 = vpop.xlane.xlu2 %1949 }
 0x467   :  { %v2031_v47 = vpop.xlane.xlu0 %2030 }
 0x468   :  { %v2046_v53 = vadd.f32 %v2031_v47, %v1940_v35  ;;  %v2180_v35 = vld [vmem:[#allocation16 + $0x158] sm:$0xff]  ;;  %v2161_v47 = vld [vmem:[#allocation16 + $0xc0] sm:$0xff] }
 0x469   :  { %v2037_v25 = vpop.xlane.xlu2 %2036  ;;  %2283 = vmatpush.msra.mxu0 %v2180_v35  ;;  %v2214_v35 = vld [vmem:[#allocation16 + $0x268] sm:$0xff] }
 0x46a   :  { %v2033_v44 = vpop.xlane.xlu1 %2032  ;;  %v2062_v57 = vperm.slane %v2046_v53, %v3155_v42  ;;  %v2049_v31 = vadd.f32 %v2037_v25, %v1946_v38  ;;  %v2164_v38 = vld [vmem:[#allocation16 + $0xd8] sm:$0xff]  ;;  %v2158_v25 = vld [vmem:[#allocation16 + $0xa8] sm:$0xff]  ;;  %v2219_v53 = vld [vmem:[#allocation16 + $0x290] sm:$0xff] }
 0x46b   :  { %v2047_v50 = vadd.f32 %v2033_v44, %v1942_v36  ;;  %v2228_v36 = vld [vmem:[#allocation16 + $0x2d8] sm:$0xff]  ;;  %2248 = vmatpush.msrb.mxu2 %v2164_v38  ;;  %v2174_v44 = vld [vmem:[#allocation16 + $0x128] sm:$0xff]  ;;  %v2211_v38 = vld [vmem:[#allocation16 + $0x250] sm:$0xff] }
 0x46c   :  { %v2065_v51 = vperm.slane %v2049_v31, %v3155_v42  ;;  %2303 = vmatpush.msra.mxu1 %v2228_v36  ;;  %v2152_v31 = vld [vmem:[#allocation16 + $0x78] sm:$0xff]  ;;  %v2163_v36 = vld [vmem:[#allocation16 + $0xd0] sm:$0xff] }
 0x46d   :  { %v2063_v55 = vperm.slane %v2047_v50, %v3155_v42  ;;  %v2206_v50 = vld [vmem:[#allocation16 + $0x228] sm:$0xff]  ;;  %2249 = vmatpush.msrb.mxu2 %v2161_v47  ;;  %v2192_v47 = vld [vmem:[#allocation16 + $0x1b8] sm:$0xff] }
 0x46f   :  { %v2035_v34 = vpop.xlane.xlu0 %2034  ;;  %v2070_v62 = vsel %vm876_vm1, %v2063_v55, %v2062_v57  ;;  %v2155_v55 = vld [vmem:[#allocation16 + $0x90] sm:$0xff]  ;;  %2250 = vmatpush.msrb.mxu2 %v2158_v25  ;;  %v2216_v57 = vld [vmem:[#allocation16 + $0x278] sm:$0xff]  ;;  %v2189_v25 = vld [vmem:[#allocation16 + $0x1a0] sm:$0xff] }
 0x470   :  { %v2048_v52 = vadd.f32 %v2035_v34, %v1944_v39  ;;  %v2212_v39 = vld [vmem:[#allocation16 + $0x258] sm:$0xff]  ;;  %v2222_v34 = vld [vmem:[#allocation16 + $0x2a8] sm:$0xff] }
 0x471   :  { %v2043_v1 = vpop.xlane.xlu2 %2042  ;;  %2268 = vmatpush.msrb.mxu3 %v2212_v39  ;;  %2251 = vmatpush.msrb.mxu2 %v2155_v55  ;;  %v2160_v39 = vld [vmem:[#allocation16 + $0xb8] sm:$0xff]  ;;  %v2186_v55 = vld [vmem:[#allocation16 + $0x188] sm:$0xff] }
 0x472   :  { %v2039_v56 = vpop.xlane.xlu1 %2038  ;;  %v2064_v61 = vperm.slane %v2048_v52, %v3155_v42  ;;  %v2052_v7 = vadd.f32 %v2043_v1, %v1952_v46  ;;  %v2225_v46 = vld [vmem:[#allocation16 + $0x2c0] sm:$0xff]  ;;  %v2171_v52 = vld [vmem:[#allocation16 + $0x110] sm:$0xff] }
 0x473   :  { %v2050_v58 = vadd.f32 %v2039_v56, %v1948_v43  ;;  %v2177_v43 = vld [vmem:[#allocation16 + $0x140] sm:$0xff]  ;;  %2304 = vmatpush.msra.mxu1 %v2225_v46  ;;  %v2203_v56 = vld [vmem:[#allocation16 + $0x210] sm:$0xff]  ;;  %2252 = vmatpush.msrb.mxu2 %v2152_v31  ;;  %v2144_v46 = vld [vmem:[#allocation16 + $0x38] sm:$0xff] }
 0x474   :  { %v2071_v49 = vsel %vm878_vm2, %v2064_v61, %v2070_v62  ;;  %v2068_v11 = vperm.slane %v2052_v7, %v3155_v42  ;;  %2284 = vmatpush.msra.mxu0 %v2177_v43  ;;  %v2168_v61 = vld [vmem:[#allocation16 + $0xf8] sm:$0xff]  ;;  %v2213_v62 = vld [vmem:[#allocation16 + $0x260] sm:$0xff]  ;;  %v2194_v7 = vld [vmem:[#allocation16 + $0x1c8] sm:$0xff] }
 0x475   :  { %v2066_v4 = vperm.slane %v2050_v58, %v3155_v42  ;;  %v2072_v5 = vsel %vm880_vm3, %v2065_v51, %v2071_v49  ;;  %2305 = vmatpush.msra.mxu1 %v2222_v34  ;;  %v2200_v58 = vld [vmem:[#allocation16 + $0x1f8] sm:$0xff]  ;;  %v2149_v49 = vld [vmem:[#allocation16 + $0x60] sm:$0xff] }
 0x476   :  { %2285 = vmatpush.msra.mxu0 %v2174_v44  ;;  %v2197_v51 = vld [vmem:[#allocation16 + $0x1e0] sm:$0xff]  ;;  %2253 = vmatpush.msrb.mxu2 %v2149_v49  ;;  %v2208_v43 = vld [vmem:[#allocation16 + $0x238] sm:$0xff]  ;;  %v2190_v49 = vld [vmem:[#allocation16 + $0x1a8] sm:$0xff] }
 0x477   :  { %v2041_v60 = vpop.xlane.xlu0 %2040  ;;  %v2073_v40 = vsel %vm882_vm4, %v2066_v4, %v2072_v5  ;;  %2306 = vmatpush.msra.mxu1 %v2219_v53  ;;  %v2162_v4 = vld [vmem:[#allocation16 + $0xc8] sm:$0xff]  ;;  %v2205_v44 = vld [vmem:[#allocation16 + $0x220] sm:$0xff]  ;;  %v2196_v31 = vld [vmem:[#allocation16 + $0x1d8] sm:$0xff] }
 0x478   :  { %v2051_v0 = vadd.f32 %v2041_v60, %v1950_v2  ;;  %v2209_v2 = vld [vmem:[#allocation16 + $0x240] sm:$0xff]  ;;  %2286 = vmatpush.msra.mxu0 %v2171_v52  ;;  %v2210_v5 = vld [vmem:[#allocation16 + $0x248] sm:$0xff] }
 0x479   :  { %2269 = vmatpush.msrb.mxu3 %v2209_v2  ;;  %v2165_v60 = vld [vmem:[#allocation16 + $0xe0] sm:$0xff]  ;;  %2307 = vmatpush.msra.mxu1 %v2216_v57  ;;  %v2202_v52 = vld [vmem:[#allocation16 + $0x208] sm:$0xff]  ;;  %v2148_v57 = vld [vmem:[#allocation16 + $0x58] sm:$0xff] }
 0x47a   :  { %v2067_v6 = vperm.slane %v2051_v0, %v3155_v42  ;;  %v2045_v3 = vpop.xlane.xlu1 %2044  ;;  %2287 = vmatpush.msra.mxu0 %v2168_v61  ;;  %v2157_v2 = vld [vmem:[#allocation16 + $0xa0] sm:$0xff]  ;;  %v2138_v53 = vld [vmem:[#allocation16 + $0x8] sm:$0xff]  ;;  %v2199_v61 = vld [vmem:[#allocation16 + $0x1f0] sm:$0xff] }
 0x47b   :  { %2270 = vmatpush.msrb.mxu3 %v2206_v50  ;;  %2308 = vmatpush.msra.mxu1 %v2213_v62  ;;  %v2141_v34 = vld [vmem:[#allocation16 + $0x20] sm:$0xff]  ;;  %v2154_v50 = vld [vmem:[#allocation16 + $0x88] sm:$0xff] }
 0x47c   :  { %v2074_v9 = vsel %vm884_vm5, %v2067_v6, %v2073_v40  ;;  %v2146_v6 = vld [vmem:[#allocation16 + $0x48] sm:$0xff]  ;;  %2288 = vmatpush.msra.mxu0 %v2165_v60  ;;  %v2159_v40 = vld [vmem:[#allocation16 + $0xb0] sm:$0xff]  ;;  %v2145_v60 = vld [vmem:[#allocation16 + $0x40] sm:$0xff] }
 0x47d   :  { %v2075_v13 = vsel %vm886_vm6, %v2068_v11, %v2074_v9  ;;  %2271 = vmatpush.msrb.mxu3 %v2203_v56  ;;  %2309 = vmatpush.msra.mxu1 %v2210_v5  ;;  %v2156_v9 = vld [vmem:[#allocation16 + $0x98] sm:$0xff]  ;;  %v2151_v56 = vld [vmem:[#allocation16 + $0x70] sm:$0xff]  ;;  %v2193_v62 = vld [vmem:[#allocation16 + $0x1c0] sm:$0xff]  ;;  %v1769_v5 = vpop.f32.mrf.mxu2 }
 0x47e   :  { %2289 = vmatpush.msra.mxu0 %v2162_v4  ;;  %2254 = vmatpush.msrb.mxu2 %v2146_v6  ;;  %v2204_v11 = vld [vmem:[#allocation16 + $0x218] sm:$0xff]  ;;  %v1749_v4 = vpop.f32.mrf.mxu1  ;;  %v1384_v6 = vperm.slane %v3217_v63, 4 }
 0x47f   :  { %v1954_v30 = vpop.xlane.xlu0 %1953  ;;  %2272 = vmatpush.msrb.mxu3 %v2200_v58  ;;  %v1729_v58 = vpop.f32.mrf.mxu0 }
 0x480   :  { %v2053_v8 = vadd.f32 %v2045_v3, %v1954_v30  ;;  %v2207_v3 = vld [vmem:[#allocation16 + $0x230] sm:$0xff]  ;;  %2290 = vmatpush.msra.mxu0 %v2159_v40 }
 0x481   :  { %2273 = vmatpush.msrb.mxu3 %v2197_v51  ;;  %v2143_v30 = vld [vmem:[#allocation16 + $0x30] sm:$0xff]  ;;  %2310 = vmatpush.msra.mxu1 %v2207_v3  ;;  %v1730_v3 = vadd.f32 %v1729_v58, %v1384_v6 }
 0x482   :  { %v2069_v12 = vperm.slane %v2053_v8, %v3155_v42  ;;  %v2191_v8 = vld [vmem:[#allocation16 + $0x1b0] sm:$0xff]  ;;  %2255 = vmatpush.msrb.mxu2 %v2143_v30  ;;  %2291 = vmatpush.msra.mxu0 %v2156_v9 }
 0x483   :  { %2274 = vmatpush.msrb.mxu3 %v2194_v7  ;;  %2311 = vmatpush.msra.mxu1 %v2204_v11  ;;  %v2139_v51 = vld [vmem:[#allocation16 + $0x10] sm:$0xff]  ;;  %v1385_v7 = vperm.slane %v3217_v63, 5 }
 0x484   :  { %v2076_v14 = vsel %vm888_vm7, %v2069_v12, %v2075_v13  ;;  %v2140_v12 = vld [vmem:[#allocation16 + $0x18] sm:$0xff] }
 0x485   :  { %v2078_v41 = vsel %vm195_vm8, %v2076_v14, -1e+30  ;;  %v2188_v13 = vld [vmem:[#allocation16 + $0x198] sm:$0xff]  ;;  %2275 = vmatpush.msrb.mxu3 %v2191_v8  ;;  %v2153_v14 = vld [vmem:[#allocation16 + $0x80] sm:$0xff]  ;;  %2256 = vmatpush.msrb.mxu2 %v2140_v12  ;;  %v1789_v8 = vpop.f32.mrf.mxu3  ;;  %v1849_v11 = vpop.f32.mrf.mxu2  ;;  %v1750_v12 = vadd.f32 %v1749_v4, %v1730_v3 }
 0x486   :  { %v2079_v15 = vsel %vm892_vm9, %v2078_v41, -inf  ;;  %2292 = vmatpush.msra.mxu0 %v2153_v14  ;;  %v1829_v9 = vpop.f32.mrf.mxu1 }
 0x487   :  { %2080 = vmax.xlane.f32.xlu2 %v2079_v15  ;;  %v2137_v15 = vld [vmem:[#allocation16] sm:$0xff]  ;;  %2276 = vmatpush.msrb.mxu3 %v2188_v13  ;;  %v1809_v40 = vpop.f32.mrf.mxu0  ;;  %v1770_v14 = vadd.f32 %v1769_v5, %v1750_v12 }
 0x488   :  { %2257 = vmatpush.msrb.mxu2 %v2137_v15  ;;  %2293 = vmatpush.msra.mxu0 %v2150_v22  ;;  %v1810_v30 = vadd.f32 %v1809_v40, %v1385_v7 }
 0x48a   :  { %2294 = vmatpush.msra.mxu0 %v2147_v27  ;;  %v1830_v13 = vadd.f32 %v1829_v9, %v1810_v30 }
 0x48c   :  { %2295 = vmatpush.msra.mxu0 %v2144_v46 }
 0x48d   :  { %v1869_v15 = vpop.f32.mrf.mxu3 }
 0x48e   :  { %2296 = vmatpush.msra.mxu0 %v2141_v34 }
 0x490   :  { %2297 = vmatpush.msra.mxu0 %v2138_v53 }
 0x4fa   :  { %v2081_v16 = vpop.xlane.xlu2 %2080 }
 0x4fb   :  { %v2082_v17 = vsub.f32 %v2078_v41, %v2081_v16  ;;  %v2201_v41 = vld [vmem:[#allocation16 + $0x200] sm:$0xff] }
 0x4fc   :  { %v2185_v16 = vld [vmem:[#allocation16 + $0x180] sm:$0xff]  ;;  %2312 = vmatpush.msra.mxu1 %v2201_v41  ;;  %v1850_v41 = vadd.f32 %v1849_v11, %v1830_v13 }
 0x4fd   :  { %v2083_v18 = vmul.f32 1.442695, %v2082_v17  ;;  %2277 = vmatpush.msrb.mxu3 %v2185_v16  ;;  %v1790_v16 = vadd.f32 %v1789_v8, %v1770_v14 }
 0x4fe   :  { %2313 = vmatpush.msra.mxu1 %v2198_v23 }
 0x4ff   :  { %2579 = vpow2.f32 %v2083_v18 }
 0x500   :  { %2314 = vmatpush.msra.mxu1 %v2195_v28 }
 0x502   :  { %2315 = vmatpush.msra.mxu1 %v2192_v47 }
 0x504   :  { %2316 = vmatpush.msra.mxu1 %v2189_v25 }
 0x505   :  { %v2580_v19 = vpop.eup %2579 }
 0x506   :  { %v3293_v20 = vsel %vm195_vm8, %v2580_v19, 0.0  ;;  %v2184_v19 = vld [vmem:[#allocation16 + $0x178] sm:$0xff]  ;;  %2317 = vmatpush.msra.mxu1 %v2186_v55 }
 0x507   :  { %v2086_v21 = vsel %vm892_vm9, %v3293_v20, 0.0  ;;  %2322 = vmatpush.msra.mxu2 %v2184_v19 }
 0x508   :  { %2087 = vadd.xlane.f32.xlu0 %v2086_v21  ;;  %v2232_v21 = vld [vmem:[#allocation16 + $0x2f8] sm:$0xff] }
 0x509   :  { %2342 = vmatpush.msra.mxu3 %v2232_v21  ;;  %2323 = vmatpush.msra.mxu2 %v2181_v24  ;;  %v3302_v24 = vld [vmem:[#allocation17] sm:$0x7] }
 0x50b   :  { %2343 = vmatpush.msra.mxu3 %v2229_v26  ;;  %2324 = vmatpush.msra.mxu2 %v2178_v29  ;;  %v2237_v26 = vperm.slane %v3302_v24, 1 }
 0x50d   :  { %2325 = vmatpush.msra.mxu2 %v2175_v32 }
 0x50f   :  { %2326 = vmatpush.msra.mxu2 %v2172_v48 }
 0x511   :  { %2327 = vmatpush.msra.mxu2 %v2169_v45 }
 0x513   :  { %2328 = vmatpush.msra.mxu2 %v2166_v33 }
 0x515   :  { %2329 = vmatpush.msra.mxu2 %v2163_v36 }
 0x517   :  { %2330 = vmatpush.msra.mxu2 %v2160_v39 }
 0x519   :  { %2331 = vmatpush.msra.mxu2 %v2157_v2 }
 0x51b   :  { %2332 = vmatpush.msra.mxu2 %v2154_v50  ;;  %v2574_v50 = vld [vmem:[#allocation19] ss:$0 sm:$0xff] }
 0x51d   :  { %2333 = vmatpush.msra.mxu2 %v2151_v56 }
 0x51f   :  { %2334 = vmatpush.msra.mxu2 %v2148_v57 }
 0x521   :  { %2335 = vmatpush.msra.mxu2 %v2145_v60 }
 0x57b   :  { %v2088_v0 = vpop.xlane.xlu0 %2087 }
 0x57c   :  { %v2089_v1 = vmax.f32 %v2088_v0, 1e-30  ;;  %v2142_v0 = vld [vmem:[#allocation16 + $0x28] sm:$0xff] }
 0x57d   :  { %2336 = vmatpush.msra.mxu2 %v2142_v0 }
 0x57e   :  { %2581 = vrcp.f32 %v2089_v1  ;;  %v2187_v1 = vld [vmem:[#allocation16 + $0x190] sm:$0xff] }
 0x57f   :  { %2337 = vmatpush.msra.mxu2 %v2139_v51 }
 0x584   :  { %v2582_v17 = vpop.eup %2581 }
 0x585   :  { %v2091_v18 = vmul.f32 %v2582_v17, %v3293_v20  ;;  %v2226_v20 = vld [vmem:[#allocation16 + $0x2c8] sm:$0xff]  ;;  %v1870_v17 = vadd.f32 %v1869_v15, %v1850_v41 }
 0x586   :  { %2344 = vmatpush.msra.mxu3 %v2226_v20  ;;  %v2236_v20 = vperm.slane %v3302_v24, 0 }
 0x587   :  { %2553 = vmatmul.msk.f32.vlgmr.msrb.gmra.mxu0 %vm892_vm9, %v2091_v18  ;;  %2554 = vmatmul.msk.f32.vlgmr.msrb.gmra.mxu1 %vm892_vm9, %v2091_v18 }
 0x588   :  { %2345 = vmatpush.msra.mxu3 %v2223_v54 }
 0x58a   :  { %2346 = vmatpush.msra.mxu3 %v2220_v59 }
 0x58c   :  { %2347 = vmatpush.msra.mxu3 %v2217_v37 }
 0x58e   :  { %2348 = vmatpush.msra.mxu3 %v2214_v35 }
 0x590   :  { %2349 = vmatpush.msra.mxu3 %v2211_v38 }
 0x592   :  { %2350 = vmatpush.msra.mxu3 %v2208_v43 }
 0x594   :  { %2351 = vmatpush.msra.mxu3 %v2205_v44 }
 0x596   :  { %2352 = vmatpush.msra.mxu3 %v2202_v52 }
 0x598   :  { %2353 = vmatpush.msra.mxu3 %v2199_v61 }
 0x59a   :  { %2354 = vmatpush.msra.mxu3 %v2196_v31 }
 0x59c   :  { %2355 = vmatpush.msra.mxu3 %v2193_v62 }
 0x59e   :  { %2356 = vmatpush.msra.mxu3 %v2190_v49 }
 0x5a0   :  { %2357 = vmatpush.msra.mxu3 %v2187_v1 }
 0x604   :  { %v2112_v18 = vpop.f32.mrf.mxu0  ;;  %v2132_v19 = vpop.f32.mrf.mxu1 }
 0x605   :  { %v2113_v21 = vadd.f32 %v2112_v18, %v1790_v16  ;;  %v2133_v22 = vadd.f32 %v2132_v19, %v1870_v17 }
 0x607   :  { %v2135_v63 = vmax.f32 %v2113_v21, 0.0  ;;  %v2136_v23 = vmax.f32 %v2133_v22, 0.0 }
 0x609   :  { %2258 = vmatmul.f32.vlgmr.msrb.gmra.mxu2 %v2135_v63  ;;  %2278 = vmatmul.f32.vlgmr.msrb.gmra.mxu3 %v2136_v23 }
 0x60a   :  { %2298 = vmatmul.f32.vlgmr.msra.gmra.mxu0 %v2135_v63  ;;  %2318 = vmatmul.f32.vlgmr.msra.gmra.mxu1 %v2136_v23 }
 0x611   :  { %2338 = vmatmul.f32.vlgmr.msra.gmra.mxu2 %v2135_v63  ;;  %2358 = vmatmul.f32.vlgmr.msra.gmra.mxu3 %v2136_v23 }
 0x687   :  { %v2299_v27 = vpop.f32.mrf.mxu0  ;;  %v2319_v29 = vpop.f32.mrf.mxu1 }
 0x688   :  { %v2300_v28 = vadd.f32 %v2299_v27, %v2237_v26 }
 0x68a   :  { %v2320_v32 = vadd.f32 %v2319_v29, %v2300_v28 }
 0x68c   :  { %v2259_v54 = vpop.f32.mrf.mxu2  ;;  %v2364_v48 = vrot.slane %v2320_v32, 2  ;;  %v2363_v59 = vrot.slane %v2320_v32, 1  ;;  %v2367_v45 = vrot.slane %v2320_v32, 5  ;;  %v2366_v33 = vrot.slane %v2320_v32, 4  ;;  %v2279_v35 = vpop.f32.mrf.mxu3 }
 0x68d   :  { %v2260_v37 = vadd.f32 %v2259_v54, %v2236_v20  ;;  %v2365_v36 = vrot.slane %v2320_v32, 3  ;;  %v2370_v46 = vperm.slane %v2320_v32, 0  ;;  %v2369_v62 = vrot.slane %v2320_v32, 7 }
 0x68e   :  { %v2372_v39 = vperm.slane %v2364_v48, 0  ;;  %v2371_v43 = vperm.slane %v2363_v59, 0  ;;  %v2375_v47 = vperm.slane %v2367_v45, 0  ;;  %v2374_v2 = vperm.slane %v2366_v33, 0 }
 0x68f   :  { %v2280_v38 = vadd.f32 %v2279_v35, %v2260_v37  ;;  %v2373_v55 = vperm.slane %v2365_v36, 0  ;;  %v2368_v1 = vrot.slane %v2320_v32, 6  ;;  %v2377_v40 = vperm.slane %v2369_v62, 0 }
 0x691   :  { %2509 = vmatpush.msrb.mxu0 %v2280_v38  ;;  %v2388_v44 = vadd.f32 %v2372_v39, %v2280_v38  ;;  %v2387_v34 = vadd.f32 %v2371_v43, %v2280_v38  ;;  %v2386_v25 = vadd.f32 %v2370_v46, %v2280_v38  ;;  %v2391_v52 = vadd.f32 %v2375_v47, %v2280_v38 }
 0x692   :  { %v2390_v53 = vadd.f32 %v2374_v2, %v2280_v38  ;;  %v2389_v31 = vadd.f32 %v2373_v55, %v2280_v38  ;;  %v2376_v3 = vperm.slane %v2368_v1, 0  ;;  %v2393_v9 = vadd.f32 %v2377_v40, %v2280_v38 }
 0x693   :  { %vm2396_vm12 = vcmp.ge.f32.partialorder %v2388_v44, 0.0  ;;  %v2404_v56 = vmul.f32 0.2, %v2388_v44  ;;  %vm2395_vm13 = vcmp.ge.f32.partialorder %v2387_v34, 0.0  ;;  %v2403_v61 = vmul.f32 0.2, %v2387_v34 }
 0x694   :  { %vm2394_vm14 = vcmp.ge.f32.partialorder %v2386_v25, 0.0  ;;  %v2402_v57 = vmul.f32 0.2, %v2386_v25  ;;  %v2407_v5 = vmul.f32 0.2, %v2391_v52  ;;  %vm2399_vm15 = vcmp.ge.f32.partialorder %v2391_v52, 0.0 }
 0x695   :  { %v2412_v58 = vsel %vm2396_vm12, %v2388_v44, %v2404_v56  ;;  %v2411_v60 = vsel %vm2395_vm13, %v2387_v34, %v2403_v61  ;;  %v2406_v6 = vmul.f32 0.2, %v2390_v53  ;;  %vm2398_vm0 = vcmp.ge.f32.partialorder %v2390_v53, 0.0 }
 0x696   :  { %v2423_v0 = vmul.f32 %v2574_v50, %v2412_v58  ;;  %v2422_v49 = vmul.f32 %v2574_v50, %v2411_v60  ;;  %v2410_v51 = vsel %vm2394_vm14, %v2386_v25, %v2402_v57  ;;  %v2405_v7 = vmul.f32 0.2, %v2389_v31  ;;  %v2339_v60 = vpop.f32.mrf.mxu2 }
 0x697   :  { %v2421_v4 = vmul.f32 %v2574_v50, %v2410_v51  ;;  %vm2397_vm10 = vcmp.ge.f32.partialorder %v2389_v31, 0.0  ;;  %v2415_v30 = vsel %vm2399_vm15, %v2391_v52, %v2407_v5  ;;  %v2414_v8 = vsel %vm2398_vm0, %v2390_v53, %v2406_v6 }
 0x698   :  { %2433 = vadd.xlane.f32.xlu0 %v2423_v0  ;;  %2431 = vadd.xlane.f32.xlu2 %v2422_v49  ;;  %v2413_v11 = vsel %vm2397_vm10, %v2389_v31, %v2405_v7  ;;  %v2392_v12 = vadd.f32 %v2376_v3, %v2280_v38  ;;  %v2426_v13 = vmul.f32 %v2574_v50, %v2415_v30  ;;  %v2409_v15 = vmul.f32 0.2, %v2393_v9  ;;  %v2359_v0 = vpop.f32.mrf.mxu3 }
 0x699   :  { %2429 = vadd.xlane.f32.xlu1 %v2421_v4  ;;  %v2425_v14 = vmul.f32 %v2574_v50, %v2414_v8  ;;  %v2424_v41 = vmul.f32 %v2574_v50, %v2413_v11  ;;  %vm2401_vm11 = vcmp.ge.f32.partialorder %v2393_v9, 0.0  ;;  %v2238_v58 = vperm.slane %v3302_v24, 2 }
 0x69a   :  { %v2408_v16 = vmul.f32 0.2, %v2392_v12  ;;  %vm2400_vm12 = vcmp.ge.f32.partialorder %v2392_v12, 0.0  ;;  %v2417_v17 = vsel %vm2401_vm11, %v2393_v9, %v2409_v15 }
 0x69b   :  { %v2428_v19 = vmul.f32 %v2574_v50, %v2417_v17  ;;  %v2340_v62 = vadd.f32 %v2339_v60, %v2238_v58 }
 0x69c   :  { %v2416_v18 = vsel %vm2400_vm12, %v2392_v12, %v2408_v16 }
 0x69d   :  { %v2427_v21 = vmul.f32 %v2574_v50, %v2416_v18  ;;  %v2360_v10 = vadd.f32 %v2359_v0, %v2340_v62 }
 0x6a0   :  { %2439 = vadd.xlane.f32.xlu0 %v2426_v13  ;;  %2437 = vadd.xlane.f32.xlu2 %v2425_v14 }
 0x6a1   :  { %2435 = vadd.xlane.f32.xlu1 %v2424_v41 }
 0x6a8   :  { %2443 = vadd.xlane.f32.xlu2 %v2428_v19 }
 0x6a9   :  { %2441 = vadd.xlane.f32.xlu1 %v2427_v21 }
 0x70b   :  { %v2432_v22 = vpop.xlane.xlu2 %2431  ;;  %v2434_v23 = vpop.xlane.xlu0 %2433 }
 0x70c   :  { %v2430_v63 = vpop.xlane.xlu1 %2429  ;;  %v2462_v26 = vperm.slane %v2432_v22, %v3155_v42  ;;  %v2463_v28 = vperm.slane %v2434_v23, %v3155_v42 }
 0x70d   :  { %v2461_v27 = vperm.slane %v2430_v63, %v3155_v42 }
 0x70f   :  { %v2469_v20 = vsel %vm876_vm1, %v2462_v26, %v2461_v27 }
 0x710   :  { %v2470_v59 = vsel %vm878_vm2, %v2463_v28, %v2469_v20 }
 0x713   :  { %v2438_v29 = vpop.xlane.xlu2 %2437  ;;  %v2440_v37 = vpop.xlane.xlu0 %2439 }
 0x714   :  { %v2436_v32 = vpop.xlane.xlu1 %2435  ;;  %v2465_v48 = vperm.slane %v2438_v29, %v3155_v42  ;;  %v2466_v36 = vperm.slane %v2440_v37, %v3155_v42 }
 0x715   :  { %v2464_v54 = vperm.slane %v2436_v32, %v3155_v42 }
 0x717   :  { %v2471_v45 = vsel %vm880_vm3, %v2464_v54, %v2470_v59 }
 0x718   :  { %v2472_v33 = vsel %vm882_vm4, %v2465_v48, %v2471_v45 }
 0x719   :  { %v2473_v46 = vsel %vm884_vm5, %v2466_v36, %v2472_v33 }
 0x71b   :  { %v2444_v35 = vpop.xlane.xlu2 %2443 }
 0x71c   :  { %v2468_v38 = vperm.slane %v2444_v35, %v3155_v42  ;;  %v2442_v39 = vpop.xlane.xlu1 %2441 }
 0x71d   :  { %v2467_v43 = vperm.slane %v2442_v39, %v3155_v42 }
 0x71f   :  { %v2474_v47 = vsel %vm886_vm6, %v2467_v43, %v2473_v46 }
 0x720   :  { %v2475_v2 = vsel %vm888_vm7, %v2468_v38, %v2474_v47 }
 0x721   :  { %v2477_v44 = vsel %vm195_vm8, %v2475_v2, -1e+30 }
 0x722   :  { %v2478_v34 = vsel %vm892_vm9, %v2477_v44, -inf }
 0x723   :  { %2479 = vmax.xlane.f32.xlu0 %v2478_v34 }
 0x796   :  { %v2480_v25 = vpop.xlane.xlu0 %2479 }
 0x797   :  { %v2481_v50 = vsub.f32 %v2477_v44, %v2480_v25 }
 0x799   :  { %v2482_v52 = vmul.f32 1.442695, %v2481_v50 }
 0x79b   :  { %2583 = vpow2.f32 %v2482_v52 }
 0x7a1   :  { %v2584_v53 = vpop.eup %2583 }
 0x7a2   :  { %v2484_v42 = vsel %vm195_vm8, %v2584_v53, 0.0 }
 0x7a3   :  { %v2485_v55 = vsel %vm892_vm9, %v2484_v42, 0.0 }
 0x7a4   :  { %2486 = vadd.xlane.f32.xlu1 %v2485_v55 }
 0x817   :  { %v2487_v56 = vpop.xlane.xlu1 %2486 }
 0x818   :  { %v2488_v61 = vmax.f32 %v2487_v56, 1e-30 }
 0x81a   :  { %2585 = vrcp.f32 %v2488_v61 }
 0x820   :  { %v2586_v57 = vpop.eup %2585 }
 0x821   :  { %v2490_v31 = vmul.f32 %v2586_v57, %v2484_v42 }
 0x823   :  { %2555 = vmatmul.msk.f32.vlgmr.msrb.gmra.mxu0 %vm892_vm9, %v2490_v31 }
 0x8a0   :  { %v2511_v49 = vpop.f32.mrf.mxu0 }
 0x8a1   :  { %v2512_v51 = vadd.f32 %v2511_v49, %v2360_v10 }
 0x8a3   :  { %2514 = vst [vmem:[#allocation20] sm:$0xff] %v2512_v51 }
 0x8a4   :  { %2525 = dma.vmem_to_hbm [thread:$0]  %s2521_s10, 128, %s2523_s9, [#allocation4]  }
 0x8a5   :  { %2887 = dma.done.wait [#allocation4], 128  }
 0x8a6   :  { %2888 = vsyncadd [#allocation4], 4294967168 }
 0x8a7   :  { %2530 = vsyncpa [#allocation3], 1 }
 0x8a8   :  { %2531 = vsyncpa [#allocation6], 1 }
 0x8a9   :  { %2532 = vsyncpa [#allocation9], 1 }
 0x8aa   :  { %2533 = vsyncpa [#allocation12], 1 }
 0x8ab   :  { %2534 = vsyncpa [#allocation15], 1 }
 0x8ac   :  { %2535 = vsyncpa [#allocation18], 1 }
 0x8ad   :  { %2536 = vsyncpa [#allocation4], 1 }

</bundles_post_ra>
